<compile_context>
chip_gen: v5e
topology: v5e:2x2
jax: 0.10.0
libtpu: 0.0.40
codegen_flags: <defaults>
</compile_context>

<pallas_src>
import jax
import jax.numpy as jnp
import numpy as np
from jax import lax
from jax.experimental import pallas as pl
from jax.experimental.pallas import tpu as pltpu


def _lstm_classifier_kernel(ids_ref, emb_ref, wx_ref, wh_ref, b_ref,
                            wo_ref, bo_ref, logp_ref, hseq_ref, xp_sc):
    """Single invocation: embedding gather + full LSTM recurrence + head.

    ids_ref  : (T*Bp, 1)   int32 token ids, time-major (row = t*Bp + b)
    emb_ref  : (V, E)      embedding table
    wx_ref   : (E, 4H)     input->gates weights (i|f|g|o, PyTorch gate order)
    wh_ref   : (H, 4H)     hidden->gates weights
    b_ref    : (1, 4H)     combined bias (b_ih + b_hh)
    wo_ref   : (H, 2)      lstm2out weights
    bo_ref   : (1, 2)      lstm2out bias
    logp_ref : (Bp, 2)     log_softmax output
    hseq_ref : (Bp, T, H)  lstm_out, written batch-first (no wrapper transpose)
    xp_sc    : (T*Bp, 4H)  VMEM scratch holding the hoisted input projection
    """
    Bp, T, H = hseq_ref.shape
    V = emb_ref.shape[0]
    TB = ids_ref.shape[0]                                   # T * Bp

    # Fold the embedding into the input projection: one small MXU call over
    # the whole vocab, then a one-hot gather-matmul for all timesteps at once.
    xw = jnp.dot(emb_ref[...], wx_ref[...],
                 preferred_element_type=jnp.float32)        # (V, 4H)
    onehot = (ids_ref[...] ==
              lax.broadcasted_iota(jnp.int32, (TB, V), 1)
              ).astype(jnp.float32)                         # (T*Bp, V)
    xp_sc[...] = (jnp.dot(onehot, xw, preferred_element_type=jnp.float32)
                  + b_ref[...])                             # (T*Bp, 4H)

    h = jnp.zeros((Bp, H), jnp.float32)
    c = jnp.zeros((Bp, H), jnp.float32)

    # Static, fully unrolled recurrence: only h @ Wh sits on the serial path.
    for t in range(T):
        gates = xp_sc[t * Bp:(t + 1) * Bp, :] + jnp.dot(
            h, wh_ref[...], preferred_element_type=jnp.float32)   # (Bp, 4H)
        i_g = jax.nn.sigmoid(gates[:, 0 * H:1 * H])
        f_g = jax.nn.sigmoid(gates[:, 1 * H:2 * H])
        g_g = jnp.tanh(gates[:, 2 * H:3 * H])
        o_g = jax.nn.sigmoid(gates[:, 3 * H:4 * H])
        c = f_g * c + i_g * g_g
        h = o_g * jnp.tanh(c)
        hseq_ref[:, t, :] = h                                     # batch-first

    # Final Linear + branch-free 2-class log_softmax (no cross-lane reduce).
    logits = (jnp.dot(h, wo_ref[...], preferred_element_type=jnp.float32)
              + bo_ref[...])                                      # (Bp, 2)
    l0 = logits[:, 0:1]
    l1 = logits[:, 1:2]
    m = jnp.maximum(l0, l1)
    lse = m + jnp.log(1.0 + jnp.exp(-jnp.abs(l1 - l0)))
    logp_ref[...] = logits - lse


@jax.jit
def char_classifier_forward(input_ids, params):
    """Pallas-backed forward. Returns (log_probs (B,2), lstm_out (B,T,H))."""
    emb = params["emb"]                     # (V, E)
    wx = params["wx"]                       # (E, 4H)
    wh = params["wh"]                       # (H, 4H)
    b = params["b"]                         # (1, 4H)
    wo = params["wo"]                       # (H, 2)
    bo = params["bo"]                       # (1, 2)

    B, T = input_ids.shape
    H = wh.shape[0]
    Bp = ((B + 7) // 8) * 8                 # pad batch to sublane width (8)

    # Only the tiny int32 id tensor is touched in the wrapper; everything
    # activation-sized lives inside the kernel.
    ids_p = jnp.pad(input_ids, ((0, Bp - B), (0, 0)))        # pad rows -> id 0
    ids_tm = ids_p.T.reshape(T * Bp, 1).astype(jnp.int32)    # row = t*Bp + b

    vmem_spec = pl.BlockSpec(memory_space=pltpu.MemorySpace.VMEM)
    logp_p, hseq_p = pl.pallas_call(
        _lstm_classifier_kernel,
        out_shape=(
            jax.ShapeDtypeStruct((Bp, 2), jnp.float32),
            jax.ShapeDtypeStruct((Bp, T, H), jnp.float32),
        ),
        in_specs=[vmem_spec] * 7,
        out_specs=(vmem_spec, vmem_spec),
        scratch_shapes=[pltpu.VMEM((T * Bp, 4 * H), jnp.float32)],
    )(ids_tm, emb, wx, wh, b, wo, bo)

    return logp_p[:B], hseq_p[:B]


def init_params(key, vocab_size, emb_size, hidden_size):
    """Deterministic synthetic parameters (shapes match the nn.Module)."""
    ks = jax.random.split(key, 7)
    H, E, V = hidden_size, emb_size, vocab_size
    scale = 1.0 / np.sqrt(H)
    emb = jax.random.normal(ks[0], (V, E), jnp.float32)
    w_ih = jax.random.uniform(ks[1], (4 * H, E), jnp.float32, -scale, scale)
    w_hh = jax.random.uniform(ks[2], (4 * H, H), jnp.float32, -scale, scale)
    b_ih = jax.random.uniform(ks[3], (4 * H,), jnp.float32, -scale, scale)
    b_hh = jax.random.uniform(ks[4], (4 * H,), jnp.float32, -scale, scale)
    w_out = jax.random.uniform(ks[5], (2, H), jnp.float32, -scale, scale)
    b_out = jax.random.uniform(ks[6], (2,), jnp.float32, -scale, scale)
    return {
        "emb": emb,
        "wx": w_ih.T,                         # (E, 4H)
        "wh": w_hh.T,                         # (H, 4H)
        "b": (b_ih + b_hh)[None, :],          # (1, 4H)
        "wo": w_out.T,                        # (H, 2)
        "bo": b_out[None, :],                 # (1, 2)
    }


def reference_forward(input_ids, params):
    """Pure-JAX reference (PyTorch LSTM semantics) for correctness check."""
    emb = jnp.take(params["emb"], input_ids, axis=0)    # (B, T, E)
    H = params["wh"].shape[0]
    B = input_ids.shape[0]

    def step(carry, x_t):
        h, c = carry
        gates = x_t @ params["wx"] + h @ params["wh"] + params["b"]
        i = jax.nn.sigmoid(gates[:, 0 * H:1 * H])
        f = jax.nn.sigmoid(gates[:, 1 * H:2 * H])
        g = jnp.tanh(gates[:, 2 * H:3 * H])
        o = jax.nn.sigmoid(gates[:, 3 * H:4 * H])
        c = f * c + i * g
        h = o * jnp.tanh(c)
        return (h, c), h

    h0 = jnp.zeros((B, H), jnp.float32)
    (_, _), hs = lax.scan(step, (h0, h0), jnp.transpose(emb, (1, 0, 2)))
    lstm_out = jnp.transpose(hs, (1, 0, 2))
    logits = lstm_out[:, -1, :] @ params["wo"] + params["bo"]
    logp = jax.nn.log_softmax(logits, axis=1)
    return logp, lstm_out


if __name__ == "__main__":
    VOCAB, EMB, HIDDEN = 32, 8, 128
    BATCH, SEQ = 2, 8

    key = jax.random.PRNGKey(0)
    k_par, k_ids = jax.random.split(key)
    params = init_params(k_par, VOCAB, EMB, HIDDEN)
    input_ids = jax.random.randint(k_ids, (BATCH, SEQ), 0, VOCAB, dtype=jnp.int32)

    logp, lstm_out = char_classifier_forward(input_ids, params)
    jax.block_until_ready((logp, lstm_out))

    ref_logp, ref_lstm_out = reference_forward(input_ids, params)
    np.testing.assert_allclose(np.asarray(logp), np.asarray(ref_logp),
                               rtol=1e-4, atol=1e-4)
    np.testing.assert_allclose(np.asarray(lstm_out), np.asarray(ref_lstm_out),
                               rtol=1e-4, atol=1e-4)

    print("KERNEL_OK")
</pallas_src>

<mosaic_0001>
module attributes {stable_mosaic.version = 11 : i64} {
  func.func @_lstm_classifier_kernel(%arg0: memref<64x1xi32, #tpu.memory_space<vmem>>, %arg1: memref<32x8xf32, #tpu.memory_space<vmem>>, %arg2: memref<8x512xf32, #tpu.memory_space<vmem>>, %arg3: memref<128x512xf32, #tpu.memory_space<vmem>>, %arg4: memref<1x512xf32, #tpu.memory_space<vmem>>, %arg5: memref<128x2xf32, #tpu.memory_space<vmem>>, %arg6: memref<1x2xf32, #tpu.memory_space<vmem>>, %arg7: memref<8x2xf32, #tpu.memory_space<vmem>>, %arg8: memref<8x8x128xf32, #tpu.memory_space<vmem>>, %arg9: memref<64x512xf32, #tpu.memory_space<vmem>>) attributes {dimension_semantics = [], scalar_prefetch = 0 : i64, scratch_operands = 1 : i64, tpu.core_type = #tpu.core_type<tc>} {
    %c0 = arith.constant 0 : index
    %c0_0 = arith.constant 0 : index
    %0 = vector.load %arg1[%c0, %c0_0] : memref<32x8xf32, #tpu.memory_space<vmem>>, vector<32x8xf32>
    %c0_1 = arith.constant 0 : index
    %c0_2 = arith.constant 0 : index
    %1 = vector.load %arg2[%c0_1, %c0_2] : memref<8x512xf32, #tpu.memory_space<vmem>>, vector<8x512xf32>
    %cst = arith.constant dense<0.000000e+00> : vector<32x512xf32>
    %2 = tpu.matmul %0, %1, %cst {dimension_numbers = #tpu.dot_dimension_numbers<[1], [0], [0], [1], [0, 0, 1, 1], [], []>} : vector<32x8xf32>, vector<8x512xf32>, vector<32x512xf32> -> vector<32x512xf32>
    %c0_3 = arith.constant 0 : index
    %c0_4 = arith.constant 0 : index
    %3 = vector.load %arg0[%c0_3, %c0_4] : memref<64x1xi32, #tpu.memory_space<vmem>>, vector<64x1xi32>
    %4 = tpu.iota {dimensions = array<i32: 1>} : vector<64x32xi32>
    %5 = vector.broadcast %3 : vector<64x1xi32> to vector<64x32xi32>
    %6 = arith.cmpi eq, %5, %4 : vector<64x32xi32>
    %7 = arith.extui %6 : vector<64x32xi1> to vector<64x32xi32>
    %8 = arith.sitofp %7 : vector<64x32xi32> to vector<64x32xf32>
    %cst_5 = arith.constant dense<0.000000e+00> : vector<64x512xf32>
    %9 = tpu.matmul %8, %2, %cst_5 {dimension_numbers = #tpu.dot_dimension_numbers<[1], [0], [0], [1], [0, 0, 1, 1], [], []>} : vector<64x32xf32>, vector<32x512xf32>, vector<64x512xf32> -> vector<64x512xf32>
    %c0_6 = arith.constant 0 : index
    %c0_7 = arith.constant 0 : index
    %10 = vector.load %arg4[%c0_6, %c0_7] : memref<1x512xf32, #tpu.memory_space<vmem>>, vector<1x512xf32>
    %11 = vector.broadcast %10 : vector<1x512xf32> to vector<64x512xf32>
    %12 = arith.addf %9, %11 : vector<64x512xf32>
    %c0_8 = arith.constant 0 : index
    %c0_9 = arith.constant 0 : index
    %13 = vector.load %arg9[%c0_8, %c0_9] : memref<64x512xf32, #tpu.memory_space<vmem>>, vector<64x512xf32>
    tpu.vector_store %arg9[%c0_8, %c0_9], %12 {strides = array<i32>} : memref<64x512xf32, #tpu.memory_space<vmem>>, vector<64x512xf32>,
    %cst_10 = arith.constant 0.000000e+00 : f32
    %14 = vector.broadcast %cst_10 : f32 to vector<8x128xf32>
    %cst_11 = arith.constant 0.000000e+00 : f32
    %15 = vector.broadcast %cst_11 : f32 to vector<8x128xf32>
    %c0_12 = arith.constant 0 : index
    %c0_13 = arith.constant 0 : index
    %16 = vector.load %arg9[%c0_12, %c0_13] : memref<64x512xf32, #tpu.memory_space<vmem>>, vector<8x512xf32>
    %c0_14 = arith.constant 0 : index
    %c0_15 = arith.constant 0 : index
    %17 = vector.load %arg3[%c0_14, %c0_15] : memref<128x512xf32, #tpu.memory_space<vmem>>, vector<128x512xf32>
    %cst_16 = arith.constant dense<0.000000e+00> : vector<8x512xf32>
    %18 = tpu.matmul %14, %17, %cst_16 {dimension_numbers = #tpu.dot_dimension_numbers<[1], [0], [0], [1], [0, 0, 1, 1], [], []>} : vector<8x128xf32>, vector<128x512xf32>, vector<8x512xf32> -> vector<8x512xf32>
    %19 = arith.addf %16, %18 : vector<8x512xf32>
    %20 = vector.extract_strided_slice %19 {offsets = [0, 0], sizes = [8, 128], strides = [1, 1]} : vector<8x512xf32> to vector<8x128xf32>
    %21 = arith.negf %20 : vector<8x128xf32>
    %22 = math.exp %21 : vector<8x128xf32>
    %cst_17 = arith.constant 1.000000e+00 : f32
    %23 = vector.broadcast %cst_17 : f32 to vector<8x128xf32>
    %24 = arith.addf %23, %22 : vector<8x128xf32>
    %25 = arith.divf %23, %24 : vector<8x128xf32>
    %26 = vector.extract_strided_slice %19 {offsets = [0, 128], sizes = [8, 128], strides = [1, 1]} : vector<8x512xf32> to vector<8x128xf32>
    %27 = arith.negf %26 : vector<8x128xf32>
    %28 = math.exp %27 : vector<8x128xf32>
    %cst_18 = arith.constant 1.000000e+00 : f32
    %29 = vector.broadcast %cst_18 : f32 to vector<8x128xf32>
    %30 = arith.addf %29, %28 : vector<8x128xf32>
    %31 = arith.divf %29, %30 : vector<8x128xf32>
    %32 = vector.extract_strided_slice %19 {offsets = [0, 256], sizes = [8, 128], strides = [1, 1]} : vector<8x512xf32> to vector<8x128xf32>
    %33 = math.tanh %32 : vector<8x128xf32>
    %34 = vector.extract_strided_slice %19 {offsets = [0, 384], sizes = [8, 128], strides = [1, 1]} : vector<8x512xf32> to vector<8x128xf32>
    %35 = arith.negf %34 : vector<8x128xf32>
    %36 = math.exp %35 : vector<8x128xf32>
    %cst_19 = arith.constant 1.000000e+00 : f32
    %37 = vector.broadcast %cst_19 : f32 to vector<8x128xf32>
    %38 = arith.addf %37, %36 : vector<8x128xf32>
    %39 = arith.divf %37, %38 : vector<8x128xf32>
    %40 = arith.mulf %31, %15 : vector<8x128xf32>
    %41 = arith.mulf %25, %33 : vector<8x128xf32>
    %42 = arith.addf %40, %41 : vector<8x128xf32>
    %43 = math.tanh %42 : vector<8x128xf32>
    %44 = arith.mulf %39, %43 : vector<8x128xf32>
    %c0_20 = arith.constant 0 : index
    %c0_21 = arith.constant 0 : index
    %c0_22 = arith.constant 0 : index
    %45 = vector.load %arg8[%c0_20, %c0_21, %c0_22] : memref<8x8x128xf32, #tpu.memory_space<vmem>>, vector<8x1x128xf32>
    %46 = vector.shape_cast %45 : vector<8x1x128xf32> to vector<8x128xf32>
    %47 = vector.shape_cast %44 : vector<8x128xf32> to vector<8x1x128xf32>
    tpu.vector_store %arg8[%c0_20, %c0_21, %c0_22], %47 {strides = array<i32>} : memref<8x8x128xf32, #tpu.memory_space<vmem>>, vector<8x1x128xf32>,
    %c8 = arith.constant 8 : index
    %c0_23 = arith.constant 0 : index
    %48 = vector.load %arg9[%c8, %c0_23] : memref<64x512xf32, #tpu.memory_space<vmem>>, vector<8x512xf32>
    %c0_24 = arith.constant 0 : index
    %c0_25 = arith.constant 0 : index
    %49 = vector.load %arg3[%c0_24, %c0_25] : memref<128x512xf32, #tpu.memory_space<vmem>>, vector<128x512xf32>
    %cst_26 = arith.constant dense<0.000000e+00> : vector<8x512xf32>
    %50 = tpu.matmul %44, %49, %cst_26 {dimension_numbers = #tpu.dot_dimension_numbers<[1], [0], [0], [1], [0, 0, 1, 1], [], []>} : vector<8x128xf32>, vector<128x512xf32>, vector<8x512xf32> -> vector<8x512xf32>
    %51 = arith.addf %48, %50 : vector<8x512xf32>
    %52 = vector.extract_strided_slice %51 {offsets = [0, 0], sizes = [8, 128], strides = [1, 1]} : vector<8x512xf32> to vector<8x128xf32>
    %53 = arith.negf %52 : vector<8x128xf32>
    %54 = math.exp %53 : vector<8x128xf32>
    %cst_27 = arith.constant 1.000000e+00 : f32
    %55 = vector.broadcast %cst_27 : f32 to vector<8x128xf32>
    %56 = arith.addf %55, %54 : vector<8x128xf32>
    %57 = arith.divf %55, %56 : vector<8x128xf32>
    %58 = vector.extract_strided_slice %51 {offsets = [0, 128], sizes = [8, 128], strides = [1, 1]} : vector<8x512xf32> to vector<8x128xf32>
    %59 = arith.negf %58 : vector<8x128xf32>
    %60 = math.exp %59 : vector<8x128xf32>
    %cst_28 = arith.constant 1.000000e+00 : f32
    %61 = vector.broadcast %cst_28 : f32 to vector<8x128xf32>
    %62 = arith.addf %61, %60 : vector<8x128xf32>
    %63 = arith.divf %61, %62 : vector<8x128xf32>
    %64 = vector.extract_strided_slice %51 {offsets = [0, 256], sizes = [8, 128], strides = [1, 1]} : vector<8x512xf32> to vector<8x128xf32>
    %65 = math.tanh %64 : vector<8x128xf32>
    %66 = vector.extract_strided_slice %51 {offsets = [0, 384], sizes = [8, 128], strides = [1, 1]} : vector<8x512xf32> to vector<8x128xf32>
    %67 = arith.negf %66 : vector<8x128xf32>
    %68 = math.exp %67 : vector<8x128xf32>
    %cst_29 = arith.constant 1.000000e+00 : f32
    %69 = vector.broadcast %cst_29 : f32 to vector<8x128xf32>
    %70 = arith.addf %69, %68 : vector<8x128xf32>
    %71 = arith.divf %69, %70 : vector<8x128xf32>
    %72 = arith.mulf %63, %42 : vector<8x128xf32>
    %73 = arith.mulf %57, %65 : vector<8x128xf32>
    %74 = arith.addf %72, %73 : vector<8x128xf32>
    %75 = math.tanh %74 : vector<8x128xf32>
    %76 = arith.mulf %71, %75 : vector<8x128xf32>
    %c0_30 = arith.constant 0 : index
    %c1 = arith.constant 1 : index
    %c0_31 = arith.constant 0 : index
    %77 = vector.load %arg8[%c0_30, %c1, %c0_31] : memref<8x8x128xf32, #tpu.memory_space<vmem>>, vector<8x1x128xf32>
    %78 = vector.shape_cast %77 : vector<8x1x128xf32> to vector<8x128xf32>
    %79 = vector.shape_cast %76 : vector<8x128xf32> to vector<8x1x128xf32>
    tpu.vector_store %arg8[%c0_30, %c1, %c0_31], %79 {strides = array<i32>} : memref<8x8x128xf32, #tpu.memory_space<vmem>>, vector<8x1x128xf32>,
    %c16 = arith.constant 16 : index
    %c0_32 = arith.constant 0 : index
    %80 = vector.load %arg9[%c16, %c0_32] : memref<64x512xf32, #tpu.memory_space<vmem>>, vector<8x512xf32>
    %c0_33 = arith.constant 0 : index
    %c0_34 = arith.constant 0 : index
    %81 = vector.load %arg3[%c0_33, %c0_34] : memref<128x512xf32, #tpu.memory_space<vmem>>, vector<128x512xf32>
    %cst_35 = arith.constant dense<0.000000e+00> : vector<8x512xf32>
    %82 = tpu.matmul %76, %81, %cst_35 {dimension_numbers = #tpu.dot_dimension_numbers<[1], [0], [0], [1], [0, 0, 1, 1], [], []>} : vector<8x128xf32>, vector<128x512xf32>, vector<8x512xf32> -> vector<8x512xf32>
    %83 = arith.addf %80, %82 : vector<8x512xf32>
    %84 = vector.extract_strided_slice %83 {offsets = [0, 0], sizes = [8, 128], strides = [1, 1]} : vector<8x512xf32> to vector<8x128xf32>
    %85 = arith.negf %84 : vector<8x128xf32>
    %86 = math.exp %85 : vector<8x128xf32>
    %cst_36 = arith.constant 1.000000e+00 : f32
    %87 = vector.broadcast %cst_36 : f32 to vector<8x128xf32>
    %88 = arith.addf %87, %86 : vector<8x128xf32>
    %89 = arith.divf %87, %88 : vector<8x128xf32>
    %90 = vector.extract_strided_slice %83 {offsets = [0, 128], sizes = [8, 128], strides = [1, 1]} : vector<8x512xf32> to vector<8x128xf32>
    %91 = arith.negf %90 : vector<8x128xf32>
    %92 = math.exp %91 : vector<8x128xf32>
    %cst_37 = arith.constant 1.000000e+00 : f32
    %93 = vector.broadcast %cst_37 : f32 to vector<8x128xf32>
    %94 = arith.addf %93, %92 : vector<8x128xf32>
    %95 = arith.divf %93, %94 : vector<8x128xf32>
    %96 = vector.extract_strided_slice %83 {offsets = [0, 256], sizes = [8, 128], strides = [1, 1]} : vector<8x512xf32> to vector<8x128xf32>
    %97 = math.tanh %96 : vector<8x128xf32>
    %98 = vector.extract_strided_slice %83 {offsets = [0, 384], sizes = [8, 128], strides = [1, 1]} : vector<8x512xf32> to vector<8x128xf32>
    %99 = arith.negf %98 : vector<8x128xf32>
    %100 = math.exp %99 : vector<8x128xf32>
    %cst_38 = arith.constant 1.000000e+00 : f32
    %101 = vector.broadcast %cst_38 : f32 to vector<8x128xf32>
    %102 = arith.addf %101, %100 : vector<8x128xf32>
    %103 = arith.divf %101, %102 : vector<8x128xf32>
    %104 = arith.mulf %95, %74 : vector<8x128xf32>
    %105 = arith.mulf %89, %97 : vector<8x128xf32>
    %106 = arith.addf %104, %105 : vector<8x128xf32>
    %107 = math.tanh %106 : vector<8x128xf32>
    %108 = arith.mulf %103, %107 : vector<8x128xf32>
    %c0_39 = arith.constant 0 : index
    %c2 = arith.constant 2 : index
    %c0_40 = arith.constant 0 : index
    %109 = vector.load %arg8[%c0_39, %c2, %c0_40] : memref<8x8x128xf32, #tpu.memory_space<vmem>>, vector<8x1x128xf32>
    %110 = vector.shape_cast %109 : vector<8x1x128xf32> to vector<8x128xf32>
    %111 = vector.shape_cast %108 : vector<8x128xf32> to vector<8x1x128xf32>
    tpu.vector_store %arg8[%c0_39, %c2, %c0_40], %111 {strides = array<i32>} : memref<8x8x128xf32, #tpu.memory_space<vmem>>, vector<8x1x128xf32>,
    %c24 = arith.constant 24 : index
    %c0_41 = arith.constant 0 : index
    %112 = vector.load %arg9[%c24, %c0_41] : memref<64x512xf32, #tpu.memory_space<vmem>>, vector<8x512xf32>
    %c0_42 = arith.constant 0 : index
    %c0_43 = arith.constant 0 : index
    %113 = vector.load %arg3[%c0_42, %c0_43] : memref<128x512xf32, #tpu.memory_space<vmem>>, vector<128x512xf32>
    %cst_44 = arith.constant dense<0.000000e+00> : vector<8x512xf32>
    %114 = tpu.matmul %108, %113, %cst_44 {dimension_numbers = #tpu.dot_dimension_numbers<[1], [0], [0], [1], [0, 0, 1, 1], [], []>} : vector<8x128xf32>, vector<128x512xf32>, vector<8x512xf32> -> vector<8x512xf32>
    %115 = arith.addf %112, %114 : vector<8x512xf32>
    %116 = vector.extract_strided_slice %115 {offsets = [0, 0], sizes = [8, 128], strides = [1, 1]} : vector<8x512xf32> to vector<8x128xf32>
    %117 = arith.negf %116 : vector<8x128xf32>
    %118 = math.exp %117 : vector<8x128xf32>
    %cst_45 = arith.constant 1.000000e+00 : f32
    %119 = vector.broadcast %cst_45 : f32 to vector<8x128xf32>
    %120 = arith.addf %119, %118 : vector<8x128xf32>
    %121 = arith.divf %119, %120 : vector<8x128xf32>
    %122 = vector.extract_strided_slice %115 {offsets = [0, 128], sizes = [8, 128], strides = [1, 1]} : vector<8x512xf32> to vector<8x128xf32>
    %123 = arith.negf %122 : vector<8x128xf32>
    %124 = math.exp %123 : vector<8x128xf32>
    %cst_46 = arith.constant 1.000000e+00 : f32
    %125 = vector.broadcast %cst_46 : f32 to vector<8x128xf32>
    %126 = arith.addf %125, %124 : vector<8x128xf32>
    %127 = arith.divf %125, %126 : vector<8x128xf32>
    %128 = vector.extract_strided_slice %115 {offsets = [0, 256], sizes = [8, 128], strides = [1, 1]} : vector<8x512xf32> to vector<8x128xf32>
    %129 = math.tanh %128 : vector<8x128xf32>
    %130 = vector.extract_strided_slice %115 {offsets = [0, 384], sizes = [8, 128], strides = [1, 1]} : vector<8x512xf32> to vector<8x128xf32>
    %131 = arith.negf %130 : vector<8x128xf32>
    %132 = math.exp %131 : vector<8x128xf32>
    %cst_47 = arith.constant 1.000000e+00 : f32
    %133 = vector.broadcast %cst_47 : f32 to vector<8x128xf32>
    %134 = arith.addf %133, %132 : vector<8x128xf32>
    %135 = arith.divf %133, %134 : vector<8x128xf32>
    %136 = arith.mulf %127, %106 : vector<8x128xf32>
    %137 = arith.mulf %121, %129 : vector<8x128xf32>
    %138 = arith.addf %136, %137 : vector<8x128xf32>
    %139 = math.tanh %138 : vector<8x128xf32>
    %140 = arith.mulf %135, %139 : vector<8x128xf32>
    %c0_48 = arith.constant 0 : index
    %c3 = arith.constant 3 : index
    %c0_49 = arith.constant 0 : index
    %141 = vector.load %arg8[%c0_48, %c3, %c0_49] : memref<8x8x128xf32, #tpu.memory_space<vmem>>, vector<8x1x128xf32>
    %142 = vector.shape_cast %141 : vector<8x1x128xf32> to vector<8x128xf32>
    %143 = vector.shape_cast %140 : vector<8x128xf32> to vector<8x1x128xf32>
    tpu.vector_store %arg8[%c0_48, %c3, %c0_49], %143 {strides = array<i32>} : memref<8x8x128xf32, #tpu.memory_space<vmem>>, vector<8x1x128xf32>,
    %c32 = arith.constant 32 : index
    %c0_50 = arith.constant 0 : index
    %144 = vector.load %arg9[%c32, %c0_50] : memref<64x512xf32, #tpu.memory_space<vmem>>, vector<8x512xf32>
    %c0_51 = arith.constant 0 : index
    %c0_52 = arith.constant 0 : index
    %145 = vector.load %arg3[%c0_51, %c0_52] : memref<128x512xf32, #tpu.memory_space<vmem>>, vector<128x512xf32>
    %cst_53 = arith.constant dense<0.000000e+00> : vector<8x512xf32>
    %146 = tpu.matmul %140, %145, %cst_53 {dimension_numbers = #tpu.dot_dimension_numbers<[1], [0], [0], [1], [0, 0, 1, 1], [], []>} : vector<8x128xf32>, vector<128x512xf32>, vector<8x512xf32> -> vector<8x512xf32>
    %147 = arith.addf %144, %146 : vector<8x512xf32>
    %148 = vector.extract_strided_slice %147 {offsets = [0, 0], sizes = [8, 128], strides = [1, 1]} : vector<8x512xf32> to vector<8x128xf32>
    %149 = arith.negf %148 : vector<8x128xf32>
    %150 = math.exp %149 : vector<8x128xf32>
    %cst_54 = arith.constant 1.000000e+00 : f32
    %151 = vector.broadcast %cst_54 : f32 to vector<8x128xf32>
    %152 = arith.addf %151, %150 : vector<8x128xf32>
    %153 = arith.divf %151, %152 : vector<8x128xf32>
    %154 = vector.extract_strided_slice %147 {offsets = [0, 128], sizes = [8, 128], strides = [1, 1]} : vector<8x512xf32> to vector<8x128xf32>
    %155 = arith.negf %154 : vector<8x128xf32>
    %156 = math.exp %155 : vector<8x128xf32>
    %cst_55 = arith.constant 1.000000e+00 : f32
    %157 = vector.broadcast %cst_55 : f32 to vector<8x128xf32>
    %158 = arith.addf %157, %156 : vector<8x128xf32>
    %159 = arith.divf %157, %158 : vector<8x128xf32>
    %160 = vector.extract_strided_slice %147 {offsets = [0, 256], sizes = [8, 128], strides = [1, 1]} : vector<8x512xf32> to vector<8x128xf32>
    %161 = math.tanh %160 : vector<8x128xf32>
    %162 = vector.extract_strided_slice %147 {offsets = [0, 384], sizes = [8, 128], strides = [1, 1]} : vector<8x512xf32> to vector<8x128xf32>
    %163 = arith.negf %162 : vector<8x128xf32>
    %164 = math.exp %163 : vector<8x128xf32>
    %cst_56 = arith.constant 1.000000e+00 : f32
    %165 = vector.broadcast %cst_56 : f32 to vector<8x128xf32>
    %166 = arith.addf %165, %164 : vector<8x128xf32>
    %167 = arith.divf %165, %166 : vector<8x128xf32>
    %168 = arith.mulf %159, %138 : vector<8x128xf32>
    %169 = arith.mulf %153, %161 : vector<8x128xf32>
    %170 = arith.addf %168, %169 : vector<8x128xf32>
    %171 = math.tanh %170 : vector<8x128xf32>
    %172 = arith.mulf %167, %171 : vector<8x128xf32>
    %c0_57 = arith.constant 0 : index
    %c4 = arith.constant 4 : index
    %c0_58 = arith.constant 0 : index
    %173 = vector.load %arg8[%c0_57, %c4, %c0_58] : memref<8x8x128xf32, #tpu.memory_space<vmem>>, vector<8x1x128xf32>
    %174 = vector.shape_cast %173 : vector<8x1x128xf32> to vector<8x128xf32>
    %175 = vector.shape_cast %172 : vector<8x128xf32> to vector<8x1x128xf32>
    tpu.vector_store %arg8[%c0_57, %c4, %c0_58], %175 {strides = array<i32>} : memref<8x8x128xf32, #tpu.memory_space<vmem>>, vector<8x1x128xf32>,
    %c40 = arith.constant 40 : index
    %c0_59 = arith.constant 0 : index
    %176 = vector.load %arg9[%c40, %c0_59] : memref<64x512xf32, #tpu.memory_space<vmem>>, vector<8x512xf32>
    %c0_60 = arith.constant 0 : index
    %c0_61 = arith.constant 0 : index
    %177 = vector.load %arg3[%c0_60, %c0_61] : memref<128x512xf32, #tpu.memory_space<vmem>>, vector<128x512xf32>
    %cst_62 = arith.constant dense<0.000000e+00> : vector<8x512xf32>
    %178 = tpu.matmul %172, %177, %cst_62 {dimension_numbers = #tpu.dot_dimension_numbers<[1], [0], [0], [1], [0, 0, 1, 1], [], []>} : vector<8x128xf32>, vector<128x512xf32>, vector<8x512xf32> -> vector<8x512xf32>
    %179 = arith.addf %176, %178 : vector<8x512xf32>
    %180 = vector.extract_strided_slice %179 {offsets = [0, 0], sizes = [8, 128], strides = [1, 1]} : vector<8x512xf32> to vector<8x128xf32>
    %181 = arith.negf %180 : vector<8x128xf32>
    %182 = math.exp %181 : vector<8x128xf32>
    %cst_63 = arith.constant 1.000000e+00 : f32
    %183 = vector.broadcast %cst_63 : f32 to vector<8x128xf32>
    %184 = arith.addf %183, %182 : vector<8x128xf32>
    %185 = arith.divf %183, %184 : vector<8x128xf32>
    %186 = vector.extract_strided_slice %179 {offsets = [0, 128], sizes = [8, 128], strides = [1, 1]} : vector<8x512xf32> to vector<8x128xf32>
    %187 = arith.negf %186 : vector<8x128xf32>
    %188 = math.exp %187 : vector<8x128xf32>
    %cst_64 = arith.constant 1.000000e+00 : f32
    %189 = vector.broadcast %cst_64 : f32 to vector<8x128xf32>
    %190 = arith.addf %189, %188 : vector<8x128xf32>
    %191 = arith.divf %189, %190 : vector<8x128xf32>
    %192 = vector.extract_strided_slice %179 {offsets = [0, 256], sizes = [8, 128], strides = [1, 1]} : vector<8x512xf32> to vector<8x128xf32>
    %193 = math.tanh %192 : vector<8x128xf32>
    %194 = vector.extract_strided_slice %179 {offsets = [0, 384], sizes = [8, 128], strides = [1, 1]} : vector<8x512xf32> to vector<8x128xf32>
    %195 = arith.negf %194 : vector<8x128xf32>
    %196 = math.exp %195 : vector<8x128xf32>
    %cst_65 = arith.constant 1.000000e+00 : f32
    %197 = vector.broadcast %cst_65 : f32 to vector<8x128xf32>
    %198 = arith.addf %197, %196 : vector<8x128xf32>
    %199 = arith.divf %197, %198 : vector<8x128xf32>
    %200 = arith.mulf %191, %170 : vector<8x128xf32>
    %201 = arith.mulf %185, %193 : vector<8x128xf32>
    %202 = arith.addf %200, %201 : vector<8x128xf32>
    %203 = math.tanh %202 : vector<8x128xf32>
    %204 = arith.mulf %199, %203 : vector<8x128xf32>
    %c0_66 = arith.constant 0 : index
    %c5 = arith.constant 5 : index
    %c0_67 = arith.constant 0 : index
    %205 = vector.load %arg8[%c0_66, %c5, %c0_67] : memref<8x8x128xf32, #tpu.memory_space<vmem>>, vector<8x1x128xf32>
    %206 = vector.shape_cast %205 : vector<8x1x128xf32> to vector<8x128xf32>
    %207 = vector.shape_cast %204 : vector<8x128xf32> to vector<8x1x128xf32>
    tpu.vector_store %arg8[%c0_66, %c5, %c0_67], %207 {strides = array<i32>} : memref<8x8x128xf32, #tpu.memory_space<vmem>>, vector<8x1x128xf32>,
    %c48 = arith.constant 48 : index
    %c0_68 = arith.constant 0 : index
    %208 = vector.load %arg9[%c48, %c0_68] : memref<64x512xf32, #tpu.memory_space<vmem>>, vector<8x512xf32>
    %c0_69 = arith.constant 0 : index
    %c0_70 = arith.constant 0 : index
    %209 = vector.load %arg3[%c0_69, %c0_70] : memref<128x512xf32, #tpu.memory_space<vmem>>, vector<128x512xf32>
    %cst_71 = arith.constant dense<0.000000e+00> : vector<8x512xf32>
    %210 = tpu.matmul %204, %209, %cst_71 {dimension_numbers = #tpu.dot_dimension_numbers<[1], [0], [0], [1], [0, 0, 1, 1], [], []>} : vector<8x128xf32>, vector<128x512xf32>, vector<8x512xf32> -> vector<8x512xf32>
    %211 = arith.addf %208, %210 : vector<8x512xf32>
    %212 = vector.extract_strided_slice %211 {offsets = [0, 0], sizes = [8, 128], strides = [1, 1]} : vector<8x512xf32> to vector<8x128xf32>
    %213 = arith.negf %212 : vector<8x128xf32>
    %214 = math.exp %213 : vector<8x128xf32>
    %cst_72 = arith.constant 1.000000e+00 : f32
    %215 = vector.broadcast %cst_72 : f32 to vector<8x128xf32>
    %216 = arith.addf %215, %214 : vector<8x128xf32>
    %217 = arith.divf %215, %216 : vector<8x128xf32>
    %218 = vector.extract_strided_slice %211 {offsets = [0, 128], sizes = [8, 128], strides = [1, 1]} : vector<8x512xf32> to vector<8x128xf32>
    %219 = arith.negf %218 : vector<8x128xf32>
    %220 = math.exp %219 : vector<8x128xf32>
    %cst_73 = arith.constant 1.000000e+00 : f32
    %221 = vector.broadcast %cst_73 : f32 to vector<8x128xf32>
    %222 = arith.addf %221, %220 : vector<8x128xf32>
    %223 = arith.divf %221, %222 : vector<8x128xf32>
    %224 = vector.extract_strided_slice %211 {offsets = [0, 256], sizes = [8, 128], strides = [1, 1]} : vector<8x512xf32> to vector<8x128xf32>
    %225 = math.tanh %224 : vector<8x128xf32>
    %226 = vector.extract_strided_slice %211 {offsets = [0, 384], sizes = [8, 128], strides = [1, 1]} : vector<8x512xf32> to vector<8x128xf32>
    %227 = arith.negf %226 : vector<8x128xf32>
    %228 = math.exp %227 : vector<8x128xf32>
    %cst_74 = arith.constant 1.000000e+00 : f32
    %229 = vector.broadcast %cst_74 : f32 to vector<8x128xf32>
    %230 = arith.addf %229, %228 : vector<8x128xf32>
    %231 = arith.divf %229, %230 : vector<8x128xf32>
    %232 = arith.mulf %223, %202 : vector<8x128xf32>
    %233 = arith.mulf %217, %225 : vector<8x128xf32>
    %234 = arith.addf %232, %233 : vector<8x128xf32>
    %235 = math.tanh %234 : vector<8x128xf32>
    %236 = arith.mulf %231, %235 : vector<8x128xf32>
    %c0_75 = arith.constant 0 : index
    %c6 = arith.constant 6 : index
    %c0_76 = arith.constant 0 : index
    %237 = vector.load %arg8[%c0_75, %c6, %c0_76] : memref<8x8x128xf32, #tpu.memory_space<vmem>>, vector<8x1x128xf32>
    %238 = vector.shape_cast %237 : vector<8x1x128xf32> to vector<8x128xf32>
    %239 = vector.shape_cast %236 : vector<8x128xf32> to vector<8x1x128xf32>
    tpu.vector_store %arg8[%c0_75, %c6, %c0_76], %239 {strides = array<i32>} : memref<8x8x128xf32, #tpu.memory_space<vmem>>, vector<8x1x128xf32>,
    %c56 = arith.constant 56 : index
    %c0_77 = arith.constant 0 : index
    %240 = vector.load %arg9[%c56, %c0_77] : memref<64x512xf32, #tpu.memory_space<vmem>>, vector<8x512xf32>
    %c0_78 = arith.constant 0 : index
    %c0_79 = arith.constant 0 : index
    %241 = vector.load %arg3[%c0_78, %c0_79] : memref<128x512xf32, #tpu.memory_space<vmem>>, vector<128x512xf32>
    %cst_80 = arith.constant dense<0.000000e+00> : vector<8x512xf32>
    %242 = tpu.matmul %236, %241, %cst_80 {dimension_numbers = #tpu.dot_dimension_numbers<[1], [0], [0], [1], [0, 0, 1, 1], [], []>} : vector<8x128xf32>, vector<128x512xf32>, vector<8x512xf32> -> vector<8x512xf32>
    %243 = arith.addf %240, %242 : vector<8x512xf32>
    %244 = vector.extract_strided_slice %243 {offsets = [0, 0], sizes = [8, 128], strides = [1, 1]} : vector<8x512xf32> to vector<8x128xf32>
    %245 = arith.negf %244 : vector<8x128xf32>
    %246 = math.exp %245 : vector<8x128xf32>
    %cst_81 = arith.constant 1.000000e+00 : f32
    %247 = vector.broadcast %cst_81 : f32 to vector<8x128xf32>
    %248 = arith.addf %247, %246 : vector<8x128xf32>
    %249 = arith.divf %247, %248 : vector<8x128xf32>
    %250 = vector.extract_strided_slice %243 {offsets = [0, 128], sizes = [8, 128], strides = [1, 1]} : vector<8x512xf32> to vector<8x128xf32>
    %251 = arith.negf %250 : vector<8x128xf32>
    %252 = math.exp %251 : vector<8x128xf32>
    %cst_82 = arith.constant 1.000000e+00 : f32
    %253 = vector.broadcast %cst_82 : f32 to vector<8x128xf32>
    %254 = arith.addf %253, %252 : vector<8x128xf32>
    %255 = arith.divf %253, %254 : vector<8x128xf32>
    %256 = vector.extract_strided_slice %243 {offsets = [0, 256], sizes = [8, 128], strides = [1, 1]} : vector<8x512xf32> to vector<8x128xf32>
    %257 = math.tanh %256 : vector<8x128xf32>
    %258 = vector.extract_strided_slice %243 {offsets = [0, 384], sizes = [8, 128], strides = [1, 1]} : vector<8x512xf32> to vector<8x128xf32>
    %259 = arith.negf %258 : vector<8x128xf32>
    %260 = math.exp %259 : vector<8x128xf32>
    %cst_83 = arith.constant 1.000000e+00 : f32
    %261 = vector.broadcast %cst_83 : f32 to vector<8x128xf32>
    %262 = arith.addf %261, %260 : vector<8x128xf32>
    %263 = arith.divf %261, %262 : vector<8x128xf32>
    %264 = arith.mulf %255, %234 : vector<8x128xf32>
    %265 = arith.mulf %249, %257 : vector<8x128xf32>
    %266 = arith.addf %264, %265 : vector<8x128xf32>
    %267 = math.tanh %266 : vector<8x128xf32>
    %268 = arith.mulf %263, %267 : vector<8x128xf32>
    %c0_84 = arith.constant 0 : index
    %c7 = arith.constant 7 : index
    %c0_85 = arith.constant 0 : index
    %269 = vector.load %arg8[%c0_84, %c7, %c0_85] : memref<8x8x128xf32, #tpu.memory_space<vmem>>, vector<8x1x128xf32>
    %270 = vector.shape_cast %269 : vector<8x1x128xf32> to vector<8x128xf32>
    %271 = vector.shape_cast %268 : vector<8x128xf32> to vector<8x1x128xf32>
    tpu.vector_store %arg8[%c0_84, %c7, %c0_85], %271 {strides = array<i32>} : memref<8x8x128xf32, #tpu.memory_space<vmem>>, vector<8x1x128xf32>,
    %c0_86 = arith.constant 0 : index
    %c0_87 = arith.constant 0 : index
    %272 = vector.load %arg5[%c0_86, %c0_87] : memref<128x2xf32, #tpu.memory_space<vmem>>, vector<128x2xf32>
    %cst_88 = arith.constant dense<0.000000e+00> : vector<8x2xf32>
    %273 = tpu.matmul %268, %272, %cst_88 {dimension_numbers = #tpu.dot_dimension_numbers<[1], [0], [0], [1], [0, 0, 1, 1], [], []>} : vector<8x128xf32>, vector<128x2xf32>, vector<8x2xf32> -> vector<8x2xf32>
    %c0_89 = arith.constant 0 : index
    %c0_90 = arith.constant 0 : index
    %274 = vector.load %arg6[%c0_89, %c0_90] : memref<1x2xf32, #tpu.memory_space<vmem>>, vector<1x2xf32>
    %275 = vector.broadcast %274 : vector<1x2xf32> to vector<8x2xf32>
    %276 = arith.addf %273, %275 : vector<8x2xf32>
    %277 = vector.extract_strided_slice %276 {offsets = [0, 0], sizes = [8, 1], strides = [1, 1]} : vector<8x2xf32> to vector<8x1xf32>
    %278 = vector.extract_strided_slice %276 {offsets = [0, 1], sizes = [8, 1], strides = [1, 1]} : vector<8x2xf32> to vector<8x1xf32>
    %279 = arith.maximumf %277, %278 : vector<8x1xf32>
    %280 = arith.subf %278, %277 : vector<8x1xf32>
    %281 = math.absf %280 : vector<8x1xf32>
    %cst_91 = arith.constant 0.000000e+00 : f32
    %282 = vector.broadcast %cst_91 : f32 to vector<8x1xf32>
    %283 = arith.subf %282, %281 : vector<8x1xf32>
    %284 = math.exp %283 : vector<8x1xf32>
    %cst_92 = arith.constant 1.000000e+00 : f32
    %285 = vector.broadcast %cst_92 : f32 to vector<8x1xf32>
    %286 = arith.addf %285, %284 : vector<8x1xf32>
    %287 = math.log %286 : vector<8x1xf32>
    %288 = arith.addf %279, %287 : vector<8x1xf32>
    %289 = vector.broadcast %288 : vector<8x1xf32> to vector<8x2xf32>
    %290 = arith.subf %276, %289 : vector<8x2xf32>
    %c0_93 = arith.constant 0 : index
    %c0_94 = arith.constant 0 : index
    %291 = vector.load %arg7[%c0_93, %c0_94] : memref<8x2xf32, #tpu.memory_space<vmem>>, vector<8x2xf32>
    tpu.vector_store %arg7[%c0_93, %c0_94], %290 {strides = array<i32>} : memref<8x2xf32, #tpu.memory_space<vmem>>, vector<8x2xf32>,
    return
  }
}

</mosaic_0001>

<bundles_post_ra>
// kernel: char_classifier_forward.1
= control target key start
LH: loop header
LB: loop body
LE: loop exit
PB: predicated region body
PF: predicated region fallthrough
CT: control target
= control target key end

     0   :  { %14 = vsyncpa [#allocation4], 0  ;;  %s2704_s30 = smov [#allocation3]   ;;  %s2705_s10 = smov 512   ;;  %s4248_s0 = inlined_call_operand.vmem [shape: s32[64,1], index: 0, kind: input, shape index: {}]   ;;  %s4249_s1 = inlined_call_operand.vmem [shape: f32[32,8], index: 1, kind: input, shape index: {}]   ;;  %s4250_s2 = inlined_call_operand.vmem [shape: f32[8,512], index: 2, kind: input, shape index: {}]   ;;  %s4251_s3 = inlined_call_operand.hbm [shape: f32[128,512], index: 3, kind: input, shape index: {}]   ;;  %s4252_s4 = inlined_call_operand.vmem [shape: f32[1,512], index: 4, kind: input, shape index: {}]   ;;  %s4253_s5 = inlined_call_operand.vmem [shape: f32[128,2], index: 5, kind: input, shape index: {}]   ;;  %s4254_s6 = inlined_call_operand.vmem [shape: f32[1,2], index: 6, kind: input, shape index: {}]   ;;  %s4255_s7 = inlined_call_operand.vmem [shape: f32[8,2], index: 7, kind: output, shape index: {0}]   ;;  %s4256_s8 = inlined_call_operand.vmem [shape: f32[8,8,128], index: 8, kind: output, shape index: {1}]  }
   0x1   :  { %s25_s29 = sshll.u32 %s4251_s3, 4  ;;  %s27_s9 = sshll.u32 %s2704_s30, 4  ;;  %s26_s29 = int_to_ptr.hbm [resolvable:$true] %s25_s29  ;;  %s28_s9 = int_to_ptr.vmem [resolvable:$true] %s27_s9 }
   0x2   :  { %s2706_s11 = smov 32  }
   0x3   :  { %33 = dma.hbm_to_vmem [thread:$0]  %s26_s29, 8192, %s28_s9, [#allocation4], %s2705_s10, %s2705_s10, %s2706_s11  }
   0x4   :  { %2702 = dma.done.wait [#allocation4], 8192  }
   0x5   :  { %2703 = vsyncadd [#allocation4], 4294959104  ;;  %v2707_v0 = vmov 0   ;;  %vm52_vm0 = vcmask 64512   ;;  %v48_v1 = vld [vmem:[%s4250_s2] sm:$0xff]  ;;  %v45_v2 = vld [vmem:[%s4249_s1 + $0x8] sm:$0xff]  ;;  %v189_v18 = vlaneseq }
   0x6   :  { %2542 = vset.pattern.permute.xlu0 %v2707_v0  ;;  %2543 = vset.pattern.permute.xlu1 %v2707_v0  ;;  %v46_v3 = vld [vmem:[%s4249_s1 + $0x10] sm:$0xff]  ;;  %v47_v4 = vld [vmem:[%s4249_s1 + $0x18] sm:$0xff]  ;;  %v49_v5 = vld [vmem:[%s4250_s2 + $0x8] sm:$0xff]  ;;  %v2708_v25 = vmov 0.0   ;;  %vm249_vm2 = vcmask 261120   ;;  %s2709_s18 = smov 127  }
   0x7   :  { %2544 = vset.pattern.permute.xlu2 %v2707_v0  ;;  %2532 = vmatpush.msra.mxu1 %v48_v1  ;;  %v50_v6 = vld [vmem:[%s4250_s2 + $0x10] sm:$0xff]  ;;  %v51_v7 = vld [vmem:[%s4250_s2 + $0x18] sm:$0xff]  ;;  %v181_v8 = vld [vmem:[%s4248_s0] sm:$0xff]  ;;  %v2823_v20 = vand.u32 127, %v189_v18 }
   0x8   :  { %2533 = vmatpush.msra.mxu2 %v48_v1  ;;  %2534 = vmatpush.msra.mxu3 %v48_v1  ;;  %v183_v9 = vld [vmem:[%s4248_s0 + $0x10] sm:$0xff]  ;;  %v185_v10 = vld [vmem:[%s4248_s0 + $0x20] sm:$0xff]  ;;  %v182_v12 = vld [vmem:[%s4248_s0 + $0x8] sm:$0xff] }
   0x9   :  { %2453 = vmatmul.msk.f32.vlgmr.msra.gmra.mxu1 %vm52_vm0, %v45_v2  ;;  %2454 = vmatmul.msk.f32.vlgmr.msra.gmra.mxu2 %vm52_vm0, %v46_v3  ;;  %v44_v11 = vld [vmem:[%s4249_s1] sm:$0xff]  ;;  %v184_v13 = vld [vmem:[%s4248_s0 + $0x18] sm:$0xff]  ;;  %v186_v14 = vld [vmem:[%s4248_s0 + $0x28] sm:$0xff] }
   0xa   :  { %2455 = vmatmul.msk.f32.vlgmr.msra.gmra.mxu3 %vm52_vm0, %v47_v4  ;;  %109 = vmatpush.msrb.mxu1 %v49_v5  ;;  %v187_v15 = vld [vmem:[%s4248_s0 + $0x30] sm:$0xff]  ;;  %v188_v16 = vld [vmem:[%s4248_s0 + $0x38] sm:$0xff]  ;;  %v2835_v31 = vld [vmem:[#allocation3 + $0x1e0] sm:$0xff] }
   0xb   :  { %138 = vmatpush.msrb.mxu2 %v50_v6  ;;  %167 = vmatpush.msrb.mxu3 %v51_v7  ;;  %v2839_v32 = vld [vmem:[#allocation3 + $0x1c0] sm:$0xff]  ;;  %v2888_v57 = vld [vmem:[#allocation3 + $0x1e8] sm:$0xff]  ;;  %v2911_v0 = vld [vmem:[#allocation3 + $0x1f8] sm:$0xff] }
   0xc   :  { %80 = vmatpush.msra.mxu0 %v48_v1  ;;  %192 = vperm.xlu0 %2542, %v181_v8   ;;  %v2841_v33 = vld [vmem:[#allocation3 + $0x1a0] sm:$0xff]  ;;  %v2896_v59 = vld [vmem:[#allocation3 + $0x1c8] sm:$0xff]  ;;  %v2938_v7 = vld [vmem:[#allocation3 + $0x1b8] sm:$0xff] }
   0xd   :  { %2452 = vmatmul.msk.f32.vlgmr.msra.gmra.mxu0 %vm52_vm0, %v44_v11  ;;  %198 = vperm.xlu1 %2543, %v183_v9   ;;  %v2848_v36 = vld [vmem:[#allocation3 + $0x180] sm:$0xff]  ;;  %v2907_v62 = vld [vmem:[#allocation3 + $0x1a8] sm:$0xff]  ;;  %v2940_v8 = vld [vmem:[#allocation3 + $0x1d0] sm:$0xff] }
   0xe   :  { %204 = vperm.xlu2 %2544, %v185_v10   ;;  %v2853_v40 = vld [vmem:[#allocation3 + $0x160] sm:$0xff]  ;;  %v2934_v6 = vld [vmem:[#allocation3 + $0x168] sm:$0xff]  ;;  %v2977_v18 = vld [vmem:[#allocation3 + $0x170] sm:$0xff] }
   0xf   :  { %v2856_v41 = vld [vmem:[#allocation3 + $0x140] sm:$0xff]  ;;  %v2944_v9 = vld [vmem:[#allocation3 + $0x148] sm:$0xff] }
  0x10   :  { %v2859_v42 = vld [vmem:[#allocation3 + $0x120] sm:$0xff] }
  0x11   :  { %2456 = vmatmul.msk.f32.vlgmr.msrb.gmra.mxu1 %vm52_vm0, %v44_v11  ;;  %2460 = vmatmul.msk.f32.vlgmr.msrb.gmra.mxu2 %vm52_vm0, %v44_v11  ;;  %v2865_v44 = vld [vmem:[#allocation3 + $0x100] sm:$0xff] }
  0x12   :  { %2464 = vmatmul.msk.f32.vlgmr.msrb.gmra.mxu3 %vm52_vm0, %v44_v11  ;;  %v2871_v49 = vld [vmem:[#allocation3 + $0xe0] sm:$0xff]  ;;  %v2953_v11 = vld [vmem:[#allocation3 + $0x1b0] sm:$0xff] }
  0x13   :  { %v2874_v50 = vld [vmem:[#allocation3 + $0xc0] sm:$0xff] }
  0x14   :  { %195 = vperm.xlu0 %2542, %v182_v12   ;;  %v2877_v51 = vld [vmem:[#allocation3 + $0xa0] sm:$0xff]  ;;  %v2956_v12 = vld [vmem:[#allocation3 + $0x198] sm:$0xff] }
  0x15   :  { %201 = vperm.xlu1 %2543, %v184_v13   ;;  %v2884_v54 = vld [vmem:[#allocation3 + $0x80] sm:$0xff]  ;;  %v2963_v13 = vld [vmem:[#allocation3 + $0x128] sm:$0xff] }
  0x16   :  { %207 = vperm.xlu2 %2544, %v186_v14   ;;  %v2890_v58 = vld [vmem:[#allocation3 + $0x60] sm:$0xff]  ;;  %v2965_v14 = vld [vmem:[#allocation3 + $0x190] sm:$0xff] }
  0x17   :  { %v2898_v60 = vld [vmem:[#allocation3 + $0x40] sm:$0xff] }
  0x18   :  { %v2917_v1 = vld [vmem:[#allocation3 + $0x20] sm:$0xff] }
  0x19   :  { %2457 = vmatmul.msk.f32.gmra.mxu1 %vm52_vm0, %v45_v2  ;;  %2461 = vmatmul.msk.f32.gmra.mxu2 %vm52_vm0, %v45_v2  ;;  %v2932_v5 = vld [vmem:[#allocation3] sm:$0xff] }
  0x1a   :  { %2465 = vmatmul.msk.f32.gmra.mxu3 %vm52_vm0, %v45_v2  ;;  %v2922_v2 = vld [vmem:[#allocation3 + $0x1d8] sm:$0xff] }
  0x1c   :  { %210 = vperm.xlu0 %2542, %v187_v15  }
  0x1d   :  { %213 = vperm.xlu1 %2543, %v188_v16   ;;  %v2970_v16 = vld [vmem:[#allocation3 + $0x178] sm:$0xff] }
  0x21   :  { %2458 = vmatmul.msk.f32.gmra.mxu1 %vm52_vm0, %v46_v3  ;;  %2462 = vmatmul.msk.f32.gmra.mxu2 %vm52_vm0, %v46_v3 }
  0x22   :  { %2466 = vmatmul.msk.f32.gmra.mxu3 %vm52_vm0, %v46_v3  ;;  %v2924_v3 = vld [vmem:[#allocation3 + $0x188] sm:$0xff] }
  0x29   :  { %2459 = vmatmul.msk.f32.gmra.mxu1 %vm52_vm0, %v47_v4  ;;  %2463 = vmatmul.msk.f32.gmra.mxu2 %vm52_vm0, %v47_v4 }
  0x2a   :  { %2467 = vmatmul.msk.f32.gmra.mxu3 %vm52_vm0, %v47_v4  ;;  %v2926_v4 = vld [vmem:[#allocation3 + $0x1f0] sm:$0xff] }
  0x68   :  { %v205_v53 = vpop.permute.xlu2 %204 }
  0x69   :  { %vm219_vm6 = vcmp.eq.s32.totalorder %v205_v53, %v2823_v20  ;;  %v3085_v53 = vld [vmem:[#allocation3 + $0x78] sm:$0xff] }
  0x6a   :  { %v2903_v61 = vsel %vm219_vm6, 1.0, %v2708_v25 }
  0x70   :  { %v208_v63 = vpop.permute.xlu2 %207 }
  0x71   :  { %vm220_vm7 = vcmp.eq.s32.totalorder %v208_v63, %v2823_v20 }
  0x72   :  { %v2947_v10 = vsel %vm220_vm7, 1.0, %v2708_v25 }
  0x7e   :  { %v193_v19 = vpop.permute.xlu0 %192 }
  0x7f   :  { %vm215_vm1 = vcmp.eq.s32.totalorder %v193_v19, %v2823_v20  ;;  %v199_v35 = vpop.permute.xlu1 %198  ;;  %v2981_v19 = vld [vmem:[#allocation3 + $0x158] sm:$0xff] }
  0x80   :  { %v2827_v26 = vsel %vm215_vm1, 1.0, %v2708_v25  ;;  %vm217_vm4 = vcmp.eq.s32.totalorder %v199_v35, %v2823_v20  ;;  %v3031_v35 = vld [vmem:[#allocation3 + $0x68] sm:$0xff] }
  0x81   :  { %v2862_v43 = vsel %vm217_vm4, 1.0, %v2708_v25 }
  0x86   :  { %v85_v17 = vpop.f32.mrf.mxu1  ;;  %v196_v27 = vpop.permute.xlu0 %195 }
  0x87   :  { %vm216_vm3 = vcmp.eq.s32.totalorder %v196_v27, %v2823_v20  ;;  %v202_v45 = vpop.permute.xlu1 %201  ;;  %v3007_v27 = vld [vmem:[#allocation3 + $0x138] sm:$0xff] }
  0x88   :  { %v2845_v34 = vsel %vm216_vm3, 1.0, %v2708_v25  ;;  %vm218_vm5 = vcmp.eq.s32.totalorder %v202_v45, %v2823_v20  ;;  %v3065_v45 = vld [vmem:[#allocation3 + $0x90] sm:$0xff] }
  0x89   :  { %v2880_v52 = vsel %vm218_vm5, 1.0, %v2708_v25 }
  0x8a   :  { %v82_v24 = vpop.f32.mrf.mxu0 }
  0x8c   :  { %v88_v21 = vpop.f32.mrf.mxu2 }
  0x8d   :  { %v91_v22 = vpop.f32.mrf.mxu3 }
  0x8e   :  { %286 = vmatpush.msrb.mxu0 %v91_v22  ;;  %v111_v23 = vpop.f32.mrf.mxu1  ;;  %v211_v15 = vpop.permute.xlu0 %210  ;;  %v2987_v22 = vld [vmem:[#allocation3 + $0x150] sm:$0xff] }
  0x8f   :  { %vm221_vm8 = vcmp.eq.s32.totalorder %v211_v15, %v2823_v20 }
  0x90   :  { %287 = vmatpush.msrb.mxu0 %v88_v21  ;;  %v2985_v21 = vld [vmem:[#allocation3 + $0xe8] sm:$0xff] }
  0x92   :  { %288 = vmatpush.msrb.mxu0 %v85_v17  ;;  %v2975_v17 = vld [vmem:[#allocation3 + $0x108] sm:$0xff] }
  0x94   :  { %289 = vmatpush.msrb.mxu0 %v82_v24  ;;  %v2829_v28 = vpop.f32.mrf.mxu2  ;;  %v2997_v24 = vsel %vm221_vm8, 1.0, %v2708_v25 }
  0x95   :  { %v2831_v29 = vpop.f32.mrf.mxu3  ;;  %2476 = vmatmul.msk.f32.vlgmr.msrb.gmra.mxu0 %vm249_vm2, %v2827_v26 }
  0x96   :  { %v114_v30 = vpop.f32.mrf.mxu1  ;;  %538 = vmatpush.msra.mxu0 %v2835_v31 }
  0x98   :  { %539 = vmatpush.msra.mxu0 %v2839_v32 }
  0x9a   :  { %540 = vmatpush.msra.mxu0 %v2841_v33 }
  0x9c   :  { %v143_v37 = vpop.f32.mrf.mxu2  ;;  %541 = vmatpush.msra.mxu0 %v2848_v36 }
  0x9d   :  { %v172_v38 = vpop.f32.mrf.mxu3  ;;  %2477 = vmatmul.msk.f32.gmra.mxu0 %vm249_vm2, %v2845_v34 }
  0x9e   :  { %v117_v39 = vpop.f32.mrf.mxu1  ;;  %542 = vmatpush.msra.mxu0 %v2853_v40 }
  0xa0   :  { %543 = vmatpush.msra.mxu0 %v2856_v41 }
  0xa2   :  { %544 = vmatpush.msra.mxu0 %v2859_v42 }
  0xa4   :  { %v146_v46 = vpop.f32.mrf.mxu2  ;;  %545 = vmatpush.msra.mxu0 %v2865_v44 }
  0xa5   :  { %v175_v47 = vpop.f32.mrf.mxu3  ;;  %2478 = vmatmul.msk.f32.gmra.mxu0 %vm249_vm2, %v2862_v43 }
  0xa6   :  { %v120_v48 = vpop.f32.mrf.mxu1  ;;  %546 = vmatpush.msra.mxu0 %v2871_v49 }
  0xa7   :  { %327 = vmatpush.msra.mxu1 %v120_v48  ;;  %v3074_v48 = vld [vmem:[#allocation3 + $0x70] sm:$0xff] }
  0xa8   :  { %547 = vmatpush.msra.mxu0 %v2874_v50 }
  0xa9   :  { %328 = vmatpush.msra.mxu1 %v117_v39  ;;  %v3053_v39 = vld [vmem:[#allocation3 + $0xb0] sm:$0xff] }
  0xaa   :  { %548 = vmatpush.msra.mxu0 %v2877_v51 }
  0xab   :  { %329 = vmatpush.msra.mxu1 %v114_v30  ;;  %v3014_v30 = vld [vmem:[#allocation3 + $0x110] sm:$0xff] }
  0xac   :  { %v149_v55 = vpop.f32.mrf.mxu2  ;;  %549 = vmatpush.msra.mxu0 %v2884_v54 }
  0xad   :  { %v178_v56 = vpop.f32.mrf.mxu3  ;;  %2479 = vmatmul.msk.f32.gmra.mxu0 %vm249_vm2, %v2880_v52  ;;  %330 = vmatpush.msra.mxu1 %v111_v23  ;;  %v2993_v23 = vld [vmem:[#allocation3 + $0xc8] sm:$0xff] }
  0xae   :  { %368 = vmatpush.msra.mxu2 %v149_v55  ;;  %409 = vmatpush.msra.mxu3 %v178_v56  ;;  %v3095_v55 = vld [vmem:[#allocation3 + $0x58] sm:$0xff] }
  0xaf   :  { %2484 = vmatmul.msk.f32.vlgmr.msra.gmra.mxu1 %vm249_vm2, %v2827_v26  ;;  %550 = vmatpush.msra.mxu0 %v2890_v58  ;;  %v3103_v56 = vld [vmem:[#allocation3 + $0x38] sm:$0xff] }
  0xb0   :  { %369 = vmatpush.msra.mxu2 %v146_v46  ;;  %410 = vmatpush.msra.mxu3 %v175_v47  ;;  %v3069_v46 = vld [vmem:[#allocation3 + $0x98] sm:$0xff]  ;;  %v3072_v47 = vld [vmem:[#allocation3 + $0x8] sm:$0xff] }
  0xb1   :  { %558 = vmatpush.msrb.mxu1 %v2888_v57  ;;  %551 = vmatpush.msra.mxu0 %v2898_v60 }
  0xb2   :  { %370 = vmatpush.msra.mxu2 %v143_v37  ;;  %411 = vmatpush.msra.mxu3 %v172_v38  ;;  %v3037_v37 = vld [vmem:[#allocation3 + $0xd0] sm:$0xff]  ;;  %v3045_v38 = vld [vmem:[#allocation3 + $0xd8] sm:$0xff] }
  0xb3   :  { %559 = vmatpush.msrb.mxu1 %v2896_v59  ;;  %552 = vmatpush.msra.mxu0 %v2917_v1 }
  0xb4   :  { %371 = vmatpush.msra.mxu2 %v2829_v28  ;;  %412 = vmatpush.msra.mxu3 %v2831_v29  ;;  %v3009_v28 = vld [vmem:[#allocation3 + $0xa8] sm:$0xff]  ;;  %v214_v29 = vpop.permute.xlu1 %213 }
  0xb5   :  { %2480 = vmatmul.msk.f32.gmra.mxu0 %vm249_vm2, %v2903_v61  ;;  %2492 = vmatmul.msk.f32.vlgmr.msra.gmra.mxu2 %vm249_vm2, %v2827_v26  ;;  %vm222_vm9 = vcmp.eq.s32.totalorder %v214_v29, %v2823_v20 }
  0xb6   :  { %2500 = vmatmul.msk.f32.vlgmr.msra.gmra.mxu3 %vm249_vm2, %v2827_v26  ;;  %560 = vmatpush.msrb.mxu1 %v2907_v62  ;;  %v3001_v26 = vld [vmem:[#allocation3 + $0x130] sm:$0xff]  ;;  %v3041_v20 = vsel %vm222_vm9, 1.0, %v2708_v25 }
  0xb7   :  { %2485 = vmatmul.msk.f32.gmra.mxu1 %vm249_vm2, %v2845_v34  ;;  %598 = vmatpush.msrb.mxu3 %v2911_v0 }
  0xb8   :  { %561 = vmatpush.msrb.mxu1 %v2924_v3  ;;  %578 = vmatpush.msrb.mxu2 %v2926_v4 }
  0xb9   :  { %599 = vmatpush.msrb.mxu3 %v2922_v2  ;;  %553 = vmatpush.msra.mxu0 %v2932_v5 }
  0xba   :  { %562 = vmatpush.msrb.mxu1 %v2934_v6  ;;  %579 = vmatpush.msrb.mxu2 %v2940_v8 }
  0xbb   :  { %600 = vmatpush.msrb.mxu3 %v2938_v7  ;;  %776 = vmatpush.msrb.mxu0 %v2835_v31  ;;  %v3019_v31 = vld [vmem:[#allocation3 + $0x118] sm:$0xff] }
  0xbc   :  { %563 = vmatpush.msrb.mxu1 %v2944_v9  ;;  %580 = vmatpush.msrb.mxu2 %v2953_v11 }
  0xbd   :  { %2481 = vmatmul.msk.f32.gmra.mxu0 %vm249_vm2, %v2947_v10  ;;  %2493 = vmatmul.msk.f32.gmra.mxu2 %vm249_vm2, %v2845_v34 }
  0xbe   :  { %2501 = vmatmul.msk.f32.gmra.mxu3 %vm249_vm2, %v2845_v34  ;;  %564 = vmatpush.msrb.mxu1 %v2963_v13  ;;  %v3029_v34 = vld [vmem:[#allocation3 + $0xf8] sm:$0xff] }
  0xbf   :  { %2486 = vmatmul.msk.f32.gmra.mxu1 %vm249_vm2, %v2862_v43  ;;  %601 = vmatpush.msrb.mxu3 %v2956_v12 }
  0xc0   :  { %581 = vmatpush.msrb.mxu2 %v2965_v14  ;;  %777 = vmatpush.msrb.mxu0 %v2839_v32  ;;  %v3021_v32 = vld [vmem:[#allocation3 + $0x88] sm:$0xff] }
  0xc1   :  { %602 = vmatpush.msrb.mxu3 %v2970_v16  ;;  %565 = vmatpush.msrb.mxu1 %v2975_v17 }
  0xc2   :  { %582 = vmatpush.msrb.mxu2 %v2977_v18  ;;  %778 = vmatpush.msrb.mxu0 %v2841_v33  ;;  %v3025_v33 = vld [vmem:[#allocation3 + $0xf0] sm:$0xff] }
  0xc3   :  { %603 = vmatpush.msrb.mxu3 %v2981_v19  ;;  %566 = vmatpush.msrb.mxu1 %v2985_v21 }
  0xc4   :  { %583 = vmatpush.msrb.mxu2 %v2987_v22  ;;  %779 = vmatpush.msrb.mxu0 %v2848_v36  ;;  %v3051_v36 = vld [vmem:[#allocation3 + $0x48] sm:$0xff] }
  0xc5   :  { %2482 = vmatmul.msk.f32.gmra.mxu0 %vm249_vm2, %v2997_v24  ;;  %2494 = vmatmul.msk.f32.gmra.mxu2 %vm249_vm2, %v2862_v43 }
  0xc6   :  { %2502 = vmatmul.msk.f32.gmra.mxu3 %vm249_vm2, %v2862_v43  ;;  %567 = vmatpush.msrb.mxu1 %v2993_v23  ;;  %v3063_v43 = vld [vmem:[#allocation3 + $0x28] sm:$0xff] }
  0xc7   :  { %2487 = vmatmul.msk.f32.gmra.mxu1 %vm249_vm2, %v2880_v52  ;;  %584 = vmatpush.msrb.mxu2 %v3001_v26 }
  0xc8   :  { %604 = vmatpush.msrb.mxu3 %v3007_v27  ;;  %568 = vmatpush.msrb.mxu1 %v3009_v28 }
  0xc9   :  { %585 = vmatpush.msrb.mxu2 %v3014_v30  ;;  %780 = vmatpush.msrb.mxu0 %v2853_v40  ;;  %v3058_v40 = vld [vmem:[#allocation3 + $0xb8] sm:$0xff] }
  0xca   :  { %605 = vmatpush.msrb.mxu3 %v3019_v31  ;;  %569 = vmatpush.msrb.mxu1 %v3021_v32 }
  0xcb   :  { %586 = vmatpush.msrb.mxu2 %v3025_v33  ;;  %781 = vmatpush.msrb.mxu0 %v2856_v41  ;;  %v3090_v41 = vld [vmem:[#allocation3 + $0x30] sm:$0xff] }
  0xcc   :  { %606 = vmatpush.msrb.mxu3 %v3029_v34  ;;  %570 = vmatpush.msrb.mxu1 %v3031_v35 }
  0xcd   :  { %2483 = vmatmul.msk.f32.gmra.mxu0 %vm249_vm2, %v3041_v20  ;;  %2495 = vmatmul.msk.f32.gmra.mxu2 %vm249_vm2, %v2880_v52 }
  0xce   :  { %2503 = vmatmul.msk.f32.gmra.mxu3 %vm249_vm2, %v2880_v52  ;;  %587 = vmatpush.msrb.mxu2 %v3037_v37  ;;  %v3080_v52 = vld [vmem:[#allocation3 + $0x50] sm:$0xff] }
  0xcf   :  { %2488 = vmatmul.msk.f32.gmra.mxu1 %vm249_vm2, %v2903_v61  ;;  %607 = vmatpush.msrb.mxu3 %v3045_v38 }
  0xd0   :  { %571 = vmatpush.msrb.mxu1 %v3051_v36  ;;  %588 = vmatpush.msrb.mxu2 %v3053_v39 }
  0xd1   :  { %608 = vmatpush.msrb.mxu3 %v3058_v40  ;;  %782 = vmatpush.msrb.mxu0 %v2859_v42  ;;  %v3100_v42 = vld [vmem:[#allocation3 + $0x10] sm:$0xff] }
  0xd2   :  { %572 = vmatpush.msrb.mxu1 %v3063_v43  ;;  %589 = vmatpush.msrb.mxu2 %v3065_v45 }
  0xd3   :  { %609 = vmatpush.msrb.mxu3 %v3069_v46  ;;  %783 = vmatpush.msrb.mxu0 %v2865_v44  ;;  %v239_v44 = vld [vmem:[%s4252_s4] sm:$0xf]  ;;  %s2710_s4 = smov 1  }
  0xd4   :  { %573 = vmatpush.msrb.mxu1 %v3072_v47  ;;  %590 = vmatpush.msrb.mxu2 %v3074_v48  ;;  %v242_v63 = vperm.slane %v239_v44, 1 }
  0xd5   :  { %2496 = vmatmul.msk.f32.gmra.mxu2 %vm249_vm2, %v2903_v61  ;;  %554 = vmatmul.f32.vlgmr.msra.gmra.mxu0 %v2708_v25 }
  0xd6   :  { %2504 = vmatmul.msk.f32.gmra.mxu3 %vm249_vm2, %v2903_v61  ;;  %591 = vmatpush.msrb.mxu2 %v3080_v52  ;;  %v3109_v61 = vld [vmem:[#allocation3 + $0x18] sm:$0xff] }
  0xd7   :  { %2489 = vmatmul.msk.f32.gmra.mxu1 %vm249_vm2, %v2947_v10  ;;  %610 = vmatpush.msrb.mxu3 %v3085_v53 }
  0xd8   :  { %592 = vmatpush.msrb.mxu2 %v3090_v41  ;;  %796 = vmatpush.msra.mxu1 %v2888_v57 }
  0xd9   :  { %611 = vmatpush.msrb.mxu3 %v3095_v55  ;;  %784 = vmatpush.msrb.mxu0 %v2871_v49  ;;  %v241_v49 = vperm.slane %v239_v44, 0 }
  0xda   :  { %593 = vmatpush.msrb.mxu2 %v3100_v42  ;;  %797 = vmatpush.msra.mxu1 %v2896_v59 }
  0xdb   :  { %612 = vmatpush.msrb.mxu3 %v3103_v56  ;;  %785 = vmatpush.msrb.mxu0 %v2874_v50 }
  0xdc   :  { %816 = vmatpush.msra.mxu2 %v2926_v4  ;;  %798 = vmatpush.msra.mxu1 %v2907_v62 }
  0xdd   :  { %2497 = vmatmul.msk.f32.gmra.mxu2 %vm249_vm2, %v2947_v10  ;;  %613 = vmatpush.msrb.mxu3 %v3109_v61 }
  0xde   :  { %2505 = vmatmul.msk.f32.gmra.mxu3 %vm249_vm2, %v2947_v10  ;;  %817 = vmatpush.msra.mxu2 %v2940_v8  ;;  %v244_v10 = vperm.slane %v239_v44, 3 }
  0xdf   :  { %2490 = vmatmul.msk.f32.gmra.mxu1 %vm249_vm2, %v2997_v24  ;;  %836 = vmatpush.msra.mxu3 %v2911_v0 }
  0xe0   :  { %818 = vmatpush.msra.mxu2 %v2953_v11  ;;  %799 = vmatpush.msra.mxu1 %v2924_v3 }
  0xe1   :  { %837 = vmatpush.msra.mxu3 %v2922_v2  ;;  %786 = vmatpush.msrb.mxu0 %v2877_v51 }
  0xe2   :  { %819 = vmatpush.msra.mxu2 %v2965_v14  ;;  %800 = vmatpush.msra.mxu1 %v2934_v6 }
  0xe3   :  { %838 = vmatpush.msra.mxu3 %v2938_v7  ;;  %787 = vmatpush.msrb.mxu0 %v2884_v54 }
  0xe4   :  { %820 = vmatpush.msra.mxu2 %v2977_v18  ;;  %801 = vmatpush.msra.mxu1 %v2944_v9 }
  0xe5   :  { %2498 = vmatmul.msk.f32.gmra.mxu2 %vm249_vm2, %v2997_v24  ;;  %839 = vmatpush.msra.mxu3 %v2956_v12 }
  0xe6   :  { %2506 = vmatmul.msk.f32.gmra.mxu3 %vm249_vm2, %v2997_v24  ;;  %821 = vmatpush.msra.mxu2 %v2987_v22 }
  0xe7   :  { %2491 = vmatmul.msk.f32.gmra.mxu1 %vm249_vm2, %v3041_v20  ;;  %840 = vmatpush.msra.mxu3 %v2970_v16 }
  0xe8   :  { %802 = vmatpush.msra.mxu1 %v2963_v13  ;;  %822 = vmatpush.msra.mxu2 %v3001_v26 }
  0xe9   :  { %841 = vmatpush.msra.mxu3 %v2981_v19  ;;  %788 = vmatpush.msrb.mxu0 %v2890_v58 }
  0xea   :  { %803 = vmatpush.msra.mxu1 %v2975_v17  ;;  %823 = vmatpush.msra.mxu2 %v3014_v30 }
  0xeb   :  { %842 = vmatpush.msra.mxu3 %v3007_v27  ;;  %789 = vmatpush.msrb.mxu0 %v2898_v60 }
  0xec   :  { %804 = vmatpush.msra.mxu1 %v2985_v21  ;;  %824 = vmatpush.msra.mxu2 %v3025_v33 }
  0xed   :  { %2499 = vmatmul.msk.f32.gmra.mxu2 %vm249_vm2, %v3041_v20  ;;  %843 = vmatpush.msra.mxu3 %v3019_v31 }
  0xee   :  { %2507 = vmatmul.msk.f32.gmra.mxu3 %vm249_vm2, %v3041_v20  ;;  %805 = vmatpush.msra.mxu1 %v2993_v23 }
  0xef   :  { %574 = vmatmul.f32.vlgmr.msrb.gmra.mxu1 %v2708_v25  ;;  %844 = vmatpush.msra.mxu3 %v3029_v34 }
  0xf0   :  { %825 = vmatpush.msra.mxu2 %v3037_v37  ;;  %806 = vmatpush.msra.mxu1 %v3009_v28 }
  0xf1   :  { %845 = vmatpush.msra.mxu3 %v3045_v38  ;;  %790 = vmatpush.msrb.mxu0 %v2917_v1 }
  0xf2   :  { %826 = vmatpush.msra.mxu2 %v3053_v39  ;;  %807 = vmatpush.msra.mxu1 %v3021_v32 }
  0xf3   :  { %846 = vmatpush.msra.mxu3 %v3058_v40  ;;  %791 = vmatpush.msrb.mxu0 %v2932_v5 }
  0xf4   :  { %827 = vmatpush.msra.mxu2 %v3065_v45  ;;  %808 = vmatpush.msra.mxu1 %v3031_v35 }
  0xf5   :  { %594 = vmatmul.f32.vlgmr.msrb.gmra.mxu2 %v2708_v25  ;;  %847 = vmatpush.msra.mxu3 %v3069_v46 }
  0xf6   :  { %614 = vmatmul.f32.vlgmr.msrb.gmra.mxu3 %v2708_v25  ;;  %828 = vmatpush.msra.mxu2 %v3074_v48 }
  0xf7   :  { %848 = vmatpush.msra.mxu3 %v3085_v53  ;;  %809 = vmatpush.msra.mxu1 %v3051_v36 }
  0xf8   :  { %829 = vmatpush.msra.mxu2 %v3080_v52 }
  0xf9   :  { %849 = vmatpush.msra.mxu3 %v3095_v55  ;;  %810 = vmatpush.msra.mxu1 %v3063_v43 }
  0xfa   :  { %830 = vmatpush.msra.mxu2 %v3090_v41 }
  0xfb   :  { %850 = vmatpush.msra.mxu3 %v3103_v56  ;;  %811 = vmatpush.msra.mxu1 %v3072_v47 }
  0xfc   :  { %831 = vmatpush.msra.mxu2 %v3100_v42 }
  0xfd   :  { %1034 = vmatpush.msrb.mxu1 %v2888_v57  ;;  %851 = vmatpush.msra.mxu3 %v3109_v61 }
  0xfe   :  { %1054 = vmatpush.msrb.mxu2 %v2926_v4 }
  0xff   :  { %1074 = vmatpush.msrb.mxu3 %v2911_v0  ;;  %1035 = vmatpush.msrb.mxu1 %v2896_v59 }
 0x100   :  { %1055 = vmatpush.msrb.mxu2 %v2940_v8 }
 0x101   :  { %1075 = vmatpush.msrb.mxu3 %v2922_v2  ;;  %1036 = vmatpush.msrb.mxu1 %v2907_v62 }
 0x102   :  { %1056 = vmatpush.msrb.mxu2 %v2953_v11 }
 0x103   :  { %1076 = vmatpush.msrb.mxu3 %v2938_v7  ;;  %1037 = vmatpush.msrb.mxu1 %v2924_v3 }
 0x104   :  { %1057 = vmatpush.msrb.mxu2 %v2965_v14 }
 0x105   :  { %1077 = vmatpush.msrb.mxu3 %v2956_v12  ;;  %1038 = vmatpush.msrb.mxu1 %v2934_v6 }
 0x106   :  { %1058 = vmatpush.msrb.mxu2 %v2977_v18 }
 0x107   :  { %1078 = vmatpush.msrb.mxu3 %v2970_v16  ;;  %1039 = vmatpush.msrb.mxu1 %v2944_v9  ;;  %v3256_v9 = vperm.slane %v239_v44, 2 }
 0x108   :  { %1059 = vmatpush.msrb.mxu2 %v2987_v22 }
 0x109   :  { %1079 = vmatpush.msrb.mxu3 %v2981_v19  ;;  %1040 = vmatpush.msrb.mxu1 %v2963_v13 }
 0x10a   :  { %1060 = vmatpush.msrb.mxu2 %v3001_v26 }
 0x10b   :  { %1080 = vmatpush.msrb.mxu3 %v3007_v27  ;;  %1041 = vmatpush.msrb.mxu1 %v2975_v17 }
 0x10c   :  { %1061 = vmatpush.msrb.mxu2 %v3014_v30 }
 0x10d   :  { %1081 = vmatpush.msrb.mxu3 %v3019_v31  ;;  %1042 = vmatpush.msrb.mxu1 %v2985_v21 }
 0x10e   :  { %1062 = vmatpush.msrb.mxu2 %v3025_v33 }
 0x10f   :  { %1082 = vmatpush.msrb.mxu3 %v3029_v34  ;;  %1043 = vmatpush.msrb.mxu1 %v2993_v23 }
 0x110   :  { %1063 = vmatpush.msrb.mxu2 %v3037_v37 }
 0x111   :  { %1083 = vmatpush.msrb.mxu3 %v3045_v38  ;;  %1044 = vmatpush.msrb.mxu1 %v3009_v28 }
 0x112   :  { %1064 = vmatpush.msrb.mxu2 %v3053_v39  ;;  %v291_v25 = vpop.f32.mrf.mxu0 }
 0x113   :  { %1084 = vmatpush.msrb.mxu3 %v3058_v40  ;;  %1045 = vmatpush.msrb.mxu1 %v3021_v32  ;;  %v292_v37 = vadd.f32 %v291_v25, %v241_v49 }
 0x114   :  { %1065 = vmatpush.msrb.mxu2 %v3065_v45 }
 0x115   :  { %1085 = vmatpush.msrb.mxu3 %v3069_v46  ;;  %1046 = vmatpush.msrb.mxu1 %v3031_v35 }
 0x116   :  { %1066 = vmatpush.msrb.mxu2 %v3074_v48 }
 0x117   :  { %1086 = vmatpush.msrb.mxu3 %v3085_v53  ;;  %1047 = vmatpush.msrb.mxu1 %v3051_v36 }
 0x118   :  { %1067 = vmatpush.msrb.mxu2 %v3080_v52 }
 0x119   :  { %1087 = vmatpush.msrb.mxu3 %v3095_v55  ;;  %1048 = vmatpush.msrb.mxu1 %v3063_v43 }
 0x11a   :  { %1068 = vmatpush.msrb.mxu2 %v3090_v41  ;;  %v294_v50 = vpop.f32.mrf.mxu0 }
 0x11b   :  { %1088 = vmatpush.msrb.mxu3 %v3103_v56  ;;  %1049 = vmatpush.msrb.mxu1 %v3072_v47  ;;  %v3236_v51 = vadd.f32 %v294_v50, %v241_v49 }
 0x11c   :  { %1069 = vmatpush.msrb.mxu2 %v3100_v42 }
 0x11d   :  { %1089 = vmatpush.msrb.mxu3 %v3109_v61 }
 0x122   :  { %v297_v54 = vpop.f32.mrf.mxu0 }
 0x123   :  { %v3240_v57 = vadd.f32 %v297_v54, %v241_v49 }
 0x12a   :  { %v300_v58 = vpop.f32.mrf.mxu0 }
 0x12b   :  { %v3242_v59 = vadd.f32 %v300_v58, %v241_v49 }
 0x12c   :  { %v332_v60 = vpop.f32.mrf.mxu1 }
 0x12d   :  { %4262 = vst [vmem:[#allocation6_spill] sm:$0xff] %v3242_v59  ;;  %v333_v50 = vadd.f32 %v332_v60, %v242_v63 }
 0x132   :  { %v303_v62 = vpop.f32.mrf.mxu0 }
 0x133   :  { %v3244_v0 = vadd.f32 %v303_v62, %v241_v49 }
 0x134   :  { %v335_v1 = vpop.f32.mrf.mxu1 }
 0x135   :  { %4263 = vst [vmem:[#allocation7_spill] sm:$0xff] %v3244_v0  ;;  %v3246_v2 = vadd.f32 %v335_v1, %v242_v63 }
 0x138   :  { %v3248_v3 = vpop.f32.mrf.mxu2 }
 0x139   :  { %v3250_v4 = vpop.f32.mrf.mxu3 }
 0x13a   :  { %v306_v5 = vpop.f32.mrf.mxu0 }
 0x13b   :  { %v3252_v6 = vadd.f32 %v306_v5, %v241_v49 }
 0x13c   :  { %v338_v7 = vpop.f32.mrf.mxu1 }
 0x13d   :  { %4264 = vst [vmem:[#allocation8_spill] sm:$0xff] %v3252_v6  ;;  %v3254_v8 = vadd.f32 %v338_v7, %v242_v63 }
 0x140   :  { %v376_v11 = vpop.f32.mrf.mxu2 }
 0x141   :  { %v3259_v12 = vadd.f32 %v376_v11, %v3256_v9  ;;  %v417_v13 = vpop.f32.mrf.mxu3 }
 0x142   :  { %v3261_v14 = vadd.f32 %v417_v13, %v244_v10  ;;  %v309_v15 = vpop.f32.mrf.mxu0 }
 0x143   :  { %v3263_v16 = vadd.f32 %v309_v15, %v241_v49 }
 0x144   :  { %v341_v17 = vpop.f32.mrf.mxu1 }
 0x145   :  { %4265 = vst [vmem:[#allocation9_spill] sm:$0xff] %v3263_v16  ;;  %v3265_v18 = vadd.f32 %v341_v17, %v242_v63  ;;  %v3595_v16 = vld [vmem:[#allocation3 + $0x10] sm:$0xff] }
 0x147   :  { %4266 = vst [vmem:[#allocation10_spill] sm:$0xff] %v3265_v18 }
 0x148   :  { %v379_v19 = vpop.f32.mrf.mxu2 }
 0x149   :  { %v3268_v21 = vadd.f32 %v379_v19, %v3256_v9  ;;  %v420_v22 = vpop.f32.mrf.mxu3 }
 0x14a   :  { %v3270_v23 = vadd.f32 %v420_v22, %v244_v10  ;;  %v312_v24 = vpop.f32.mrf.mxu0  ;;  %v415_v22 = vadd.f32 %v3250_v4, %v244_v10 }
 0x14b   :  { %v3272_v26 = vadd.f32 %v312_v24, %v241_v49 }
 0x14c   :  { %v344_v27 = vpop.f32.mrf.mxu1 }
 0x14d   :  { %4267 = vst [vmem:[#allocation11_spill] sm:$0xff] %v3272_v26  ;;  %v3274_v28 = vadd.f32 %v344_v27, %v242_v63  ;;  %v3575_v26 = vld [vmem:[#allocation3 + $0x50] sm:$0xff] }
 0x14f   :  { %4268 = vst [vmem:[#allocation12_spill] sm:$0xff] %v3274_v28 }
 0x150   :  { %v382_v29 = vpop.f32.mrf.mxu2 }
 0x151   :  { %v3277_v30 = vadd.f32 %v382_v29, %v3256_v9  ;;  %v423_v31 = vpop.f32.mrf.mxu3  ;;  %v374_v29 = vadd.f32 %v3248_v3, %v3256_v9 }
 0x152   :  { %v3279_v32 = vadd.f32 %v423_v31, %v244_v10  ;;  %v555_v35 = vpop.f32.mrf.mxu0 }
 0x153   :  { %4269 = vst [vmem:[#allocation13_spill] sm:$0xff] %v3277_v30  ;;  %v618_v38 = vadd.f32 %v555_v35, %v292_v37 }
 0x154   :  { %4270 = vst [vmem:[#allocation14_spill] sm:$0xff] %v3279_v32  ;;  %v347_v33 = vpop.f32.mrf.mxu1 }
 0x155   :  { %v3281_v34 = vadd.f32 %v347_v33, %v242_v63  ;;  %v2508_v45 = vmul.f32 -1.442695, %v618_v38 }
 0x157   :  { %4271 = vst [vmem:[#allocation15_spill] sm:$0xff] %v3281_v34  ;;  %2546 = vpow2.f32 %v2508_v45 }
 0x158   :  { %v385_v20 = vpop.f32.mrf.mxu2 }
 0x159   :  { %v3284_v36 = vadd.f32 %v385_v20, %v3256_v9  ;;  %v426_v39 = vpop.f32.mrf.mxu3 }
 0x15a   :  { %v3286_v40 = vadd.f32 %v426_v39, %v244_v10 }
 0x15b   :  { %4272 = vst [vmem:[#allocation16_spill] sm:$0xff] %v3284_v36 }
 0x15c   :  { %4273 = vst [vmem:[#allocation17_spill] sm:$0xff] %v3286_v40  ;;  %v350_v43 = vpop.f32.mrf.mxu1 }
 0x15d   :  { %v3288_v46 = vadd.f32 %v350_v43, %v242_v63  ;;  %v2547_v42 = vpop.eup %2546 }
 0x15e   :  { %v625_v44 = vadd.f32 1.0, %v2547_v42 }
 0x15f   :  { %4274 = vst [vmem:[#allocation18_spill] sm:$0xff] %v3288_v46  ;;  %v3593_v46 = vld [vmem:[#allocation3 + $0x8] sm:$0xff] }
 0x160   :  { %v388_v47 = vpop.f32.mrf.mxu2  ;;  %2548 = vrcp.f32 %v625_v44  ;;  %vm631_vm11 = vweird.f32 %v625_v44  ;;  %v637_v4 = vand.u32 2147483648, %v625_v44 }
 0x161   :  { %v3291_v48 = vadd.f32 %v388_v47, %v3256_v9  ;;  %v429_v52 = vpop.f32.mrf.mxu3  ;;  %v635_v47 = vand.u32 2147483647, %v625_v44 }
 0x162   :  { %v3293_v53 = vadd.f32 %v429_v52, %v244_v10 }
 0x163   :  { %4275 = vst [vmem:[#allocation19_spill] sm:$0xff] %v3291_v48  ;;  %vm636_vm0 = vcmp.eq.f32.partialorder %v635_v47, 8.507059e+37  ;;  %v3346_v47 = vld [vmem:[#allocation3 + $0x180] sm:$0xff]  ;;  %v3597_v48 = vld [vmem:[#allocation3 + $0x18] sm:$0xff] }
 0x164   :  { %4276 = vst [vmem:[#allocation20_spill] sm:$0xff] %v3293_v53  ;;  %v353_v41 = vpop.f32.mrf.mxu1 }
 0x165   :  { %v3295_v55 = vadd.f32 %v353_v41, %v242_v63 }
 0x166   :  { %v2549_v13 = vpop.eup %2548 }
 0x167   :  { %4277 = vst [vmem:[#allocation21_spill] sm:$0xff] %v3295_v55  ;;  %v627_v17 = vmul.f32 %v2549_v13, %v625_v44  ;;  %vm632_vm10 = vweird.f32 %v2549_v13  ;;  %v3573_v55 = vld [vmem:[#allocation3 + $0x48] sm:$0xff] }
 0x168   :  { %v391_v56 = vpop.f32.mrf.mxu2  ;;  %vm633_vm13 = vmor %vm631_vm11, %vm632_vm10 }
 0x169   :  { %v3298_v61 = vadd.f32 %v391_v56, %v3256_v9  ;;  %v432_v25 = vpop.f32.mrf.mxu3  ;;  %v628_v60 = vsub.f32 1.0, %v627_v17 }
 0x16a   :  { %v3300_v49 = vadd.f32 %v432_v25, %v244_v10  ;;  %v638_v25 = vor.u32 1.1754944e-38, %v637_v4  ;;  %v3337_v4 = vld [vmem:[#allocation3 + $0x1e0] sm:$0xff] }
 0x16b   :  { %4278 = vst [vmem:[#allocation22_spill] sm:$0xff] %v3298_v61  ;;  %v629_v35 = vmul.f32 %v2549_v13, %v628_v60  ;;  %1014 = vmatpush.msra.mxu0 %v3337_v4  ;;  %v3577_v61 = vld [vmem:[#allocation3 + $0x58] sm:$0xff] }
 0x16c   :  { %4279 = vst [vmem:[#allocation23_spill] sm:$0xff] %v3300_v49  ;;  %v575_v54 = vpop.f32.mrf.mxu1 }
 0x16d   :  { %v619_v58 = vadd.f32 %v575_v54, %v333_v50  ;;  %v630_v39 = vadd.f32 %v2549_v13, %v629_v35 }
 0x16f   :  { %v2509_v62 = vmul.f32 -1.442695, %v619_v58 }
 0x170   :  { %v394_v1 = vpop.f32.mrf.mxu2 }
 0x171   :  { %2550 = vpow2.f32 %v2509_v62  ;;  %v3303_v5 = vadd.f32 %v394_v1, %v3256_v9  ;;  %v435_v7 = vpop.f32.mrf.mxu3  ;;  %v634_v9 = vsel %vm633_vm13, %v2549_v13, %v630_v39 }
 0x172   :  { %v3305_v11 = vadd.f32 %v435_v7, %v244_v10  ;;  %v639_v54 = vsel %vm636_vm0, %v638_v25, %v634_v9  ;;  %v3355_v9 = vld [vmem:[#allocation3 + $0x120] sm:$0xff] }
 0x173   :  { %4280 = vst [vmem:[#allocation24_spill] sm:$0xff] %v3303_v5 }
 0x174   :  { %4281 = vst [vmem:[#allocation25_spill] sm:$0xff] %v3305_v11 }
 0x177   :  { %v2551_v15 = vpop.eup %2550 }
 0x178   :  { %v644_v19 = vadd.f32 1.0, %v2551_v15  ;;  %v595_v63 = vpop.f32.mrf.mxu2 }
 0x179   :  { %v615_v24 = vpop.f32.mrf.mxu3  ;;  %v620_v33 = vadd.f32 %v595_v63, %v374_v29 }
 0x17a   :  { %2552 = vrcp.f32 %v644_v19  ;;  %v621_v27 = vadd.f32 %v615_v24, %v415_v22  ;;  %v656_v43 = vand.u32 2147483648, %v644_v19  ;;  %v654_v52 = vand.u32 2147483647, %v644_v19 }
 0x17b   :  { %vm650_vm14 = vweird.f32 %v644_v19 }
 0x17c   :  { %v2510_v31 = vmul.f32 -1.442695, %v621_v27  ;;  %v657_v56 = vor.u32 1.1754944e-38, %v656_v43  ;;  %vm655_vm1 = vcmp.eq.f32.partialorder %v654_v52, 8.507059e+37  ;;  %v3349_v52 = vld [vmem:[#allocation3 + $0x160] sm:$0xff] }
 0x17e   :  { %2554 = vpow2.f32 %v2510_v31 }
 0x17f   :  { %2556 = vtanh.f32 %v620_v33 }
 0x180   :  { %v2553_v37 = vpop.eup %2552 }
 0x181   :  { %v646_v20 = vmul.f32 %v2553_v37, %v644_v19  ;;  %vm651_vm12 = vweird.f32 %v2553_v37 }
 0x182   :  { %vm652_vm15 = vmor %vm650_vm14, %vm651_vm12 }
 0x183   :  { %v647_v38 = vsub.f32 1.0, %v646_v20 }
 0x184   :  { %v2555_v10 = vpop.eup %2554 }
 0x185   :  { %v648_v45 = vmul.f32 %v2553_v37, %v647_v38  ;;  %v664_v3 = vadd.f32 1.0, %v2555_v10  ;;  %v2557_v42 = vpop.eup %2556  ;;  %v3340_v10 = vld [vmem:[#allocation3 + $0x1c0] sm:$0xff] }
 0x186   :  { %v681_v1 = vmul.f32 %v2557_v42, %v639_v54  ;;  %1015 = vmatpush.msra.mxu0 %v3340_v10 }
 0x187   :  { %v649_v41 = vadd.f32 %v2553_v37, %v648_v45  ;;  %2558 = vrcp.f32 %v664_v3  ;;  %v676_v17 = vand.u32 2147483648, %v664_v3  ;;  %v674_v22 = vand.u32 2147483647, %v664_v3  ;;  %v3343_v45 = vld [vmem:[#allocation3 + $0x1a0] sm:$0xff] }
 0x188   :  { %vm670_vm3 = vweird.f32 %v664_v3  ;;  %1016 = vmatpush.msra.mxu0 %v3343_v45 }
 0x189   :  { %v653_v50 = vsel %vm652_vm15, %v2553_v37, %v649_v41  ;;  %v677_v63 = vor.u32 1.1754944e-38, %v676_v17  ;;  %vm675_vm5 = vcmp.eq.f32.partialorder %v674_v22, 8.507059e+37 }
 0x18a   :  { %v658_v58 = vsel %vm655_vm1, %v657_v56, %v653_v50  ;;  %1017 = vmatpush.msra.mxu0 %v3346_v47  ;;  %v3360_v50 = vld [vmem:[#allocation3 + $0x100] sm:$0xff] }
 0x18b   :  { %v680_v62 = vmul.f32 0.0, %v658_v58 }
 0x18c   :  { %1018 = vmatpush.msra.mxu0 %v3349_v52 }
 0x18d   :  { %v3310_v44 = vadd.f32 %v681_v1, %v680_v62  ;;  %v2559_v7 = vpop.eup %2558  ;;  %v3363_v62 = vld [vmem:[#allocation3 + $0xe0] sm:$0xff] }
 0x18e   :  { %v666_v15 = vmul.f32 %v2559_v7, %v664_v3  ;;  %vm671_vm2 = vweird.f32 %v2559_v7  ;;  %v3352_v3 = vld [vmem:[#allocation3 + $0x140] sm:$0xff] }
 0x18f   :  { %2560 = vtanh.f32 %v3310_v44  ;;  %vm672_vm4 = vmor %vm670_vm3, %vm671_vm2  ;;  %1019 = vmatpush.msra.mxu0 %v3352_v3  ;;  %v3366_v1 = vld [vmem:[#allocation3 + $0xc0] sm:$0xff] }
 0x190   :  { %v667_v13 = vsub.f32 1.0, %v666_v15  ;;  %v3373_v15 = vld [vmem:[#allocation3 + $0x80] sm:$0xff] }
 0x191   :  { %1020 = vmatpush.msra.mxu0 %v3355_v9 }
 0x192   :  { %v668_v19 = vmul.f32 %v2559_v7, %v667_v13 }
 0x193   :  { %1021 = vmatpush.msra.mxu0 %v3360_v50 }
 0x194   :  { %v669_v24 = vadd.f32 %v2559_v7, %v668_v19  ;;  %v3376_v19 = vld [vmem:[#allocation3 + $0x60] sm:$0xff] }
 0x195   :  { %v2561_v60 = vpop.eup %2560  ;;  %1022 = vmatpush.msra.mxu0 %v3363_v62 }
 0x196   :  { %v673_v27 = vsel %vm672_vm4, %v2559_v7, %v669_v24 }
 0x197   :  { %v678_v29 = vsel %vm675_vm5, %v677_v63, %v673_v27  ;;  %1023 = vmatpush.msra.mxu0 %v3366_v1  ;;  %v3379_v63 = vld [vmem:[#allocation3 + $0x40] sm:$0xff] }
 0x198   :  { %v684_v31 = vmul.f32 %v2561_v60, %v678_v29  ;;  %v3385_v29 = vld [vmem:[#allocation3] sm:$0xff] }
 0x19a   :  { %v686_v33 = vrot.slane %v684_v31, 1  ;;  %v687_v35 = vrot.slane %v684_v31, 2  ;;  %v688_v37 = vrot.slane %v684_v31, 3  ;;  %700 = vst [vmem:[%s4256_s8] sm:$0x1] %v684_v31  ;;  %792 = vmatmul.f32.vlgmr.msrb.gmra.mxu0 %v684_v31  ;;  %812 = vmatmul.f32.vlgmr.msra.gmra.mxu1 %v684_v31  ;;  %v689_v20 = vrot.slane %v684_v31, 4 }
 0x19b   :  { %832 = vmatmul.f32.vlgmr.msra.gmra.mxu2 %v684_v31  ;;  %852 = vmatmul.f32.vlgmr.msra.gmra.mxu3 %v684_v31  ;;  %v690_v38 = vrot.slane %v684_v31, 5  ;;  %v691_v39 = vrot.slane %v684_v31, 6  ;;  %v692_v43 = vrot.slane %v684_v31, 7 }
 0x19c   :  { %701 = vst [vmem:[%s4256_s8 + $0x8] sm:$0x1] %v686_v33 }
 0x19d   :  { %702 = vst [vmem:[%s4256_s8 + $0x10] sm:$0x1] %v687_v35 }
 0x19e   :  { %703 = vst [vmem:[%s4256_s8 + $0x18] sm:$0x1] %v688_v37 }
 0x19f   :  { %704 = vst [vmem:[%s4256_s8 + $0x20] sm:$0x1] %v689_v20 }
 0x1a0   :  { %705 = vst [vmem:[%s4256_s8 + $0x28] sm:$0x1] %v690_v38 }
 0x1a1   :  { %706 = vst [vmem:[%s4256_s8 + $0x30] sm:$0x1] %v691_v39 }
 0x1a2   :  { %707 = vst [vmem:[%s4256_s8 + $0x38] sm:$0x1] %v692_v43 }
 0x217   :  { %v793_v41 = vpop.f32.mrf.mxu0  ;;  %v813_v42 = vpop.f32.mrf.mxu1 }
 0x218   :  { %v856_v56 = vadd.f32 %v793_v41, %v3236_v51  ;;  %v857_v25 = vadd.f32 %v813_v42, %v3246_v2  ;;  %v3369_v51 = vld [vmem:[#allocation3 + $0xa0] sm:$0xff] }
 0x219   :  { %1024 = vmatpush.msra.mxu0 %v3369_v51 }
 0x21a   :  { %v2511_v54 = vmul.f32 -1.442695, %v856_v56  ;;  %v2512_v58 = vmul.f32 -1.442695, %v857_v25 }
 0x21b   :  { %1025 = vmatpush.msra.mxu0 %v3373_v15 }
 0x21c   :  { %2562 = vpow2.f32 %v2511_v54 }
 0x21d   :  { %2564 = vpow2.f32 %v2512_v58  ;;  %1026 = vmatpush.msra.mxu0 %v3376_v19 }
 0x21e   :  { %v853_v7 = vpop.f32.mrf.mxu3  ;;  %v833_v27 = vpop.f32.mrf.mxu2 }
 0x21f   :  { %v859_v2 = vadd.f32 %v853_v7, %v3261_v14  ;;  %1027 = vmatpush.msra.mxu0 %v3379_v63  ;;  %v3382_v14 = vld [vmem:[#allocation3 + $0x20] sm:$0xff]  ;;  %v858_v37 = vadd.f32 %v833_v27, %v3259_v12 }
 0x221   :  { %v2513_v13 = vmul.f32 -1.442695, %v859_v2  ;;  %1028 = vmatpush.msra.mxu0 %v3382_v14 }
 0x222   :  { %v2563_v17 = vpop.eup %2562 }
 0x223   :  { %v2565_v22 = vpop.eup %2564  ;;  %v863_v24 = vadd.f32 1.0, %v2563_v17  ;;  %2566 = vpow2.f32 %v2513_v13  ;;  %1029 = vmatpush.msra.mxu0 %v3385_v29 }
 0x224   :  { %v882_v60 = vadd.f32 1.0, %v2565_v22 }
 0x225   :  { %2568 = vrcp.f32 %v863_v24  ;;  %1252 = vmatpush.msrb.mxu0 %v3337_v4  ;;  %v875_v42 = vand.u32 2147483648, %v863_v24  ;;  %v873_v54 = vand.u32 2147483647, %v863_v24  ;;  %vm869_vm8 = vweird.f32 %v863_v24 }
 0x226   :  { %2570 = vrcp.f32 %v882_v60  ;;  %v894_v56 = vand.u32 2147483648, %v882_v60  ;;  %v892_v12 = vand.u32 2147483647, %v882_v60  ;;  %vm888_vm9 = vweird.f32 %v882_v60 }
 0x227   :  { %1253 = vmatpush.msrb.mxu0 %v3340_v10  ;;  %v876_v13 = vor.u32 1.1754944e-38, %v875_v42  ;;  %vm874_vm12 = vcmp.eq.f32.partialorder %v873_v54, 8.507059e+37 }
 0x228   :  { %v895_v27 = vor.u32 1.1754944e-38, %v894_v56  ;;  %vm893_vm13 = vcmp.eq.f32.partialorder %v892_v12, 8.507059e+37 }
 0x229   :  { %v2567_v31 = vpop.eup %2566  ;;  %1254 = vmatpush.msrb.mxu0 %v3343_v45 }
 0x22a   :  { %v902_v33 = vadd.f32 1.0, %v2567_v31 }
 0x22b   :  { %v2569_v35 = vpop.eup %2568  ;;  %1255 = vmatpush.msrb.mxu0 %v3346_v47 }
 0x22c   :  { %v2571_v20 = vpop.eup %2570  ;;  %v865_v38 = vmul.f32 %v2569_v35, %v863_v24  ;;  %2572 = vrcp.f32 %v902_v33  ;;  %vm870_vm6 = vweird.f32 %v2569_v35  ;;  %vm908_vm15 = vweird.f32 %v902_v33 }
 0x22d   :  { %v884_v39 = vmul.f32 %v2571_v20, %v882_v60  ;;  %2574 = vtanh.f32 %v858_v37  ;;  %vm889_vm7 = vweird.f32 %v2571_v20  ;;  %1256 = vmatpush.msrb.mxu0 %v3349_v52  ;;  %vm871_vm10 = vmor %vm869_vm8, %vm870_vm6  ;;  %v912_v56 = vand.u32 2147483647, %v902_v33 }
 0x22e   :  { %v866_v43 = vsub.f32 1.0, %v865_v38  ;;  %vm890_vm11 = vmor %vm888_vm9, %vm889_vm7 }
 0x22f   :  { %v885_v41 = vsub.f32 1.0, %v884_v39  ;;  %1257 = vmatpush.msrb.mxu0 %v3352_v3  ;;  %vm913_vm1 = vcmp.eq.f32.partialorder %v912_v56, 8.507059e+37  ;;  %v3516_v56 = vld [vmem:[#allocation3 + $0x110] sm:$0xff] }
 0x230   :  { %v867_v25 = vmul.f32 %v2569_v35, %v866_v43 }
 0x231   :  { %v886_v58 = vmul.f32 %v2571_v20, %v885_v41  ;;  %1258 = vmatpush.msrb.mxu0 %v3355_v9 }
 0x232   :  { %v2573_v7 = vpop.eup %2572  ;;  %v868_v2 = vadd.f32 %v2569_v35, %v867_v25 }
 0x233   :  { %v887_v17 = vadd.f32 %v2571_v20, %v886_v58  ;;  %v904_v22 = vmul.f32 %v2573_v7, %v902_v33  ;;  %v2575_v37 = vpop.eup %2574  ;;  %1259 = vmatpush.msrb.mxu0 %v3360_v50  ;;  %vm909_vm14 = vweird.f32 %v2573_v7 }
 0x234   :  { %v872_v31 = vsel %vm871_vm10, %v2569_v35, %v868_v2  ;;  %vm910_vm0 = vmor %vm908_vm15, %vm909_vm14 }
 0x235   :  { %v877_v38 = vsel %vm874_vm12, %v876_v13, %v872_v31  ;;  %v891_v39 = vsel %vm890_vm11, %v2571_v20, %v887_v17  ;;  %v905_v43 = vsub.f32 1.0, %v904_v22  ;;  %1260 = vmatpush.msrb.mxu0 %v3363_v62  ;;  %v914_v20 = vand.u32 2147483648, %v902_v33 }
 0x236   :  { %v896_v41 = vsel %vm893_vm13, %v895_v27, %v891_v39  ;;  %v919_v24 = vmul.f32 %v2575_v37, %v877_v38  ;;  %v3496_v37 = vld [vmem:[#allocation3 + $0x150] sm:$0xff]  ;;  %v3498_v38 = vld [vmem:[#allocation3 + $0x158] sm:$0xff]  ;;  %v3503_v39 = vld [vmem:[#allocation3 + $0x128] sm:$0xff] }
 0x237   :  { %v918_v60 = vmul.f32 %v896_v41, %v3310_v44  ;;  %v906_v42 = vmul.f32 %v2573_v7, %v905_v43  ;;  %1261 = vmatpush.msrb.mxu0 %v3366_v1  ;;  %v915_v44 = vor.u32 1.1754944e-38, %v914_v20  ;;  %v3505_v43 = vld [vmem:[#allocation3 + $0x130] sm:$0xff]  ;;  %v3507_v41 = vld [vmem:[#allocation3 + $0x138] sm:$0xff]  ;;  %v3514_v20 = vld [vmem:[#allocation3 + $0x108] sm:$0xff] }
 0x239   :  { %v3398_v25 = vadd.f32 %v919_v24, %v918_v60  ;;  %v907_v35 = vadd.f32 %v2573_v7, %v906_v42  ;;  %1262 = vmatpush.msrb.mxu0 %v3369_v51 }
 0x23b   :  { %2576 = vtanh.f32 %v3398_v25  ;;  %v911_v54 = vsel %vm910_vm0, %v2573_v7, %v907_v35  ;;  %1263 = vmatpush.msrb.mxu0 %v3373_v15 }
 0x23c   :  { %v916_v12 = vsel %vm913_vm1, %v915_v44, %v911_v54  ;;  %v3518_v54 = vld [vmem:[#allocation3 + $0x118] sm:$0xff] }
 0x23d   :  { %1264 = vmatpush.msrb.mxu0 %v3376_v19 }
 0x23f   :  { %1265 = vmatpush.msrb.mxu0 %v3379_v63 }
 0x241   :  { %v2577_v58 = vpop.eup %2576  ;;  %1266 = vmatpush.msrb.mxu0 %v3382_v14 }
 0x242   :  { %v922_v2 = vmul.f32 %v2577_v58, %v916_v12  ;;  %v3523_v12 = vld [vmem:[#allocation3 + $0xe8] sm:$0xff] }
 0x243   :  { %1267 = vmatpush.msrb.mxu0 %v3385_v29 }
 0x244   :  { %v924_v13 = vrot.slane %v922_v2, 1  ;;  %v925_v17 = vrot.slane %v922_v2, 2  ;;  %v926_v22 = vrot.slane %v922_v2, 3  ;;  %938 = vst [vmem:[%s4256_s8 + $0x1] sm:$0x1] %v922_v2  ;;  %1030 = vmatmul.f32.vlgmr.msra.gmra.mxu0 %v922_v2  ;;  %1050 = vmatmul.f32.vlgmr.msrb.gmra.mxu1 %v922_v2  ;;  %v927_v33 = vrot.slane %v922_v2, 4 }
 0x245   :  { %1070 = vmatmul.f32.vlgmr.msrb.gmra.mxu2 %v922_v2  ;;  %1090 = vmatmul.f32.vlgmr.msrb.gmra.mxu3 %v922_v2  ;;  %v928_v7 = vrot.slane %v922_v2, 5  ;;  %v929_v27 = vrot.slane %v922_v2, 6  ;;  %v930_v31 = vrot.slane %v922_v2, 7  ;;  %v3532_v2 = vld [vmem:[#allocation3 + $0xc8] sm:$0xff] }
 0x246   :  { %939 = vst [vmem:[%s4256_s8 + $0x9] sm:$0x1] %v924_v13  ;;  %1490 = vmatpush.msra.mxu0 %v3337_v4  ;;  %v3449_v4 = vld [vmem:[#allocation3 + $0x1e8] sm:$0xff]  ;;  %v3534_v13 = vld [vmem:[#allocation3 + $0xd0] sm:$0xff] }
 0x247   :  { %940 = vst [vmem:[%s4256_s8 + $0x11] sm:$0x1] %v925_v17  ;;  %1272 = vmatpush.msra.mxu1 %v3449_v4  ;;  %v3536_v17 = vld [vmem:[#allocation3 + $0xd8] sm:$0xff] }
 0x248   :  { %941 = vst [vmem:[%s4256_s8 + $0x19] sm:$0x1] %v926_v22  ;;  %1491 = vmatpush.msra.mxu0 %v3340_v10  ;;  %v3451_v10 = vld [vmem:[#allocation3 + $0x1f0] sm:$0xff] }
 0x249   :  { %942 = vst [vmem:[%s4256_s8 + $0x21] sm:$0x1] %v927_v33  ;;  %1292 = vmatpush.msra.mxu2 %v3451_v10  ;;  %v3541_v33 = vld [vmem:[#allocation3 + $0xa8] sm:$0xff] }
 0x24a   :  { %943 = vst [vmem:[%s4256_s8 + $0x29] sm:$0x1] %v928_v7  ;;  %1492 = vmatpush.msra.mxu0 %v3343_v45  ;;  %v3453_v45 = vld [vmem:[#allocation3 + $0x1f8] sm:$0xff]  ;;  %v3543_v7 = vld [vmem:[#allocation3 + $0xb0] sm:$0xff] }
 0x24b   :  { %944 = vst [vmem:[%s4256_s8 + $0x31] sm:$0x1] %v929_v27  ;;  %1312 = vmatpush.msra.mxu3 %v3453_v45  ;;  %v3545_v27 = vld [vmem:[#allocation3 + $0xb8] sm:$0xff] }
 0x24c   :  { %945 = vst [vmem:[%s4256_s8 + $0x39] sm:$0x1] %v930_v31  ;;  %1493 = vmatpush.msra.mxu0 %v3346_v47  ;;  %v3458_v47 = vld [vmem:[#allocation3 + $0x1c8] sm:$0xff] }
 0x24d   :  { %1273 = vmatpush.msra.mxu1 %v3458_v47 }
 0x24e   :  { %1494 = vmatpush.msra.mxu0 %v3349_v52  ;;  %v3460_v52 = vld [vmem:[#allocation3 + $0x1d0] sm:$0xff] }
 0x24f   :  { %1293 = vmatpush.msra.mxu2 %v3460_v52 }
 0x250   :  { %1495 = vmatpush.msra.mxu0 %v3352_v3  ;;  %v3462_v3 = vld [vmem:[#allocation3 + $0x1d8] sm:$0xff] }
 0x251   :  { %1313 = vmatpush.msra.mxu3 %v3462_v3 }
 0x252   :  { %1496 = vmatpush.msra.mxu0 %v3355_v9  ;;  %v3467_v9 = vld [vmem:[#allocation3 + $0x1a8] sm:$0xff] }
 0x253   :  { %1274 = vmatpush.msra.mxu1 %v3467_v9 }
 0x254   :  { %1497 = vmatpush.msra.mxu0 %v3360_v50  ;;  %v3469_v50 = vld [vmem:[#allocation3 + $0x1b0] sm:$0xff] }
 0x255   :  { %1294 = vmatpush.msra.mxu2 %v3469_v50 }
 0x256   :  { %1498 = vmatpush.msra.mxu0 %v3363_v62  ;;  %v3471_v62 = vld [vmem:[#allocation3 + $0x1b8] sm:$0xff] }
 0x257   :  { %4282 = vst [vmem:[#allocation26_spill] sm:$0xff] %v3471_v62  ;;  %1314 = vmatpush.msra.mxu3 %v3471_v62 }
 0x258   :  { %1499 = vmatpush.msra.mxu0 %v3366_v1  ;;  %v3476_v1 = vld [vmem:[#allocation3 + $0x188] sm:$0xff] }
 0x259   :  { %1275 = vmatpush.msra.mxu1 %v3476_v1 }
 0x25a   :  { %1500 = vmatpush.msra.mxu0 %v3369_v51  ;;  %v3478_v51 = vld [vmem:[#allocation3 + $0x190] sm:$0xff] }
 0x25b   :  { %4283 = vst [vmem:[#allocation27_spill] sm:$0xff] %v3478_v51  ;;  %1295 = vmatpush.msra.mxu2 %v3478_v51 }
 0x25c   :  { %1501 = vmatpush.msra.mxu0 %v3373_v15  ;;  %v3480_v15 = vld [vmem:[#allocation3 + $0x198] sm:$0xff] }
 0x25d   :  { %4284 = vst [vmem:[#allocation28_spill] sm:$0xff] %v3480_v15  ;;  %1315 = vmatpush.msra.mxu3 %v3480_v15 }
 0x25e   :  { %1502 = vmatpush.msra.mxu0 %v3376_v19  ;;  %v3485_v19 = vld [vmem:[#allocation3 + $0x168] sm:$0xff] }
 0x25f   :  { %4285 = vst [vmem:[#allocation29_spill] sm:$0xff] %v3485_v19  ;;  %1276 = vmatpush.msra.mxu1 %v3485_v19 }
 0x260   :  { %1503 = vmatpush.msra.mxu0 %v3379_v63  ;;  %v3487_v63 = vld [vmem:[#allocation3 + $0x170] sm:$0xff] }
 0x261   :  { %1296 = vmatpush.msra.mxu2 %v3487_v63 }
 0x262   :  { %1504 = vmatpush.msra.mxu0 %v3382_v14  ;;  %v3489_v14 = vld [vmem:[#allocation3 + $0x178] sm:$0xff] }
 0x263   :  { %4286 = vst [vmem:[#allocation30_spill] sm:$0xff] %v3489_v14  ;;  %1316 = vmatpush.msra.mxu3 %v3489_v14  ;;  %1297 = vmatpush.msra.mxu2 %v3496_v37 }
 0x264   :  { %1505 = vmatpush.msra.mxu0 %v3385_v29  ;;  %v3494_v29 = vld [vmem:[#allocation3 + $0x148] sm:$0xff] }
 0x265   :  { %1277 = vmatpush.msra.mxu1 %v3494_v29  ;;  %1317 = vmatpush.msra.mxu3 %v3498_v38 }
 0x266   :  { %1298 = vmatpush.msra.mxu2 %v3505_v43 }
 0x267   :  { %1278 = vmatpush.msra.mxu1 %v3503_v39  ;;  %1318 = vmatpush.msra.mxu3 %v3507_v41 }
 0x268   :  { %1299 = vmatpush.msra.mxu2 %v3516_v56 }
 0x269   :  { %1279 = vmatpush.msra.mxu1 %v3514_v20  ;;  %1319 = vmatpush.msra.mxu3 %v3518_v54 }
 0x26b   :  { %1280 = vmatpush.msra.mxu1 %v3523_v12 }
 0x26d   :  { %1281 = vmatpush.msra.mxu1 %v3532_v2 }
 0x26f   :  { %1282 = vmatpush.msra.mxu1 %v3541_v33 }
 0x2c1   :  { %v1031_v24 = vpop.f32.mrf.mxu0  ;;  %v1051_v60 = vpop.f32.mrf.mxu1 }
 0x2c2   :  { %v1094_v42 = vadd.f32 %v1031_v24, %v3240_v57  ;;  %v1095_v35 = vadd.f32 %v1051_v60, %v3254_v8  ;;  %v3525_v57 = vld [vmem:[#allocation3 + $0xf0] sm:$0xff]  ;;  %v3529_v8 = vld [vmem:[#allocation3 + $0xf8] sm:$0xff]  ;;  %v3551_v24 = vld [vmem:[#allocation3 + $0x88] sm:$0xff] }
 0x2c3   :  { %1300 = vmatpush.msra.mxu2 %v3525_v57  ;;  %1320 = vmatpush.msra.mxu3 %v3529_v8  ;;  %v3553_v60 = vld [vmem:[#allocation3 + $0x90] sm:$0xff] }
 0x2c4   :  { %v2514_v44 = vmul.f32 -1.442695, %v1094_v42  ;;  %v2515_v58 = vmul.f32 -1.442695, %v1095_v35  ;;  %v3555_v42 = vld [vmem:[#allocation3 + $0x98] sm:$0xff]  ;;  %1283 = vmatpush.msra.mxu1 %v3551_v24 }
 0x2c5   :  { %1301 = vmatpush.msra.mxu2 %v3534_v13  ;;  %1321 = vmatpush.msra.mxu3 %v3536_v17 }
 0x2c6   :  { %2578 = vpow2.f32 %v2514_v44 }
 0x2c7   :  { %2580 = vpow2.f32 %v2515_v58  ;;  %1302 = vmatpush.msra.mxu2 %v3543_v7  ;;  %1322 = vmatpush.msra.mxu3 %v3545_v27  ;;  %v3562_v58 = vld [vmem:[#allocation3 + $0x70] sm:$0xff] }
 0x2c8   :  { %v1091_v22 = vpop.f32.mrf.mxu3  ;;  %v1071_v49 = vpop.f32.mrf.mxu2 }
 0x2c9   :  { %v1097_v31 = vadd.f32 %v1091_v22, %v3270_v23  ;;  %1303 = vmatpush.msra.mxu2 %v3553_v60  ;;  %1323 = vmatpush.msra.mxu3 %v3555_v42  ;;  %v3560_v23 = vld [vmem:[#allocation3 + $0x68] sm:$0xff]  ;;  %v3564_v22 = vld [vmem:[#allocation3 + $0x78] sm:$0xff]  ;;  %v1096_v36 = vadd.f32 %v1071_v49, %v3268_v21 }
 0x2ca   :  { %1284 = vmatpush.msra.mxu1 %v3560_v23 }
 0x2cb   :  { %v2516_v35 = vmul.f32 -1.442695, %v1097_v31  ;;  %1304 = vmatpush.msra.mxu2 %v3562_v58  ;;  %1324 = vmatpush.msra.mxu3 %v3564_v22 }
 0x2cc   :  { %v2579_v44 = vpop.eup %2578  ;;  %1285 = vmatpush.msra.mxu1 %v3573_v55 }
 0x2cd   :  { %v2581_v5 = vpop.eup %2580  ;;  %v3566_v11 = vadd.f32 1.0, %v2579_v44  ;;  %2582 = vpow2.f32 %v2516_v35  ;;  %1305 = vmatpush.msra.mxu2 %v3575_v26  ;;  %1325 = vmatpush.msra.mxu3 %v3577_v61  ;;  %v3586_v35 = vld [vmem:[#allocation3 + $0x30] sm:$0xff]  ;;  %v3588_v44 = vld [vmem:[#allocation3 + $0x38] sm:$0xff] }
 0x2ce   :  { %v3570_v31 = vadd.f32 1.0, %v2581_v5  ;;  %v3584_v5 = vld [vmem:[#allocation3 + $0x28] sm:$0xff] }
 0x2cf   :  { %2584 = vrcp.f32 %v3566_v11  ;;  %1286 = vmatpush.msra.mxu1 %v3584_v5  ;;  %1306 = vmatpush.msra.mxu2 %v3586_v35  ;;  %v1113_v49 = vand.u32 2147483648, %v3566_v11  ;;  %v1111_v18 = vand.u32 2147483647, %v3566_v11  ;;  %vm1107_vm4 = vweird.f32 %v3566_v11 }
 0x2d0   :  { %2586 = vrcp.f32 %v3570_v31  ;;  %1326 = vmatpush.msra.mxu3 %v3588_v44  ;;  %v1132_v30 = vand.u32 2147483648, %v3570_v31  ;;  %vm1126_vm5 = vweird.f32 %v3570_v31 }
 0x2d1   :  { %1287 = vmatpush.msra.mxu1 %v3593_v46  ;;  %1307 = vmatpush.msra.mxu2 %v3595_v16  ;;  %vm1112_vm8 = vcmp.eq.f32.partialorder %v1111_v18, 8.507059e+37 }
 0x2d2   :  { %1327 = vmatpush.msra.mxu3 %v3597_v48 }
 0x2d3   :  { %v2583_v53 = vpop.eup %2582  ;;  %1510 = vmatpush.msrb.mxu1 %v3449_v4  ;;  %1530 = vmatpush.msrb.mxu2 %v3451_v10 }
 0x2d4   :  { %v3601_v34 = vadd.f32 1.0, %v2583_v53  ;;  %1550 = vmatpush.msrb.mxu3 %v3453_v45 }
 0x2d5   :  { %v2585_v6 = vpop.eup %2584  ;;  %1511 = vmatpush.msrb.mxu1 %v3458_v47  ;;  %1531 = vmatpush.msrb.mxu2 %v3460_v52 }
 0x2d6   :  { %v2587_v40 = vpop.eup %2586  ;;  %v1103_v28 = vmul.f32 %v2585_v6, %v3566_v11  ;;  %2588 = vrcp.f32 %v3601_v34  ;;  %1551 = vmatpush.msrb.mxu3 %v3462_v3  ;;  %vm1108_vm2 = vweird.f32 %v2585_v6  ;;  %vm1146_vm11 = vweird.f32 %v3601_v34 }
 0x2d7   :  { %v1122_v53 = vmul.f32 %v2587_v40, %v3570_v31  ;;  %1512 = vmatpush.msrb.mxu1 %v3467_v9  ;;  %2590 = vtanh.f32 %v1096_v36  ;;  %1532 = vmatpush.msrb.mxu2 %v3469_v50  ;;  %vm1127_vm3 = vweird.f32 %v2587_v40  ;;  %vm1109_vm6 = vmor %vm1107_vm4, %vm1108_vm2 }
 0x2d8   :  { %v1104_v0 = vsub.f32 1.0, %v1103_v28  ;;  %1552 = vmatpush.msrb.mxu3 %v3471_v62  ;;  %v1130_v28 = vand.u32 2147483647, %v3570_v31  ;;  %vm1128_vm7 = vmor %vm1126_vm5, %vm1127_vm3 }
 0x2d9   :  { %v1123_v21 = vsub.f32 1.0, %v1122_v53  ;;  %1513 = vmatpush.msrb.mxu1 %v3476_v1  ;;  %1533 = vmatpush.msrb.mxu2 %v3478_v51 }
 0x2da   :  { %v1105_v32 = vmul.f32 %v2585_v6, %v1104_v0  ;;  %1553 = vmatpush.msrb.mxu3 %v3480_v15  ;;  %v1114_v0 = vor.u32 1.1754944e-38, %v1113_v49  ;;  %v1133_v15 = vor.u32 1.1754944e-38, %v1132_v30  ;;  %vm1131_vm9 = vcmp.eq.f32.partialorder %v1130_v28, 8.507059e+37 }
 0x2db   :  { %v1124_v59 = vmul.f32 %v2587_v40, %v1123_v21  ;;  %1514 = vmatpush.msrb.mxu1 %v3485_v19  ;;  %1534 = vmatpush.msrb.mxu2 %v3487_v63 }
 0x2dc   :  { %v2589_v36 = vpop.eup %2588  ;;  %v1106_v53 = vadd.f32 %v2585_v6, %v1105_v32  ;;  %1554 = vmatpush.msrb.mxu3 %v3489_v14 }
 0x2dd   :  { %v1125_v62 = vadd.f32 %v2587_v40, %v1124_v59  ;;  %v1142_v21 = vmul.f32 %v2589_v36, %v3601_v34  ;;  %1515 = vmatpush.msrb.mxu1 %v3494_v29  ;;  %v2591_v32 = vpop.eup %2590  ;;  %1535 = vmatpush.msrb.mxu2 %v3496_v37  ;;  %vm1147_vm10 = vweird.f32 %v2589_v36 }
 0x2de   :  { %v1110_v51 = vsel %vm1109_vm6, %v2585_v6, %v1106_v53  ;;  %1555 = vmatpush.msrb.mxu3 %v3498_v38  ;;  %vm1148_vm12 = vmor %vm1146_vm11, %vm1147_vm10 }
 0x2df   :  { %v1115_v11 = vsel %vm1112_vm8, %v1114_v0, %v1110_v51  ;;  %v1129_v19 = vsel %vm1128_vm7, %v2587_v40, %v1125_v62  ;;  %v1143_v31 = vsub.f32 1.0, %v1142_v21  ;;  %1516 = vmatpush.msrb.mxu1 %v3503_v39  ;;  %1536 = vmatpush.msrb.mxu2 %v3505_v43  ;;  %v1152_v40 = vand.u32 2147483648, %v3601_v34 }
 0x2e0   :  { %v1134_v59 = vsel %vm1131_vm9, %v1133_v15, %v1129_v19  ;;  %v1157_v49 = vmul.f32 %v2591_v32, %v1115_v11  ;;  %1556 = vmatpush.msrb.mxu3 %v3507_v41  ;;  %v4287_v11 = vld [vmem:[#allocation26_spill] sm:$0xff] }
 0x2e1   :  { %v1156_v14 = vmul.f32 %v1134_v59, %v3398_v25  ;;  %v1144_v30 = vmul.f32 %v2589_v36, %v1143_v31  ;;  %1517 = vmatpush.msrb.mxu1 %v3514_v20  ;;  %1537 = vmatpush.msrb.mxu2 %v3516_v56  ;;  %v1150_v25 = vand.u32 2147483647, %v3601_v34  ;;  %v1153_v51 = vor.u32 1.1754944e-38, %v1152_v40  ;;  %v4289_v31 = vld [vmem:[#allocation28_spill] sm:$0xff] }
 0x2e2   :  { %1557 = vmatpush.msrb.mxu3 %v3518_v54 }
 0x2e3   :  { %v3639_v6 = vadd.f32 %v1157_v49, %v1156_v14  ;;  %v1145_v18 = vadd.f32 %v2589_v36, %v1144_v30  ;;  %1518 = vmatpush.msrb.mxu1 %v3523_v12  ;;  %1538 = vmatpush.msrb.mxu2 %v3525_v57  ;;  %vm1151_vm13 = vcmp.eq.f32.partialorder %v1150_v25, 8.507059e+37 }
 0x2e4   :  { %1558 = vmatpush.msrb.mxu3 %v3529_v8 }
 0x2e5   :  { %2592 = vtanh.f32 %v3639_v6  ;;  %1519 = vmatpush.msrb.mxu1 %v3532_v2  ;;  %1539 = vmatpush.msrb.mxu2 %v3534_v13  ;;  %v1149_v62 = vsel %vm1148_vm12, %v2589_v36, %v1145_v18 }
 0x2e6   :  { %1559 = vmatpush.msrb.mxu3 %v3536_v17  ;;  %v1154_v34 = vsel %vm1151_vm13, %v1153_v51, %v1149_v62 }
 0x2e7   :  { %1520 = vmatpush.msrb.mxu1 %v3541_v33  ;;  %1540 = vmatpush.msrb.mxu2 %v3543_v7 }
 0x2e8   :  { %1560 = vmatpush.msrb.mxu3 %v3545_v27 }
 0x2e9   :  { %1521 = vmatpush.msrb.mxu1 %v3551_v24  ;;  %1541 = vmatpush.msrb.mxu2 %v3553_v60 }
 0x2ea   :  { %1561 = vmatpush.msrb.mxu3 %v3555_v42 }
 0x2eb   :  { %v2593_v15 = vpop.eup %2592  ;;  %1522 = vmatpush.msrb.mxu1 %v3560_v23  ;;  %1542 = vmatpush.msrb.mxu2 %v3562_v58 }
 0x2ec   :  { %v1160_v19 = vmul.f32 %v2593_v15, %v1154_v34  ;;  %1562 = vmatpush.msrb.mxu3 %v3564_v22 }
 0x2ed   :  { %1523 = vmatpush.msrb.mxu1 %v3573_v55  ;;  %1543 = vmatpush.msrb.mxu2 %v3575_v26 }
 0x2ee   :  { %v1162_v14 = vrot.slane %v1160_v19, 1  ;;  %v1163_v28 = vrot.slane %v1160_v19, 2  ;;  %v1164_v36 = vrot.slane %v1160_v19, 3  ;;  %1176 = vst [vmem:[%s4256_s8 + $0x2] sm:$0x1] %v1160_v19  ;;  %1268 = vmatmul.f32.vlgmr.msrb.gmra.mxu0 %v1160_v19  ;;  %1288 = vmatmul.f32.vlgmr.msra.gmra.mxu1 %v1160_v19  ;;  %v1165_v53 = vrot.slane %v1160_v19, 4 }
 0x2ef   :  { %1308 = vmatmul.f32.vlgmr.msra.gmra.mxu2 %v1160_v19  ;;  %1328 = vmatmul.f32.vlgmr.msra.gmra.mxu3 %v1160_v19  ;;  %v1166_v0 = vrot.slane %v1160_v19, 5  ;;  %v1167_v21 = vrot.slane %v1160_v19, 6  ;;  %v1168_v32 = vrot.slane %v1160_v19, 7 }
 0x2f0   :  { %1177 = vst [vmem:[%s4256_s8 + $0xa] sm:$0x1] %v1162_v14  ;;  %1563 = vmatpush.msrb.mxu3 %v3577_v61  ;;  %1524 = vmatpush.msrb.mxu1 %v3584_v5 }
 0x2f1   :  { %1178 = vst [vmem:[%s4256_s8 + $0x12] sm:$0x1] %v1163_v28  ;;  %1544 = vmatpush.msrb.mxu2 %v3586_v35 }
 0x2f2   :  { %1179 = vst [vmem:[%s4256_s8 + $0x1a] sm:$0x1] %v1164_v36  ;;  %1564 = vmatpush.msrb.mxu3 %v3588_v44  ;;  %1525 = vmatpush.msrb.mxu1 %v3593_v46 }
 0x2f3   :  { %1180 = vst [vmem:[%s4256_s8 + $0x22] sm:$0x1] %v1165_v53  ;;  %1545 = vmatpush.msrb.mxu2 %v3595_v16 }
 0x2f4   :  { %1181 = vst [vmem:[%s4256_s8 + $0x2a] sm:$0x1] %v1166_v0  ;;  %1565 = vmatpush.msrb.mxu3 %v3597_v48  ;;  %1748 = vmatpush.msra.mxu1 %v3449_v4  ;;  %v4288_v4 = vld [vmem:[#allocation27_spill] sm:$0xff] }
 0x2f5   :  { %1182 = vst [vmem:[%s4256_s8 + $0x32] sm:$0x1] %v1167_v21  ;;  %1768 = vmatpush.msra.mxu2 %v3451_v10  ;;  %v4290_v10 = vld [vmem:[#allocation29_spill] sm:$0xff] }
 0x2f6   :  { %1183 = vst [vmem:[%s4256_s8 + $0x3a] sm:$0x1] %v1168_v32  ;;  %1788 = vmatpush.msra.mxu3 %v3453_v45  ;;  %1749 = vmatpush.msra.mxu1 %v3458_v47  ;;  %v4291_v45 = vld [vmem:[#allocation30_spill] sm:$0xff] }
 0x2f7   :  { %1769 = vmatpush.msra.mxu2 %v3460_v52 }
 0x2f8   :  { %1789 = vmatpush.msra.mxu3 %v3462_v3  ;;  %1750 = vmatpush.msra.mxu1 %v3467_v9  ;;  %v4292_v3 = vld [vmem:[#allocation6_spill] sm:$0xff] }
 0x2f9   :  { %1770 = vmatpush.msra.mxu2 %v3469_v50  ;;  %v4293_v9 = vld [vmem:[#allocation10_spill] sm:$0xff] }
 0x2fa   :  { %1790 = vmatpush.msra.mxu3 %v4287_v11  ;;  %1751 = vmatpush.msra.mxu1 %v3476_v1 }
 0x2fb   :  { %1771 = vmatpush.msra.mxu2 %v4288_v4 }
 0x2fc   :  { %1791 = vmatpush.msra.mxu3 %v4289_v31  ;;  %1752 = vmatpush.msra.mxu1 %v4290_v10 }
 0x2fd   :  { %1772 = vmatpush.msra.mxu2 %v3487_v63  ;;  %v4294_v63 = vld [vmem:[#allocation14_spill] sm:$0xff] }
 0x2fe   :  { %1792 = vmatpush.msra.mxu3 %v4291_v45  ;;  %1753 = vmatpush.msra.mxu1 %v3494_v29 }
 0x2ff   :  { %1773 = vmatpush.msra.mxu2 %v3496_v37 }
 0x300   :  { %1793 = vmatpush.msra.mxu3 %v3498_v38  ;;  %1754 = vmatpush.msra.mxu1 %v3503_v39 }
 0x301   :  { %1774 = vmatpush.msra.mxu2 %v3505_v43 }
 0x302   :  { %1794 = vmatpush.msra.mxu3 %v3507_v41  ;;  %1755 = vmatpush.msra.mxu1 %v3514_v20 }
 0x303   :  { %1775 = vmatpush.msra.mxu2 %v3516_v56  ;;  %v4295_v56 = vld [vmem:[#allocation13_spill] sm:$0xff] }
 0x304   :  { %1795 = vmatpush.msra.mxu3 %v3518_v54  ;;  %1756 = vmatpush.msra.mxu1 %v3523_v12 }
 0x305   :  { %1776 = vmatpush.msra.mxu2 %v3525_v57 }
 0x306   :  { %1796 = vmatpush.msra.mxu3 %v3529_v8  ;;  %1757 = vmatpush.msra.mxu1 %v3532_v2 }
 0x307   :  { %1777 = vmatpush.msra.mxu2 %v3534_v13 }
 0x308   :  { %1797 = vmatpush.msra.mxu3 %v3536_v17  ;;  %1758 = vmatpush.msra.mxu1 %v3541_v33 }
 0x309   :  { %1778 = vmatpush.msra.mxu2 %v3543_v7 }
 0x30a   :  { %1798 = vmatpush.msra.mxu3 %v3545_v27  ;;  %1759 = vmatpush.msra.mxu1 %v3551_v24 }
 0x30b   :  { %1779 = vmatpush.msra.mxu2 %v3553_v60 }
 0x30c   :  { %1799 = vmatpush.msra.mxu3 %v3555_v42  ;;  %1760 = vmatpush.msra.mxu1 %v3560_v23 }
 0x30d   :  { %1780 = vmatpush.msra.mxu2 %v3562_v58 }
 0x30e   :  { %1800 = vmatpush.msra.mxu3 %v3564_v22  ;;  %1761 = vmatpush.msra.mxu1 %v3573_v55 }
 0x30f   :  { %1781 = vmatpush.msra.mxu2 %v3575_v26 }
 0x310   :  { %1801 = vmatpush.msra.mxu3 %v3577_v61  ;;  %1762 = vmatpush.msra.mxu1 %v3584_v5 }
 0x311   :  { %1782 = vmatpush.msra.mxu2 %v3586_v35 }
 0x312   :  { %1802 = vmatpush.msra.mxu3 %v3588_v44  ;;  %1763 = vmatpush.msra.mxu1 %v3593_v46 }
 0x313   :  { %1783 = vmatpush.msra.mxu2 %v3595_v16 }
 0x314   :  { %1803 = vmatpush.msra.mxu3 %v3597_v48 }
 0x36b   :  { %v1269_v47 = vpop.f32.mrf.mxu0  ;;  %v1289_v52 = vpop.f32.mrf.mxu1 }
 0x36c   :  { %v1332_v55 = vadd.f32 %v1269_v47, %v4292_v3  ;;  %v1333_v26 = vadd.f32 %v1289_v52, %v4293_v9  ;;  %v3775_v47 = vld [vmem:[#allocation3 + $0x1e0] sm:$0xff] }
 0x36d   :  { %1728 = vmatpush.msrb.mxu0 %v3775_v47  ;;  %v3778_v52 = vld [vmem:[#allocation3 + $0x1c0] sm:$0xff] }
 0x36e   :  { %v2517_v50 = vmul.f32 -1.442695, %v1332_v55  ;;  %v2518_v61 = vmul.f32 -1.442695, %v1333_v26  ;;  %v3781_v3 = vld [vmem:[#allocation3 + $0x1a0] sm:$0xff] }
 0x36f   :  { %1729 = vmatpush.msrb.mxu0 %v3778_v52  ;;  %v3784_v55 = vld [vmem:[#allocation3 + $0x180] sm:$0xff] }
 0x370   :  { %2594 = vpow2.f32 %v2517_v50  ;;  %v3787_v9 = vld [vmem:[#allocation3 + $0x160] sm:$0xff] }
 0x371   :  { %2596 = vpow2.f32 %v2518_v61  ;;  %1730 = vmatpush.msrb.mxu0 %v3781_v3  ;;  %v3790_v26 = vld [vmem:[#allocation3 + $0x140] sm:$0xff] }
 0x372   :  { %v1329_v1 = vpop.f32.mrf.mxu3  ;;  %v1309_v48 = vpop.f32.mrf.mxu2  ;;  %v3793_v50 = vld [vmem:[#allocation3 + $0x120] sm:$0xff] }
 0x373   :  { %v1335_v29 = vadd.f32 %v1329_v1, %v4294_v63  ;;  %v1334_v54 = vadd.f32 %v1309_v48, %v4295_v56  ;;  %1731 = vmatpush.msrb.mxu0 %v3784_v55  ;;  %v4296_v63 = vld [vmem:[#allocation7_spill] sm:$0xff]  ;;  %v3801_v48 = vld [vmem:[#allocation3 + $0xe0] sm:$0xff]  ;;  %v4298_v56 = vld [vmem:[#allocation17_spill] sm:$0xff] }
 0x375   :  { %v2519_v37 = vmul.f32 -1.442695, %v1335_v29  ;;  %1732 = vmatpush.msrb.mxu0 %v3787_v9 }
 0x376   :  { %v2595_v38 = vpop.eup %2594 }
 0x377   :  { %v2597_v46 = vpop.eup %2596  ;;  %v1339_v39 = vadd.f32 1.0, %v2595_v38  ;;  %2598 = vpow2.f32 %v2519_v37  ;;  %1733 = vmatpush.msrb.mxu0 %v3790_v26  ;;  %v4297_v37 = vld [vmem:[#allocation12_spill] sm:$0xff] }
 0x378   :  { %v1358_v16 = vadd.f32 1.0, %v2597_v46  ;;  %v3798_v46 = vld [vmem:[#allocation3 + $0x100] sm:$0xff] }
 0x379   :  { %2600 = vrcp.f32 %v1339_v39  ;;  %v1351_v17 = vand.u32 2147483648, %v1339_v39  ;;  %v1349_v27 = vand.u32 2147483647, %v1339_v39  ;;  %vm1345_vm0 = vweird.f32 %v1339_v39  ;;  %1734 = vmatpush.msrb.mxu0 %v3793_v50 }
 0x37a   :  { %2602 = vrcp.f32 %v1358_v16  ;;  %v1370_v33 = vand.u32 2147483648, %v1358_v16  ;;  %v1368_v60 = vand.u32 2147483647, %v1358_v16  ;;  %vm1364_vm1 = vweird.f32 %v1358_v16 }
 0x37b   :  { %v1352_v58 = vor.u32 1.1754944e-38, %v1351_v17  ;;  %vm1350_vm4 = vcmp.eq.f32.partialorder %v1349_v27, 8.507059e+37  ;;  %1735 = vmatpush.msrb.mxu0 %v3798_v46  ;;  %v3820_v27 = vld [vmem:[#allocation3 + $0x20] sm:$0xff] }
 0x37c   :  { %v1371_v35 = vor.u32 1.1754944e-38, %v1370_v33  ;;  %vm1369_vm5 = vcmp.eq.f32.partialorder %v1368_v60, 8.507059e+37  ;;  %v3823_v60 = vld [vmem:[#allocation3] sm:$0xff] }
 0x37d   :  { %v2599_v43 = vpop.eup %2598  ;;  %1736 = vmatpush.msrb.mxu0 %v3801_v48 }
 0x37e   :  { %v1378_v41 = vadd.f32 1.0, %v2599_v43  ;;  %v3804_v43 = vld [vmem:[#allocation3 + $0xc0] sm:$0xff] }
 0x37f   :  { %v2601_v20 = vpop.eup %2600  ;;  %1737 = vmatpush.msrb.mxu0 %v3804_v43 }
 0x380   :  { %v2603_v12 = vpop.eup %2602  ;;  %v1341_v57 = vmul.f32 %v2601_v20, %v1339_v39  ;;  %2604 = vrcp.f32 %v1378_v41  ;;  %vm1346_vm14 = vweird.f32 %v2601_v20  ;;  %v1390_v19 = vand.u32 2147483648, %v1378_v41 }
 0x381   :  { %v1360_v8 = vmul.f32 %v2603_v12, %v1358_v16  ;;  %2606 = vtanh.f32 %v1334_v54  ;;  %vm1365_vm15 = vweird.f32 %v2603_v12  ;;  %vm1347_vm2 = vmor %vm1345_vm0, %vm1346_vm14  ;;  %vm1384_vm7 = vweird.f32 %v1378_v41 }
 0x382   :  { %v1342_v2 = vsub.f32 1.0, %v1341_v57  ;;  %vm1366_vm3 = vmor %vm1364_vm1, %vm1365_vm15  ;;  %v1388_v14 = vand.u32 2147483647, %v1378_v41  ;;  %v1391_v36 = vor.u32 1.1754944e-38, %v1390_v19 }
 0x383   :  { %v1361_v13 = vsub.f32 1.0, %v1360_v8 }
 0x384   :  { %v1343_v7 = vmul.f32 %v2601_v20, %v1342_v2  ;;  %vm1389_vm9 = vcmp.eq.f32.partialorder %v1388_v14, 8.507059e+37  ;;  %v3814_v2 = vld [vmem:[#allocation3 + $0x60] sm:$0xff] }
 0x385   :  { %v1362_v24 = vmul.f32 %v2603_v12, %v1361_v13 }
 0x386   :  { %v2605_v42 = vpop.eup %2604  ;;  %v1344_v23 = vadd.f32 %v2601_v20, %v1343_v7  ;;  %v3817_v7 = vld [vmem:[#allocation3 + $0x40] sm:$0xff] }
 0x387   :  { %v1363_v22 = vadd.f32 %v2603_v12, %v1362_v24  ;;  %v1380_v5 = vmul.f32 %v2605_v42, %v1378_v41  ;;  %v2607_v59 = vpop.eup %2606  ;;  %vm1385_vm6 = vweird.f32 %v2605_v42 }
 0x388   :  { %v1348_v44 = vsel %vm1347_vm2, %v2601_v20, %v1344_v23  ;;  %vm1386_vm8 = vmor %vm1384_vm7, %vm1385_vm6  ;;  %v3807_v20 = vld [vmem:[#allocation3 + $0xa0] sm:$0xff] }
 0x389   :  { %v1353_v49 = vsel %vm1350_vm4, %v1352_v58, %v1348_v44  ;;  %v1367_v30 = vsel %vm1366_vm3, %v2603_v12, %v1363_v22  ;;  %v1381_v18 = vsub.f32 1.0, %v1380_v5  ;;  %1738 = vmatpush.msrb.mxu0 %v3807_v20  ;;  %v3811_v12 = vld [vmem:[#allocation3 + $0x80] sm:$0xff]  ;;  %v4299_v22 = vld [vmem:[#allocation16_spill] sm:$0xff] }
 0x38a   :  { %v1372_v40 = vsel %vm1369_vm5, %v1371_v35, %v1367_v30  ;;  %v1395_v25 = vmul.f32 %v2607_v59, %v1353_v49 }
 0x38b   :  { %v1394_v62 = vmul.f32 %v1372_v40, %v3639_v6  ;;  %v1382_v51 = vmul.f32 %v2605_v42, %v1381_v18  ;;  %1739 = vmatpush.msrb.mxu0 %v3811_v12 }
 0x38d   :  { %v3748_v15 = vadd.f32 %v1395_v25, %v1394_v62  ;;  %v1383_v34 = vadd.f32 %v2605_v42, %v1382_v51  ;;  %1740 = vmatpush.msrb.mxu0 %v3814_v2 }
 0x38f   :  { %2608 = vtanh.f32 %v3748_v15  ;;  %v1387_v28 = vsel %vm1386_vm8, %v2605_v42, %v1383_v34  ;;  %1741 = vmatpush.msrb.mxu0 %v3817_v7 }
 0x390   :  { %v1392_v0 = vsel %vm1389_vm9, %v1391_v36, %v1387_v28 }
 0x391   :  { %1742 = vmatpush.msrb.mxu0 %v3820_v27 }
 0x393   :  { %1743 = vmatpush.msrb.mxu0 %v3823_v60 }
 0x395   :  { %v2609_v53 = vpop.eup %2608 }
 0x396   :  { %v1398_v21 = vmul.f32 %v2609_v53, %v1392_v0 }
 0x398   :  { %v1400_v32 = vrot.slane %v1398_v21, 1  ;;  %v1401_v11 = vrot.slane %v1398_v21, 2  ;;  %v1402_v6 = vrot.slane %v1398_v21, 3  ;;  %1414 = vst [vmem:[%s4256_s8 + $0x3] sm:$0x1] %v1398_v21  ;;  %1506 = vmatmul.f32.vlgmr.msra.gmra.mxu0 %v1398_v21  ;;  %1526 = vmatmul.f32.vlgmr.msrb.gmra.mxu1 %v1398_v21  ;;  %v1403_v4 = vrot.slane %v1398_v21, 4 }
 0x399   :  { %1546 = vmatmul.f32.vlgmr.msrb.gmra.mxu2 %v1398_v21  ;;  %1566 = vmatmul.f32.vlgmr.msrb.gmra.mxu3 %v1398_v21  ;;  %v1404_v31 = vrot.slane %v1398_v21, 5  ;;  %v1405_v10 = vrot.slane %v1398_v21, 6  ;;  %v1406_v45 = vrot.slane %v1398_v21, 7 }
 0x39a   :  { %1415 = vst [vmem:[%s4256_s8 + $0xb] sm:$0x1] %v1400_v32  ;;  %1966 = vmatpush.msra.mxu0 %v3775_v47 }
 0x39b   :  { %1416 = vst [vmem:[%s4256_s8 + $0x13] sm:$0x1] %v1401_v11 }
 0x39c   :  { %1417 = vst [vmem:[%s4256_s8 + $0x1b] sm:$0x1] %v1402_v6  ;;  %1967 = vmatpush.msra.mxu0 %v3778_v52 }
 0x39d   :  { %1418 = vst [vmem:[%s4256_s8 + $0x23] sm:$0x1] %v1403_v4 }
 0x39e   :  { %1419 = vst [vmem:[%s4256_s8 + $0x2b] sm:$0x1] %v1404_v31  ;;  %1968 = vmatpush.msra.mxu0 %v3781_v3 }
 0x39f   :  { %1420 = vst [vmem:[%s4256_s8 + $0x33] sm:$0x1] %v1405_v10 }
 0x3a0   :  { %1421 = vst [vmem:[%s4256_s8 + $0x3b] sm:$0x1] %v1406_v45  ;;  %1969 = vmatpush.msra.mxu0 %v3784_v55 }
 0x3a2   :  { %1970 = vmatpush.msra.mxu0 %v3787_v9 }
 0x3a4   :  { %1971 = vmatpush.msra.mxu0 %v3790_v26 }
 0x3a6   :  { %1972 = vmatpush.msra.mxu0 %v3793_v50 }
 0x3a8   :  { %1973 = vmatpush.msra.mxu0 %v3798_v46 }
 0x3aa   :  { %1974 = vmatpush.msra.mxu0 %v3801_v48 }
 0x3ac   :  { %1975 = vmatpush.msra.mxu0 %v3804_v43 }
 0x3ae   :  { %1976 = vmatpush.msra.mxu0 %v3807_v20 }
 0x3b0   :  { %1977 = vmatpush.msra.mxu0 %v3811_v12 }
 0x3b2   :  { %1978 = vmatpush.msra.mxu0 %v3814_v2 }
 0x3b4   :  { %1979 = vmatpush.msra.mxu0 %v3817_v7 }
 0x3b6   :  { %1980 = vmatpush.msra.mxu0 %v3820_v27 }
 0x3b8   :  { %1981 = vmatpush.msra.mxu0 %v3823_v60 }
 0x415   :  { %v1507_v61 = vpop.f32.mrf.mxu0  ;;  %v1527_v1 = vpop.f32.mrf.mxu1 }
 0x416   :  { %v1570_v29 = vadd.f32 %v1507_v61, %v4296_v63  ;;  %v1571_v38 = vadd.f32 %v1527_v1, %v4297_v37 }
 0x418   :  { %v2520_v39 = vmul.f32 -1.442695, %v1570_v29  ;;  %v2521_v16 = vmul.f32 -1.442695, %v1571_v38 }
 0x41a   :  { %2610 = vpow2.f32 %v2520_v39 }
 0x41b   :  { %2612 = vpow2.f32 %v2521_v16 }
 0x41c   :  { %v1567_v41 = vpop.f32.mrf.mxu3  ;;  %v1547_v24 = vpop.f32.mrf.mxu2 }
 0x41d   :  { %v1573_v54 = vadd.f32 %v1567_v41, %v4298_v56  ;;  %v1572_v5 = vadd.f32 %v1547_v24, %v4299_v22  ;;  %v3932_v24 = vld [vmem:[#allocation3 + $0x148] sm:$0xff]  ;;  %v3945_v22 = vld [vmem:[#allocation3 + $0x138] sm:$0xff] }
 0x41f   :  { %v2522_v57 = vmul.f32 -1.442695, %v1573_v54 }
 0x420   :  { %v2611_v8 = vpop.eup %2610 }
 0x421   :  { %v2613_v13 = vpop.eup %2612  ;;  %v1577_v17 = vadd.f32 1.0, %v2611_v8  ;;  %2614 = vpow2.f32 %v2522_v57 }
 0x422   :  { %v1596_v33 = vadd.f32 1.0, %v2613_v13 }
 0x423   :  { %2616 = vrcp.f32 %v1577_v17  ;;  %v1589_v18 = vand.u32 2147483648, %v1577_v17  ;;  %v1587_v62 = vand.u32 2147483647, %v1577_v17  ;;  %vm1583_vm12 = vweird.f32 %v1577_v17 }
 0x424   :  { %2618 = vrcp.f32 %v1596_v33  ;;  %v1608_v40 = vand.u32 2147483648, %v1596_v33  ;;  %v1606_v34 = vand.u32 2147483647, %v1596_v33  ;;  %vm1602_vm13 = vweird.f32 %v1596_v33 }
 0x425   :  { %v1590_v28 = vor.u32 1.1754944e-38, %v1589_v18  ;;  %vm1588_vm0 = vcmp.eq.f32.partialorder %v1587_v62, 8.507059e+37  ;;  %v3952_v18 = vld [vmem:[#allocation3 + $0x108] sm:$0xff] }
 0x426   :  { %v1609_v0 = vor.u32 1.1754944e-38, %v1608_v40  ;;  %vm1607_vm1 = vcmp.eq.f32.partialorder %v1606_v34, 8.507059e+37  ;;  %v3954_v40 = vld [vmem:[#allocation3 + $0x110] sm:$0xff]  ;;  %v3961_v34 = vld [vmem:[#allocation3 + $0xe8] sm:$0xff] }
 0x427   :  { %v2615_v42 = vpop.eup %2614 }
 0x428   :  { %v1616_v23 = vadd.f32 1.0, %v2615_v42  ;;  %v3936_v42 = vld [vmem:[#allocation3 + $0x158] sm:$0xff] }
 0x429   :  { %v2617_v58 = vpop.eup %2616 }
 0x42a   :  { %v2619_v35 = vpop.eup %2618  ;;  %v1579_v44 = vmul.f32 %v2617_v58, %v1577_v17  ;;  %2620 = vrcp.f32 %v1616_v23  ;;  %vm1584_vm10 = vweird.f32 %v2617_v58  ;;  %v1628_v29 = vand.u32 2147483648, %v1616_v23 }
 0x42b   :  { %v1598_v59 = vmul.f32 %v2619_v35, %v1596_v33  ;;  %2622 = vtanh.f32 %v1572_v5  ;;  %vm1603_vm11 = vweird.f32 %v2619_v35  ;;  %vm1585_vm14 = vmor %vm1583_vm12, %vm1584_vm10  ;;  %vm1622_vm3 = vweird.f32 %v1616_v23 }
 0x42c   :  { %v1580_v49 = vsub.f32 1.0, %v1579_v44  ;;  %vm1604_vm15 = vmor %vm1602_vm13, %vm1603_vm11  ;;  %v1626_v37 = vand.u32 2147483647, %v1616_v23  ;;  %v4300_v44 = vld [vmem:[#allocation8_spill] sm:$0xff] }
 0x42d   :  { %v1599_v30 = vsub.f32 1.0, %v1598_v59 }
 0x42e   :  { %v1581_v25 = vmul.f32 %v2617_v58, %v1580_v49  ;;  %vm1627_vm5 = vcmp.eq.f32.partialorder %v1626_v37, 8.507059e+37  ;;  %v4301_v49 = vld [vmem:[#allocation15_spill] sm:$0xff]  ;;  %v4000_v37 = vld [vmem:[#allocation3 + $0x70] sm:$0xff] }
 0x42f   :  { %v1600_v51 = vmul.f32 %v2619_v35, %v1599_v30 }
 0x430   :  { %v2621_v19 = vpop.eup %2620  ;;  %v1582_v14 = vadd.f32 %v2617_v58, %v1581_v25  ;;  %v3956_v25 = vld [vmem:[#allocation3 + $0x118] sm:$0xff] }
 0x431   :  { %v1601_v36 = vadd.f32 %v2619_v35, %v1600_v51  ;;  %v1618_v53 = vmul.f32 %v2621_v19, %v1616_v23  ;;  %v2623_v32 = vpop.eup %2622  ;;  %vm1623_vm2 = vweird.f32 %v2621_v19  ;;  %v3941_v23 = vld [vmem:[#allocation3 + $0x128] sm:$0xff] }
 0x432   :  { %v1586_v21 = vsel %vm1585_vm14, %v2617_v58, %v1582_v14  ;;  %vm1624_vm4 = vmor %vm1622_vm3, %vm1623_vm2  ;;  %v3943_v58 = vld [vmem:[#allocation3 + $0x130] sm:$0xff]  ;;  %v3967_v14 = vld [vmem:[#allocation3 + $0xf8] sm:$0xff] }
 0x433   :  { %v1591_v11 = vsel %vm1588_vm0, %v1590_v28, %v1586_v21  ;;  %v1605_v6 = vsel %vm1604_vm15, %v2619_v35, %v1601_v36  ;;  %v1619_v4 = vsub.f32 1.0, %v1618_v53  ;;  %v3970_v28 = vld [vmem:[#allocation3 + $0xc8] sm:$0xff]  ;;  %v3972_v36 = vld [vmem:[#allocation3 + $0xd0] sm:$0xff]  ;;  %v3974_v53 = vld [vmem:[#allocation3 + $0xd8] sm:$0xff] }
 0x434   :  { %v1610_v31 = vsel %vm1607_vm1, %v1609_v0, %v1605_v6  ;;  %v1633_v10 = vmul.f32 %v2623_v32, %v1591_v11  ;;  %v3979_v21 = vld [vmem:[#allocation3 + $0xa8] sm:$0xff]  ;;  %v3981_v32 = vld [vmem:[#allocation3 + $0xb0] sm:$0xff]  ;;  %v3983_v11 = vld [vmem:[#allocation3 + $0xb8] sm:$0xff] }
 0x435   :  { %v1632_v45 = vmul.f32 %v1610_v31, %v3748_v15  ;;  %v1620_v61 = vmul.f32 %v2621_v19, %v1619_v4  ;;  %v1629_v15 = vor.u32 1.1754944e-38, %v1628_v29  ;;  %v4302_v6 = vld [vmem:[#allocation20_spill] sm:$0xff]  ;;  %v3989_v31 = vld [vmem:[#allocation3 + $0x88] sm:$0xff] }
 0x436   :  { %v3998_v29 = vld [vmem:[#allocation3 + $0x68] sm:$0xff] }
 0x437   :  { %v3836_v1 = vadd.f32 %v1633_v10, %v1632_v45  ;;  %v1621_v63 = vadd.f32 %v2621_v19, %v1620_v61  ;;  %v3991_v10 = vld [vmem:[#allocation3 + $0x90] sm:$0xff]  ;;  %v3993_v45 = vld [vmem:[#allocation3 + $0x98] sm:$0xff] }
 0x439   :  { %2624 = vtanh.f32 %v3836_v1  ;;  %v1625_v38 = vsel %vm1624_vm4, %v2621_v19, %v1621_v63  ;;  %v3963_v19 = vld [vmem:[#allocation3 + $0xf0] sm:$0xff] }
 0x43a   :  { %v1630_v16 = vsel %vm1627_vm5, %v1629_v15, %v1625_v38  ;;  %v4002_v38 = vld [vmem:[#allocation3 + $0x78] sm:$0xff] }
 0x43f   :  { %v2625_v39 = vpop.eup %2624 }
 0x440   :  { %v1636_v41 = vmul.f32 %v2625_v39, %v1630_v16 }
 0x442   :  { %v1638_v56 = vrot.slane %v1636_v41, 1  ;;  %v1639_v54 = vrot.slane %v1636_v41, 2  ;;  %v1640_v57 = vrot.slane %v1636_v41, 3  ;;  %1652 = vst [vmem:[%s4256_s8 + $0x4] sm:$0x1] %v1636_v41  ;;  %1744 = vmatmul.f32.vlgmr.msrb.gmra.mxu0 %v1636_v41  ;;  %1764 = vmatmul.f32.vlgmr.msra.gmra.mxu1 %v1636_v41  ;;  %v1641_v8 = vrot.slane %v1636_v41, 4 }
 0x443   :  { %1784 = vmatmul.f32.vlgmr.msra.gmra.mxu2 %v1636_v41  ;;  %1804 = vmatmul.f32.vlgmr.msra.gmra.mxu3 %v1636_v41  ;;  %v1642_v13 = vrot.slane %v1636_v41, 5  ;;  %v1643_v17 = vrot.slane %v1636_v41, 6  ;;  %v1644_v33 = vrot.slane %v1636_v41, 7  ;;  %v4011_v41 = vld [vmem:[#allocation3 + $0x48] sm:$0xff] }
 0x444   :  { %1653 = vst [vmem:[%s4256_s8 + $0xc] sm:$0x1] %v1638_v56  ;;  %2204 = vmatpush.msrb.mxu0 %v3775_v47  ;;  %v3887_v47 = vld [vmem:[#allocation3 + $0x1e8] sm:$0xff]  ;;  %v4013_v56 = vld [vmem:[#allocation3 + $0x50] sm:$0xff] }
 0x445   :  { %1654 = vst [vmem:[%s4256_s8 + $0x14] sm:$0x1] %v1639_v54  ;;  %1986 = vmatpush.msrb.mxu1 %v3887_v47  ;;  %v4015_v54 = vld [vmem:[#allocation3 + $0x58] sm:$0xff] }
 0x446   :  { %1655 = vst [vmem:[%s4256_s8 + $0x1c] sm:$0x1] %v1640_v57  ;;  %2205 = vmatpush.msrb.mxu0 %v3778_v52  ;;  %v3889_v52 = vld [vmem:[#allocation3 + $0x1f0] sm:$0xff]  ;;  %v4022_v57 = vld [vmem:[#allocation3 + $0x28] sm:$0xff] }
 0x447   :  { %1656 = vst [vmem:[%s4256_s8 + $0x24] sm:$0x1] %v1641_v8  ;;  %2006 = vmatpush.msrb.mxu2 %v3889_v52  ;;  %v4024_v8 = vld [vmem:[#allocation3 + $0x30] sm:$0xff] }
 0x448   :  { %1657 = vst [vmem:[%s4256_s8 + $0x2c] sm:$0x1] %v1642_v13  ;;  %2206 = vmatpush.msrb.mxu0 %v3781_v3  ;;  %v3891_v3 = vld [vmem:[#allocation3 + $0x1f8] sm:$0xff] }
 0x449   :  { %1658 = vst [vmem:[%s4256_s8 + $0x34] sm:$0x1] %v1643_v17  ;;  %2026 = vmatpush.msrb.mxu3 %v3891_v3  ;;  %v4026_v13 = vld [vmem:[#allocation3 + $0x38] sm:$0xff] }
 0x44a   :  { %1659 = vst [vmem:[%s4256_s8 + $0x3c] sm:$0x1] %v1644_v33  ;;  %2207 = vmatpush.msrb.mxu0 %v3784_v55  ;;  %v3896_v55 = vld [vmem:[#allocation3 + $0x1c8] sm:$0xff] }
 0x44b   :  { %1987 = vmatpush.msrb.mxu1 %v3896_v55  ;;  %v4031_v33 = vld [vmem:[#allocation3 + $0x8] sm:$0xff] }
 0x44c   :  { %2208 = vmatpush.msrb.mxu0 %v3787_v9  ;;  %v3898_v9 = vld [vmem:[#allocation3 + $0x1d0] sm:$0xff] }
 0x44d   :  { %2007 = vmatpush.msrb.mxu2 %v3898_v9 }
 0x44e   :  { %2209 = vmatpush.msrb.mxu0 %v3790_v26  ;;  %v3900_v26 = vld [vmem:[#allocation3 + $0x1d8] sm:$0xff] }
 0x44f   :  { %2027 = vmatpush.msrb.mxu3 %v3900_v26 }
 0x450   :  { %2210 = vmatpush.msrb.mxu0 %v3793_v50  ;;  %v3905_v50 = vld [vmem:[#allocation3 + $0x1a8] sm:$0xff] }
 0x451   :  { %1988 = vmatpush.msrb.mxu1 %v3905_v50 }
 0x452   :  { %2211 = vmatpush.msrb.mxu0 %v3798_v46  ;;  %v3907_v46 = vld [vmem:[#allocation3 + $0x1b0] sm:$0xff] }
 0x453   :  { %2008 = vmatpush.msrb.mxu2 %v3907_v46 }
 0x454   :  { %2212 = vmatpush.msrb.mxu0 %v3801_v48  ;;  %v3909_v48 = vld [vmem:[#allocation3 + $0x1b8] sm:$0xff] }
 0x455   :  { %2028 = vmatpush.msrb.mxu3 %v3909_v48 }
 0x456   :  { %2213 = vmatpush.msrb.mxu0 %v3804_v43  ;;  %v3914_v43 = vld [vmem:[#allocation3 + $0x188] sm:$0xff] }
 0x457   :  { %1989 = vmatpush.msrb.mxu1 %v3914_v43 }
 0x458   :  { %2214 = vmatpush.msrb.mxu0 %v3807_v20  ;;  %v3916_v20 = vld [vmem:[#allocation3 + $0x190] sm:$0xff] }
 0x459   :  { %2009 = vmatpush.msrb.mxu2 %v3916_v20 }
 0x45a   :  { %2215 = vmatpush.msrb.mxu0 %v3811_v12  ;;  %v3918_v12 = vld [vmem:[#allocation3 + $0x198] sm:$0xff] }
 0x45b   :  { %2029 = vmatpush.msrb.mxu3 %v3918_v12 }
 0x45c   :  { %2216 = vmatpush.msrb.mxu0 %v3814_v2  ;;  %v3923_v2 = vld [vmem:[#allocation3 + $0x168] sm:$0xff] }
 0x45d   :  { %1990 = vmatpush.msrb.mxu1 %v3923_v2 }
 0x45e   :  { %2217 = vmatpush.msrb.mxu0 %v3817_v7  ;;  %v3925_v7 = vld [vmem:[#allocation3 + $0x170] sm:$0xff] }
 0x45f   :  { %2010 = vmatpush.msrb.mxu2 %v3925_v7  ;;  %1991 = vmatpush.msrb.mxu1 %v3932_v24 }
 0x460   :  { %2218 = vmatpush.msrb.mxu0 %v3820_v27  ;;  %v3927_v27 = vld [vmem:[#allocation3 + $0x178] sm:$0xff] }
 0x461   :  { %2030 = vmatpush.msrb.mxu3 %v3927_v27  ;;  %1992 = vmatpush.msrb.mxu1 %v3941_v23 }
 0x462   :  { %2219 = vmatpush.msrb.mxu0 %v3823_v60  ;;  %v3934_v60 = vld [vmem:[#allocation3 + $0x150] sm:$0xff] }
 0x463   :  { %2011 = vmatpush.msrb.mxu2 %v3934_v60  ;;  %2031 = vmatpush.msrb.mxu3 %v3936_v42 }
 0x464   :  { %1993 = vmatpush.msrb.mxu1 %v3952_v18 }
 0x465   :  { %2012 = vmatpush.msrb.mxu2 %v3943_v58  ;;  %2032 = vmatpush.msrb.mxu3 %v3945_v22 }
 0x466   :  { %1994 = vmatpush.msrb.mxu1 %v3961_v34 }
 0x467   :  { %2013 = vmatpush.msrb.mxu2 %v3954_v40  ;;  %2033 = vmatpush.msrb.mxu3 %v3956_v25 }
 0x468   :  { %1995 = vmatpush.msrb.mxu1 %v3970_v28 }
 0x469   :  { %2014 = vmatpush.msrb.mxu2 %v3963_v19  ;;  %2034 = vmatpush.msrb.mxu3 %v3967_v14 }
 0x46a   :  { %1996 = vmatpush.msrb.mxu1 %v3979_v21 }
 0x46b   :  { %2015 = vmatpush.msrb.mxu2 %v3972_v36  ;;  %2035 = vmatpush.msrb.mxu3 %v3974_v53 }
 0x46c   :  { %1997 = vmatpush.msrb.mxu1 %v3989_v31 }
 0x46d   :  { %2016 = vmatpush.msrb.mxu2 %v3981_v32  ;;  %2036 = vmatpush.msrb.mxu3 %v3983_v11 }
 0x46e   :  { %1998 = vmatpush.msrb.mxu1 %v3998_v29 }
 0x46f   :  { %2017 = vmatpush.msrb.mxu2 %v3991_v10  ;;  %2037 = vmatpush.msrb.mxu3 %v3993_v45 }
 0x470   :  { %1999 = vmatpush.msrb.mxu1 %v4011_v41 }
 0x471   :  { %2018 = vmatpush.msrb.mxu2 %v4000_v37  ;;  %2038 = vmatpush.msrb.mxu3 %v4002_v38 }
 0x472   :  { %2000 = vmatpush.msrb.mxu1 %v4022_v57 }
 0x473   :  { %2019 = vmatpush.msrb.mxu2 %v4013_v56  ;;  %2039 = vmatpush.msrb.mxu3 %v4015_v54 }
 0x474   :  { %2001 = vmatpush.msrb.mxu1 %v4031_v33 }
 0x475   :  { %2020 = vmatpush.msrb.mxu2 %v4024_v8  ;;  %2040 = vmatpush.msrb.mxu3 %v4026_v13 }
 0x476   :  { %2224 = vmatpush.msra.mxu1 %v3887_v47 }
 0x478   :  { %2225 = vmatpush.msra.mxu1 %v3896_v55 }
 0x47a   :  { %2226 = vmatpush.msra.mxu1 %v3905_v50 }
 0x47c   :  { %2227 = vmatpush.msra.mxu1 %v3914_v43 }
 0x47e   :  { %2228 = vmatpush.msra.mxu1 %v3923_v2 }
 0x480   :  { %2229 = vmatpush.msra.mxu1 %v3932_v24 }
 0x482   :  { %2230 = vmatpush.msra.mxu1 %v3941_v23 }
 0x484   :  { %2231 = vmatpush.msra.mxu1 %v3952_v18 }
 0x486   :  { %2232 = vmatpush.msra.mxu1 %v3961_v34 }
 0x488   :  { %2233 = vmatpush.msra.mxu1 %v3970_v28 }
 0x48a   :  { %2234 = vmatpush.msra.mxu1 %v3979_v21 }
 0x48c   :  { %2235 = vmatpush.msra.mxu1 %v3989_v31 }
 0x48e   :  { %2236 = vmatpush.msra.mxu1 %v3998_v29 }
 0x490   :  { %2237 = vmatpush.msra.mxu1 %v4011_v41  ;;  %v4306_v41 = vld [vmem:[#allocation23_spill] sm:$0xff] }
 0x492   :  { %2238 = vmatpush.msra.mxu1 %v4022_v57 }
 0x494   :  { %2239 = vmatpush.msra.mxu1 %v4031_v33 }
 0x4bf   :  { %v1745_v5 = vpop.f32.mrf.mxu0  ;;  %v1765_v35 = vpop.f32.mrf.mxu1 }
 0x4c0   :  { %v1808_v59 = vadd.f32 %v1745_v5, %v4300_v44  ;;  %v1809_v30 = vadd.f32 %v1765_v35, %v4301_v49  ;;  %v4033_v5 = vld [vmem:[#allocation3 + $0x10] sm:$0xff]  ;;  %v4035_v35 = vld [vmem:[#allocation3 + $0x18] sm:$0xff] }
 0x4c1   :  { %2021 = vmatpush.msrb.mxu2 %v4033_v5  ;;  %2041 = vmatpush.msrb.mxu3 %v4035_v35 }
 0x4c2   :  { %v2523_v62 = vmul.f32 -1.442695, %v1808_v59  ;;  %v2524_v51 = vmul.f32 -1.442695, %v1809_v30  ;;  %v4303_v30 = vld [vmem:[#allocation19_spill] sm:$0xff] }
 0x4c3   :  { %2244 = vmatpush.msra.mxu2 %v3889_v52  ;;  %2264 = vmatpush.msra.mxu3 %v3891_v3 }
 0x4c4   :  { %2626 = vpow2.f32 %v2523_v62 }
 0x4c5   :  { %2628 = vpow2.f32 %v2524_v51  ;;  %2245 = vmatpush.msra.mxu2 %v3898_v9  ;;  %2265 = vmatpush.msra.mxu3 %v3900_v26 }
 0x4c6   :  { %v1805_v0 = vpop.f32.mrf.mxu3  ;;  %v1785_v17 = vpop.f32.mrf.mxu2 }
 0x4c7   :  { %v1811_v4 = vadd.f32 %v1805_v0, %v4302_v6  ;;  %v1810_v62 = vadd.f32 %v1785_v17, %v4303_v30  ;;  %2246 = vmatpush.msra.mxu2 %v3907_v46  ;;  %2266 = vmatpush.msra.mxu3 %v3909_v48  ;;  %v4307_v30 = vld [vmem:[#allocation22_spill] sm:$0xff] }
 0x4c9   :  { %v2525_v61 = vmul.f32 -1.442695, %v1811_v4  ;;  %2247 = vmatpush.msra.mxu2 %v3916_v20  ;;  %2267 = vmatpush.msra.mxu3 %v3918_v12 }
 0x4ca   :  { %v2627_v63 = vpop.eup %2626 }
 0x4cb   :  { %v2629_v15 = vpop.eup %2628  ;;  %v4004_v39 = vadd.f32 1.0, %v2627_v63  ;;  %2630 = vpow2.f32 %v2525_v61  ;;  %2248 = vmatpush.msra.mxu2 %v3925_v7  ;;  %2268 = vmatpush.msra.mxu3 %v3927_v27 }
 0x4cc   :  { %v4008_v16 = vadd.f32 1.0, %v2629_v15 }
 0x4cd   :  { %2632 = vrcp.f32 %v4004_v39  ;;  %v1827_v52 = vand.u32 2147483648, %v4004_v39  ;;  %v1825_v61 = vand.u32 2147483647, %v4004_v39  ;;  %vm1821_vm8 = vweird.f32 %v4004_v39  ;;  %2249 = vmatpush.msra.mxu2 %v3934_v60  ;;  %2269 = vmatpush.msra.mxu3 %v3936_v42 }
 0x4ce   :  { %2634 = vrcp.f32 %v4008_v16  ;;  %v1846_v3 = vand.u32 2147483648, %v4008_v16  ;;  %v1844_v26 = vand.u32 2147483647, %v4008_v16  ;;  %vm1840_vm9 = vweird.f32 %v4008_v16 }
 0x4cf   :  { %v1828_v48 = vor.u32 1.1754944e-38, %v1827_v52  ;;  %vm1826_vm12 = vcmp.eq.f32.partialorder %v1825_v61, 8.507059e+37  ;;  %2250 = vmatpush.msra.mxu2 %v3943_v58  ;;  %2270 = vmatpush.msra.mxu3 %v3945_v22 }
 0x4d0   :  { %v1847_v20 = vor.u32 1.1754944e-38, %v1846_v3  ;;  %vm1845_vm13 = vcmp.eq.f32.partialorder %v1844_v26, 8.507059e+37 }
 0x4d1   :  { %v2631_v44 = vpop.eup %2630  ;;  %2251 = vmatpush.msra.mxu2 %v3954_v40  ;;  %2271 = vmatpush.msra.mxu3 %v3956_v25 }
 0x4d2   :  { %v4039_v59 = vadd.f32 1.0, %v2631_v44 }
 0x4d3   :  { %v2633_v49 = vpop.eup %2632  ;;  %2252 = vmatpush.msra.mxu2 %v3963_v19  ;;  %2272 = vmatpush.msra.mxu3 %v3967_v14 }
 0x4d4   :  { %v2635_v51 = vpop.eup %2634  ;;  %v1817_v0 = vmul.f32 %v2633_v49, %v4004_v39  ;;  %2636 = vrcp.f32 %v4039_v59  ;;  %vm1822_vm6 = vweird.f32 %v2633_v49  ;;  %vm1860_vm15 = vweird.f32 %v4039_v59 }
 0x4d5   :  { %v1836_v6 = vmul.f32 %v2635_v51, %v4008_v16  ;;  %2638 = vtanh.f32 %v1810_v62  ;;  %vm1841_vm7 = vweird.f32 %v2635_v51  ;;  %vm1823_vm10 = vmor %vm1821_vm8, %vm1822_vm6  ;;  %v1864_v42 = vand.u32 2147483647, %v4039_v59  ;;  %2253 = vmatpush.msra.mxu2 %v3972_v36  ;;  %2273 = vmatpush.msra.mxu3 %v3974_v53 }
 0x4d6   :  { %v1818_v47 = vsub.f32 1.0, %v1817_v0  ;;  %vm1842_vm11 = vmor %vm1840_vm9, %vm1841_vm7 }
 0x4d7   :  { %v1837_v4 = vsub.f32 1.0, %v1836_v6  ;;  %2254 = vmatpush.msra.mxu2 %v3981_v32  ;;  %2274 = vmatpush.msra.mxu3 %v3983_v11  ;;  %vm1865_vm1 = vcmp.eq.f32.partialorder %v1864_v42, 8.507059e+37  ;;  %v4304_v11 = vld [vmem:[#allocation9_spill] sm:$0xff] }
 0x4d8   :  { %v1819_v55 = vmul.f32 %v2633_v49, %v1818_v47 }
 0x4d9   :  { %v1838_v9 = vmul.f32 %v2635_v51, %v1837_v4  ;;  %2255 = vmatpush.msra.mxu2 %v3991_v10  ;;  %2275 = vmatpush.msra.mxu3 %v3993_v45  ;;  %v4305_v10 = vld [vmem:[#allocation18_spill] sm:$0xff] }
 0x4da   :  { %v2637_v50 = vpop.eup %2636  ;;  %v1820_v46 = vadd.f32 %v2633_v49, %v1819_v55 }
 0x4db   :  { %v1839_v63 = vadd.f32 %v2635_v51, %v1838_v9  ;;  %v1856_v43 = vmul.f32 %v2637_v50, %v4039_v59  ;;  %v2639_v15 = vpop.eup %2638  ;;  %vm1861_vm14 = vweird.f32 %v2637_v50  ;;  %2256 = vmatpush.msra.mxu2 %v4000_v37  ;;  %2276 = vmatpush.msra.mxu3 %v4002_v38 }
 0x4dc   :  { %v1824_v12 = vsel %vm1823_vm10, %v2633_v49, %v1820_v46  ;;  %vm1862_vm0 = vmor %vm1860_vm15, %vm1861_vm14 }
 0x4dd   :  { %v1829_v2 = vsel %vm1826_vm12, %v1828_v48, %v1824_v12  ;;  %v1843_v39 = vsel %vm1842_vm11, %v2635_v51, %v1839_v63  ;;  %v1857_v16 = vsub.f32 1.0, %v1856_v43  ;;  %2257 = vmatpush.msra.mxu2 %v4013_v56  ;;  %2277 = vmatpush.msra.mxu3 %v4015_v54 }
 0x4de   :  { %v1848_v17 = vsel %vm1845_vm13, %v1847_v20, %v1843_v39  ;;  %v1871_v7 = vmul.f32 %v2639_v15, %v1829_v2 }
 0x4df   :  { %v1870_v27 = vmul.f32 %v1848_v17, %v3836_v1  ;;  %v1858_v44 = vmul.f32 %v2637_v50, %v1857_v16  ;;  %v1866_v1 = vand.u32 2147483648, %v4039_v59  ;;  %2258 = vmatpush.msra.mxu2 %v4024_v8  ;;  %2278 = vmatpush.msra.mxu3 %v4026_v13 }
 0x4e1   :  { %v4077_v24 = vadd.f32 %v1871_v7, %v1870_v27  ;;  %v1859_v60 = vadd.f32 %v2637_v50, %v1858_v44  ;;  %v1867_v58 = vor.u32 1.1754944e-38, %v1866_v1  ;;  %2259 = vmatpush.msra.mxu2 %v4033_v5  ;;  %2279 = vmatpush.msra.mxu3 %v4035_v35 }
 0x4e3   :  { %2640 = vtanh.f32 %v4077_v24  ;;  %v1863_v23 = vsel %vm1862_vm0, %v2637_v50, %v1859_v60 }
 0x4e4   :  { %v1868_v18 = vsel %vm1865_vm1, %v1867_v58, %v1863_v23 }
 0x4e9   :  { %v2641_v22 = vpop.eup %2640 }
 0x4ea   :  { %v1874_v40 = vmul.f32 %v2641_v22, %v1868_v18 }
 0x4ec   :  { %v1876_v25 = vrot.slane %v1874_v40, 1  ;;  %v1877_v34 = vrot.slane %v1874_v40, 2  ;;  %v1878_v19 = vrot.slane %v1874_v40, 3  ;;  %1890 = vst [vmem:[%s4256_s8 + $0x5] sm:$0x1] %v1874_v40  ;;  %1982 = vmatmul.f32.vlgmr.msra.gmra.mxu0 %v1874_v40  ;;  %2002 = vmatmul.f32.vlgmr.msrb.gmra.mxu1 %v1874_v40  ;;  %v1879_v14 = vrot.slane %v1874_v40, 4 }
 0x4ed   :  { %2022 = vmatmul.f32.vlgmr.msrb.gmra.mxu2 %v1874_v40  ;;  %2042 = vmatmul.f32.vlgmr.msrb.gmra.mxu3 %v1874_v40  ;;  %v1880_v28 = vrot.slane %v1874_v40, 5  ;;  %v1881_v36 = vrot.slane %v1874_v40, 6  ;;  %v1882_v53 = vrot.slane %v1874_v40, 7 }
 0x4ee   :  { %1891 = vst [vmem:[%s4256_s8 + $0xd] sm:$0x1] %v1876_v25 }
 0x4ef   :  { %1892 = vst [vmem:[%s4256_s8 + $0x15] sm:$0x1] %v1877_v34 }
 0x4f0   :  { %1893 = vst [vmem:[%s4256_s8 + $0x1d] sm:$0x1] %v1878_v19 }
 0x4f1   :  { %1894 = vst [vmem:[%s4256_s8 + $0x25] sm:$0x1] %v1879_v14 }
 0x4f2   :  { %1895 = vst [vmem:[%s4256_s8 + $0x2d] sm:$0x1] %v1880_v28 }
 0x4f3   :  { %1896 = vst [vmem:[%s4256_s8 + $0x35] sm:$0x1] %v1881_v36 }
 0x4f4   :  { %1897 = vst [vmem:[%s4256_s8 + $0x3d] sm:$0x1] %v1882_v53 }
 0x569   :  { %v1983_v21 = vpop.f32.mrf.mxu0  ;;  %v2003_v32 = vpop.f32.mrf.mxu1 }
 0x56a   :  { %v2046_v31 = vadd.f32 %v1983_v21, %v4304_v11  ;;  %v2047_v45 = vadd.f32 %v2003_v32, %v4305_v10  ;;  %v2389_v21 = vld [vmem:[%s4253_s5 + $0x78] sm:$0xff]  ;;  %v2388_v32 = vld [vmem:[%s4253_s5 + $0x70] sm:$0xff]  ;;  %v2387_v11 = vld [vmem:[%s4253_s5 + $0x68] sm:$0xff] }
 0x56b   :  { %2394 = vmatpush.msra.mxu0 %v2389_v21  ;;  %v2385_v10 = vld [vmem:[%s4253_s5 + $0x58] sm:$0xff] }
 0x56c   :  { %v2526_v29 = vmul.f32 -1.442695, %v2046_v31  ;;  %v2527_v37 = vmul.f32 -1.442695, %v2047_v45  ;;  %v2386_v31 = vld [vmem:[%s4253_s5 + $0x60] sm:$0xff]  ;;  %v2384_v45 = vld [vmem:[%s4253_s5 + $0x50] sm:$0xff] }
 0x56d   :  { %2395 = vmatpush.msra.mxu0 %v2388_v32 }
 0x56e   :  { %2642 = vpow2.f32 %v2526_v29  ;;  %v2383_v29 = vld [vmem:[%s4253_s5 + $0x48] sm:$0xff] }
 0x56f   :  { %2644 = vpow2.f32 %v2527_v37  ;;  %2396 = vmatpush.msra.mxu0 %v2387_v11 }
 0x570   :  { %v2043_v38 = vpop.f32.mrf.mxu3  ;;  %v2023_v5 = vpop.f32.mrf.mxu2 }
 0x571   :  { %v2049_v56 = vadd.f32 %v2043_v38, %v4306_v41  ;;  %v2048_v62 = vadd.f32 %v2023_v5, %v4307_v30  ;;  %2397 = vmatpush.msra.mxu0 %v2386_v31  ;;  %v4308_v41 = vld [vmem:[#allocation11_spill] sm:$0xff]  ;;  %v2381_v5 = vld [vmem:[%s4253_s5 + $0x38] sm:$0xff] }
 0x572   :  { %v4310_v30 = vld [vmem:[#allocation25_spill] sm:$0xff] }
 0x573   :  { %v2528_v54 = vmul.f32 -1.442695, %v2049_v56  ;;  %2398 = vmatpush.msra.mxu0 %v2385_v10 }
 0x574   :  { %v2643_v57 = vpop.eup %2642 }
 0x575   :  { %v2645_v8 = vpop.eup %2644  ;;  %v2053_v13 = vadd.f32 1.0, %v2643_v57  ;;  %2646 = vpow2.f32 %v2528_v54  ;;  %2399 = vmatpush.msra.mxu0 %v2384_v45  ;;  %v4309_v54 = vld [vmem:[#allocation21_spill] sm:$0xff] }
 0x576   :  { %v2072_v33 = vadd.f32 1.0, %v2645_v8  ;;  %v2382_v8 = vld [vmem:[%s4253_s5 + $0x40] sm:$0xff] }
 0x577   :  { %2648 = vrcp.f32 %v2053_v13  ;;  %v2065_v52 = vand.u32 2147483648, %v2053_v13  ;;  %v2063_v61 = vand.u32 2147483647, %v2053_v13  ;;  %vm2059_vm4 = vweird.f32 %v2053_v13  ;;  %2400 = vmatpush.msra.mxu0 %v2383_v29 }
 0x578   :  { %2650 = vrcp.f32 %v2072_v33  ;;  %v2084_v3 = vand.u32 2147483648, %v2072_v33  ;;  %v2082_v26 = vand.u32 2147483647, %v2072_v33  ;;  %vm2078_vm5 = vweird.f32 %v2072_v33 }
 0x579   :  { %v2066_v48 = vor.u32 1.1754944e-38, %v2065_v52  ;;  %vm2064_vm8 = vcmp.eq.f32.partialorder %v2063_v61, 8.507059e+37  ;;  %2401 = vmatpush.msra.mxu0 %v2382_v8  ;;  %v2375_v61 = vld [vmem:[%s4253_s5 + $0x8] sm:$0xff] }
 0x57a   :  { %v2085_v20 = vor.u32 1.1754944e-38, %v2084_v3  ;;  %vm2083_vm9 = vcmp.eq.f32.partialorder %v2082_v26, 8.507059e+37  ;;  %v2374_v26 = vld [vmem:[%s4253_s5] sm:$0xff] }
 0x57b   :  { %v2647_v35 = vpop.eup %2646  ;;  %2402 = vmatpush.msra.mxu0 %v2381_v5  ;;  %v2545_v5 = vld [vmem:[%s4254_s6] ss:$0 sm:$0xff] }
 0x57c   :  { %v2092_v59 = vadd.f32 1.0, %v2647_v35  ;;  %v2380_v35 = vld [vmem:[%s4253_s5 + $0x30] sm:$0xff] }
 0x57d   :  { %v2649_v49 = vpop.eup %2648  ;;  %2403 = vmatpush.msra.mxu0 %v2380_v35 }
 0x57e   :  { %v2651_v51 = vpop.eup %2650  ;;  %v2055_v0 = vmul.f32 %v2649_v49, %v2053_v13  ;;  %2652 = vrcp.f32 %v2092_v59  ;;  %vm2060_vm2 = vweird.f32 %v2649_v49  ;;  %v2104_v42 = vand.u32 2147483648, %v2092_v59 }
 0x57f   :  { %v2074_v6 = vmul.f32 %v2651_v51, %v2072_v33  ;;  %2654 = vtanh.f32 %v2048_v62  ;;  %vm2079_vm3 = vweird.f32 %v2651_v51  ;;  %vm2061_vm6 = vmor %vm2059_vm4, %vm2060_vm2  ;;  %vm2098_vm11 = vweird.f32 %v2092_v59 }
 0x580   :  { %v2056_v47 = vsub.f32 1.0, %v2055_v0  ;;  %vm2080_vm7 = vmor %vm2078_vm5, %vm2079_vm3  ;;  %v2102_v23 = vand.u32 2147483647, %v2092_v59  ;;  %v2105_v22 = vor.u32 1.1754944e-38, %v2104_v42 }
 0x581   :  { %v2075_v4 = vsub.f32 1.0, %v2074_v6 }
 0x582   :  { %v2057_v55 = vmul.f32 %v2649_v49, %v2056_v47  ;;  %vm2103_vm13 = vcmp.eq.f32.partialorder %v2102_v23, 8.507059e+37  ;;  %v2377_v47 = vld [vmem:[%s4253_s5 + $0x18] sm:$0xff] }
 0x583   :  { %v2076_v9 = vmul.f32 %v2651_v51, %v2075_v4 }
 0x584   :  { %v2653_v50 = vpop.eup %2652  ;;  %v2058_v46 = vadd.f32 %v2649_v49, %v2057_v55  ;;  %v2376_v55 = vld [vmem:[%s4253_s5 + $0x10] sm:$0xff] }
 0x585   :  { %v2077_v63 = vadd.f32 %v2651_v51, %v2076_v9  ;;  %v2094_v43 = vmul.f32 %v2653_v50, %v2092_v59  ;;  %v2655_v15 = vpop.eup %2654  ;;  %vm2099_vm10 = vweird.f32 %v2653_v50 }
 0x586   :  { %v2062_v12 = vsel %vm2061_vm6, %v2649_v49, %v2058_v46  ;;  %vm2100_vm12 = vmor %vm2098_vm11, %vm2099_vm10  ;;  %v2379_v49 = vld [vmem:[%s4253_s5 + $0x28] sm:$0xff]  ;;  %vm2441_vm10 = vcmask 15360  }
 0x587   :  { %v2067_v2 = vsel %vm2064_vm8, %v2066_v48, %v2062_v12  ;;  %v2081_v39 = vsel %vm2080_vm7, %v2651_v51, %v2077_v63  ;;  %v2095_v16 = vsub.f32 1.0, %v2094_v43  ;;  %2404 = vmatpush.msra.mxu0 %v2379_v49  ;;  %v2378_v51 = vld [vmem:[%s4253_s5 + $0x20] sm:$0xff]  ;;  %v4311_v63 = vld [vmem:[#allocation24_spill] sm:$0xff] }
 0x588   :  { %v2086_v17 = vsel %vm2083_vm9, %v2085_v20, %v2081_v39  ;;  %v2109_v7 = vmul.f32 %v2655_v15, %v2067_v2 }
 0x589   :  { %v2108_v27 = vmul.f32 %v2086_v17, %v4077_v24  ;;  %v2096_v44 = vmul.f32 %v2653_v50, %v2095_v16  ;;  %2405 = vmatpush.msra.mxu0 %v2378_v51 }
 0x58b   :  { %v4138_v60 = vadd.f32 %v2109_v7, %v2108_v27  ;;  %v2097_v1 = vadd.f32 %v2653_v50, %v2096_v44  ;;  %2406 = vmatpush.msra.mxu0 %v2377_v47 }
 0x58d   :  { %2656 = vtanh.f32 %v4138_v60  ;;  %v2101_v58 = vsel %vm2100_vm12, %v2653_v50, %v2097_v1  ;;  %2407 = vmatpush.msra.mxu0 %v2376_v55 }
 0x58e   :  { %v2106_v40 = vsel %vm2103_vm13, %v2105_v22, %v2101_v58 }
 0x58f   :  { %2408 = vmatpush.msra.mxu0 %v2375_v61 }
 0x591   :  { %2409 = vmatpush.msra.mxu0 %v2374_v26 }
 0x593   :  { %v2657_v18 = vpop.eup %2656 }
 0x594   :  { %v2112_v25 = vmul.f32 %v2657_v18, %v2106_v40 }
 0x596   :  { %v2114_v34 = vrot.slane %v2112_v25, 1  ;;  %v2115_v19 = vrot.slane %v2112_v25, 2  ;;  %v2116_v24 = vrot.slane %v2112_v25, 3  ;;  %2128 = vst [vmem:[%s4256_s8 + $0x6] sm:$0x1] %v2112_v25  ;;  %2220 = vmatmul.f32.vlgmr.msrb.gmra.mxu0 %v2112_v25  ;;  %2240 = vmatmul.f32.vlgmr.msra.gmra.mxu1 %v2112_v25  ;;  %v2117_v14 = vrot.slane %v2112_v25, 4 }
 0x597   :  { %2260 = vmatmul.f32.vlgmr.msra.gmra.mxu2 %v2112_v25  ;;  %2280 = vmatmul.f32.vlgmr.msra.gmra.mxu3 %v2112_v25  ;;  %v2118_v28 = vrot.slane %v2112_v25, 5  ;;  %v2119_v36 = vrot.slane %v2112_v25, 6  ;;  %v2120_v53 = vrot.slane %v2112_v25, 7 }
 0x598   :  { %2129 = vst [vmem:[%s4256_s8 + $0xe] sm:$0x1] %v2114_v34 }
 0x599   :  { %2130 = vst [vmem:[%s4256_s8 + $0x16] sm:$0x1] %v2115_v19 }
 0x59a   :  { %2131 = vst [vmem:[%s4256_s8 + $0x1e] sm:$0x1] %v2116_v24 }
 0x59b   :  { %2132 = vst [vmem:[%s4256_s8 + $0x26] sm:$0x1] %v2117_v14 }
 0x59c   :  { %2133 = vst [vmem:[%s4256_s8 + $0x2e] sm:$0x1] %v2118_v28 }
 0x59d   :  { %2134 = vst [vmem:[%s4256_s8 + $0x36] sm:$0x1] %v2119_v36 }
 0x59e   :  { %2135 = vst [vmem:[%s4256_s8 + $0x3e] sm:$0x1] %v2120_v53 }
 0x613   :  { %v2221_v37 = vpop.f32.mrf.mxu0  ;;  %v2241_v38 = vpop.f32.mrf.mxu1 }
 0x614   :  { %v2284_v56 = vadd.f32 %v2221_v37, %v4308_v41  ;;  %v2285_v57 = vadd.f32 %v2241_v38, %v4309_v54 }
 0x616   :  { %v2529_v13 = vmul.f32 -1.442695, %v2284_v56  ;;  %v2530_v33 = vmul.f32 -1.442695, %v2285_v57 }
 0x618   :  { %2658 = vpow2.f32 %v2529_v13 }
 0x619   :  { %2660 = vpow2.f32 %v2530_v33 }
 0x61a   :  { %v2281_v59 = vpop.f32.mrf.mxu3  ;;  %v2261_v9 = vpop.f32.mrf.mxu2 }
 0x61b   :  { %v2287_v62 = vadd.f32 %v2281_v59, %v4310_v30  ;;  %v2286_v43 = vadd.f32 %v2261_v9, %v4311_v63 }
 0x61d   :  { %v2531_v0 = vmul.f32 -1.442695, %v2287_v62 }
 0x61e   :  { %v2659_v6 = vpop.eup %2658 }
 0x61f   :  { %v2661_v4 = vpop.eup %2660  ;;  %v2291_v52 = vadd.f32 1.0, %v2659_v6  ;;  %2662 = vpow2.f32 %v2531_v0 }
 0x620   :  { %v2310_v3 = vadd.f32 1.0, %v2661_v4 }
 0x621   :  { %2664 = vrcp.f32 %v2291_v52  ;;  %v2303_v16 = vand.u32 2147483648, %v2291_v52  ;;  %v2301_v27 = vand.u32 2147483647, %v2291_v52  ;;  %vm2297_vm0 = vweird.f32 %v2291_v52 }
 0x622   :  { %2666 = vrcp.f32 %v2310_v3  ;;  %v2322_v17 = vand.u32 2147483648, %v2310_v3  ;;  %v2320_v1 = vand.u32 2147483647, %v2310_v3  ;;  %vm2316_vm1 = vweird.f32 %v2310_v3 }
 0x623   :  { %v2304_v58 = vor.u32 1.1754944e-38, %v2303_v16  ;;  %vm2302_vm4 = vcmp.eq.f32.partialorder %v2301_v27, 8.507059e+37 }
 0x624   :  { %v2323_v40 = vor.u32 1.1754944e-38, %v2322_v17  ;;  %vm2321_vm5 = vcmp.eq.f32.partialorder %v2320_v1, 8.507059e+37 }
 0x625   :  { %v2663_v50 = vpop.eup %2662 }
 0x626   :  { %v2330_v46 = vadd.f32 1.0, %v2663_v50 }
 0x627   :  { %v2665_v48 = vpop.eup %2664 }
 0x628   :  { %v2667_v20 = vpop.eup %2666  ;;  %v2293_v12 = vmul.f32 %v2665_v48, %v2291_v52  ;;  %2668 = vrcp.f32 %v2330_v46  ;;  %vm2298_vm14 = vweird.f32 %v2665_v48  ;;  %v2342_v31 = vand.u32 2147483648, %v2330_v46 }
 0x629   :  { %v2312_v15 = vmul.f32 %v2667_v20, %v2310_v3  ;;  %2670 = vtanh.f32 %v2286_v43  ;;  %vm2317_vm15 = vweird.f32 %v2667_v20  ;;  %vm2299_vm2 = vmor %vm2297_vm0, %vm2298_vm14  ;;  %vm2336_vm7 = vweird.f32 %v2330_v46 }
 0x62a   :  { %v2294_v2 = vsub.f32 1.0, %v2293_v12  ;;  %vm2318_vm3 = vmor %vm2316_vm1, %vm2317_vm15  ;;  %v2340_v10 = vand.u32 2147483647, %v2330_v46  ;;  %v2343_v29 = vor.u32 1.1754944e-38, %v2342_v31 }
 0x62b   :  { %v2313_v39 = vsub.f32 1.0, %v2312_v15 }
 0x62c   :  { %v2295_v7 = vmul.f32 %v2665_v48, %v2294_v2  ;;  %vm2341_vm9 = vcmp.eq.f32.partialorder %v2340_v10, 8.507059e+37 }
 0x62d   :  { %v2314_v44 = vmul.f32 %v2667_v20, %v2313_v39 }
 0x62e   :  { %v2669_v42 = vpop.eup %2668  ;;  %v2296_v23 = vadd.f32 %v2665_v48, %v2295_v7 }
 0x62f   :  { %v2315_v22 = vadd.f32 %v2667_v20, %v2314_v44  ;;  %v2332_v18 = vmul.f32 %v2669_v42, %v2330_v46  ;;  %v2671_v34 = vpop.eup %2670  ;;  %vm2337_vm6 = vweird.f32 %v2669_v42 }
 0x630   :  { %v2300_v25 = vsel %vm2299_vm2, %v2665_v48, %v2296_v23  ;;  %vm2338_vm8 = vmor %vm2336_vm7, %vm2337_vm6 }
 0x631   :  { %v2305_v19 = vsel %vm2302_vm4, %v2304_v58, %v2300_v25  ;;  %v2319_v24 = vsel %vm2318_vm3, %v2667_v20, %v2315_v22  ;;  %v2333_v14 = vsub.f32 1.0, %v2332_v18 }
 0x632   :  { %v2324_v28 = vsel %vm2321_vm5, %v2323_v40, %v2319_v24  ;;  %v2347_v36 = vmul.f32 %v2671_v34, %v2305_v19 }
 0x633   :  { %v2346_v53 = vmul.f32 %v2324_v28, %v4138_v60  ;;  %v2334_v21 = vmul.f32 %v2669_v42, %v2333_v14 }
 0x635   :  { %v2348_v32 = vadd.f32 %v2347_v36, %v2346_v53  ;;  %v2335_v11 = vadd.f32 %v2669_v42, %v2334_v21 }
 0x637   :  { %2672 = vtanh.f32 %v2348_v32  ;;  %v2339_v45 = vsel %vm2338_vm8, %v2669_v42, %v2335_v11 }
 0x638   :  { %v2344_v38 = vsel %vm2341_vm9, %v2343_v29, %v2339_v45 }
 0x63d   :  { %v2673_v37 = vpop.eup %2672 }
 0x63e   :  { %v2350_v41 = vmul.f32 %v2673_v37, %v2344_v38 }
 0x640   :  { %v2352_v56 = vrot.slane %v2350_v41, 1  ;;  %v2353_v54 = vrot.slane %v2350_v41, 2  ;;  %v2354_v57 = vrot.slane %v2350_v41, 3  ;;  %2366 = vst [vmem:[%s4256_s8 + $0x7] sm:$0x1] %v2350_v41  ;;  %2410 = vmatmul.f32.vlgmr.msra.gmra.mxu0 %v2350_v41  ;;  %v2355_v60 = vrot.slane %v2350_v41, 4 }
 0x641   :  { %v2356_v8 = vrot.slane %v2350_v41, 5  ;;  %v2357_v13 = vrot.slane %v2350_v41, 6  ;;  %v2358_v33 = vrot.slane %v2350_v41, 7 }
 0x642   :  { %2367 = vst [vmem:[%s4256_s8 + $0xf] sm:$0x1] %v2352_v56 }
 0x643   :  { %2368 = vst [vmem:[%s4256_s8 + $0x17] sm:$0x1] %v2353_v54 }
 0x644   :  { %2369 = vst [vmem:[%s4256_s8 + $0x1f] sm:$0x1] %v2354_v57 }
 0x645   :  { %2370 = vst [vmem:[%s4256_s8 + $0x27] sm:$0x1] %v2355_v60 }
 0x646   :  { %2371 = vst [vmem:[%s4256_s8 + $0x2f] sm:$0x1] %v2356_v8 }
 0x647   :  { %2372 = vst [vmem:[%s4256_s8 + $0x37] sm:$0x1] %v2357_v13 }
 0x648   :  { %2373 = vst [vmem:[%s4256_s8 + $0x3f] sm:$0x1] %v2358_v33 }
 0x6bd   :  { %v2411_v35 = vpop.f32.mrf.mxu0 }
 0x6be   :  { %v2412_v59 = vadd.f32 %v2545_v5, %v2411_v35 }
 0x6c0   :  { %2415 = vrot.lane.b32.xlu0 %v2412_v59, %s2709_s18  ;;  %2419 = vrot.lane.b32.xlu2 %v2412_v59, %s2710_s4 }
 0x71a   :  { %v2420_v49 = vpop.permute.xlu2 %2419 }
 0x71b   :  { %v2422_v30 = vsub.f32 %v2412_v59, %v2420_v49 }
 0x71d   :  { %v2423_v62 = vand.u32 2147483647, %v2422_v30 }
 0x71f   :  { %v2424_v51 = vsub.f32 0.0, %v2423_v62 }
 0x721   :  { %v2425_v0 = vmul.f32 1.442695, %v2424_v51 }
 0x723   :  { %2674 = vpow2.f32 %v2425_v0 }
 0x729   :  { %v2675_v6 = vpop.eup %2674 }
 0x72a   :  { %v2427_v47 = vadd.f32 1.0, %v2675_v6 }
 0x72c   :  { %2676 = vlog2.f32 %v2427_v47 }
 0x732   :  { %v2677_v4 = vpop.eup %2676  ;;  %v2416_v3 = vpop.permute.xlu0 %2415 }
 0x733   :  { %v2429_v52 = vmul.f32 0.6931472, %v2677_v4  ;;  %v2418_v55 = vmax.f32 %v2412_v59, %v2416_v3 }
 0x735   :  { %2431 = vrot.lane.b32.xlu1 %v2429_v52, %s2709_s18 }
 0x7a7   :  { %v2432_v61 = vpop.permute.xlu1 %2431 }
 0x7a8   :  { %v2434_v9 = vadd.f32 %v2432_v61, %v2418_v55 }
 0x7aa   :  { %2437 = vperm.xlu2 %2544, %v2434_v9  }
 0x804   :  { %v2438_v26 = vpop.permute.xlu2 %2437 }
 0x805   :  { %v2440_v50 = vsub.f32 %v2412_v59, %v2438_v26 }
 0x807   :  { %2442 = vst.msk [vmem:[%s4255_s7] sm:$0xff] %vm2441_vm10, %v2440_v50 }
 0x808   :  { %2451 = vsyncpa [#allocation4], 1 }

</bundles_post_ra>
